<compile_context>
chip_gen: v7x
topology: tpu7x:2x2x1
jax: 0.10.0
libtpu: 0.0.40
codegen_flags: <defaults>
</compile_context>

<pallas_src>
import functools

import numpy as np
import jax
import jax.numpy as jnp
from jax.experimental import pallas as pl
from jax.experimental.pallas import tpu as pltpu


# ----------------------------------------------------------------------------
# pallas_call helper: single grid step, every operand fully resident in VMEM.
# ----------------------------------------------------------------------------
def _full_spec(shape):
    nd = len(shape)
    return pl.BlockSpec(tuple(shape), lambda i, _nd=nd: (0,) * _nd)


def _fused_call(kernel, args, out_shapes):
    outs = out_shapes if isinstance(out_shapes, tuple) else (out_shapes,)
    res = pl.pallas_call(
        kernel,
        out_shape=outs,
        grid=(1,),
        in_specs=[_full_spec(a.shape) for a in args],
        out_specs=tuple(_full_spec(o.shape) for o in outs),
        compiler_params=pltpu.CompilerParams(dimension_semantics=("arbitrary",)),
    )(*args)
    return res if isinstance(out_shapes, tuple) else res[0]


def _dot(a, b):
    return jnp.dot(a, b, preferred_element_type=jnp.float32)


# ----------------------------------------------------------------------------
# Fused initial layer: user MLP + mean over T + rl matmul + rl MLP.
# Output: packed state S0 (B, L+K+1, ch), rows = [rl (L) | uk (K) | uc (1)].
# ----------------------------------------------------------------------------
def _init_kernel(h_ref, eh_ref,
                 uw1, ub1, uw2, ub2,       # fu : Linear(Din,2ch) / Linear(2ch,ch)
                 fw1, fb1, fw2, fb2,       # f  : Linear(ch,ch)   / Linear(ch,ch)
                 s_ref):
    B, T, K, _ = h_ref.shape
    ch = uw2.shape[1]
    inv_t = jnp.float32(1.0 / T)
    for b in range(B):
        acc = jnp.zeros((K, ch), jnp.float32)
        for t in range(T):                                     # mean over T folded in
            x = h_ref[b, t]                                    # (K, Din)
            h1 = jnp.maximum(_dot(x, uw1[...]) + ub1[...], 0.0)
            acc = acc + _dot(h1, uw2[...]) + ub2[...]
        uk = acc * inv_t                                       # (K, ch)
        rl = _dot(eh_ref[b], uk)                               # (L, ch)
        h2 = jnp.maximum(_dot(rl, fw1[...]) + fb1[...], 0.0)
        rl = _dot(h2, fw2[...]) + fb2[...]                     # (L, ch)
        uc = jnp.mean(uk, axis=0, keepdims=True)               # (1, ch)
        s_ref[b] = jnp.concatenate([rl, uk, uc], axis=0)       # (L+K+1, ch)


# ----------------------------------------------------------------------------
# Fused node_update_layer: one pallas_call per layer.
# State in: (B, n, C); out: (B, n, C+ch) with new channels first, plus e_rc.
# ----------------------------------------------------------------------------
def _layer_kernel(s_ref, eh_ref, el_ref, erc_ref,
                  puw1, pub1, puw2, pub2,      # fu  : Linear(3C,2ch)/Linear(2ch,ch)
                  pfw1, pfb1, pfw2, pfb2,      # f   : Linear(2C,2ch)/Linear(2ch,ch)
                  pcw1, pcb1, pcw2, pcb2,      # fc  : Linear(2C,2ch)/Linear(2ch,ch)
                  pew1, peb1, pew2, peb2,      # edge: Linear(C+ch,ch)/Linear(ch,1)
                  s_out_ref, erc_out_ref):
    B, n, C = s_ref.shape
    K = erc_ref.shape[1]
    L = n - K - 1
    ch = puw2.shape[1]
    neg_inf = jnp.float32(-jnp.inf)
    row = jax.lax.broadcasted_iota(jnp.int32, (K, 1), 0)

    for b in range(B):
        s_b = s_ref[b]                                  # (n, C)
        rl = s_b[0:L, :]                                # (L, C)
        uk = s_b[L:L + K, :]                            # (K, C)
        uc = s_b[L + K:L + K + 1, :]                    # (1, C)
        erc = erc_ref[b]                                # (K, 1)

        mean_uk = _dot(el_ref[b], rl)                   # (K, C)
        mean_rl = _dot(eh_ref[b], uk)                   # (L, C)
        mean_uc = jnp.sum(erc * uk, axis=0, keepdims=True)   # (1, C)

        # leave-one-out max over the other users (K small -> unrolled 2-D ops).
        # NOTE: requires K >= 2, as in the reference model.
        mx = [jnp.max(jnp.where(row == k, neg_inf, uk), axis=0, keepdims=True)
              for k in range(K)]
        max_user = jnp.concatenate(mx, axis=0)          # (K, C)

        # fu([uk | max_user | mean_uk]) via split-weight matmuls (no concat)
        h = (_dot(uk, puw1[0:C, :]) + _dot(max_user, puw1[C:2 * C, :])
             + _dot(mean_uk, puw1[2 * C:3 * C, :]) + pub1[...])
        tmp_uk = _dot(jnp.maximum(h, 0.0), puw2[...]) + pub2[...]        # (K, ch)

        # f([rl | mean_rl])
        h = _dot(rl, pfw1[0:C, :]) + _dot(mean_rl, pfw1[C:2 * C, :]) + pfb1[...]
        tmp_rl = _dot(jnp.maximum(h, 0.0), pfw2[...]) + pfb2[...]        # (L, ch)

        # fc([mean_uc | uc])
        h = _dot(mean_uc, pcw1[0:C, :]) + _dot(uc, pcw1[C:2 * C, :]) + pcb1[...]
        tmp_uc = _dot(jnp.maximum(h, 0.0), pcw2[...]) + pcb2[...]        # (1, ch)

        # edge_update(|uc_update - uk_update|), channel layout [new ch | old C]
        d_new = jnp.abs(tmp_uc - tmp_uk)                # (K, ch)
        d_old = jnp.abs(uc - uk)                        # (K, C)
        h = _dot(d_new, pew1[0:ch, :]) + _dot(d_old, pew1[ch:ch + C, :]) + peb1[...]
        logits = _dot(jnp.maximum(h, 0.0), pew2[...]) + peb2[...]        # (K, 1)
        m = jnp.max(logits, axis=0, keepdims=True)
        ex = jnp.exp(logits - m)
        erc_out_ref[b] = ex / jnp.sum(ex, axis=0, keepdims=True)         # (K, 1)

        new_rows = jnp.concatenate([tmp_rl, tmp_uk, tmp_uc], axis=0)     # (n, ch)
        s_out_ref[b] = jnp.concatenate([new_rows, s_b], axis=1)          # (n, C+ch)


# ----------------------------------------------------------------------------
# Fused head: cal_EE (laplacian propagation + mean pool + binary MLP + softmax)
# and readout (three Linears + L2 normalisations, scaled by sqrt(Pt*mu0)).
# ----------------------------------------------------------------------------
def _head_kernel(s_ref, lapT_ref,
                 bw1, bb1, bw2, bb2,       # cal_EE.binary
                 ruw, rub,                 # readout.fu : Linear(C, 2M)
                 rfw, rfb,                 # readout.f  : Linear(C, 2N)
                 rcw, rcb,                 # readout.fc : Linear(C, 2M)
                 mu_ref, w_ref, ph_ref, *, sqrt_pt):
    B, n, C = s_ref.shape
    K = w_ref.shape[1] - 1
    L = ph_ref.shape[1]
    N = rfw.shape[1] // 2
    eps = jnp.float32(1e-12)
    for b in range(B):
        s_b = s_ref[b]                                   # (n, C) == [rl | uk | uc]

        # ---- cal_EE ----
        til = _dot(lapT_ref[b], s_b)                     # (n, C)
        pooled = jnp.mean(til, axis=0, keepdims=True)    # (1, C)
        h = jnp.maximum(_dot(pooled, bw1[...]) + bb1[...], 0.0)
        logit = _dot(h, bw2[...]) + bb2[...]             # (1, 2)
        m = jnp.max(logit, axis=1, keepdims=True)
        ex = jnp.exp(logit - m)
        mu = ex / jnp.sum(ex, axis=1, keepdims=True)     # (1, 2)
        mu_ref[b:b + 1, :] = mu

        # ---- readout ----
        rl = s_b[0:L, :]
        uk = s_b[L:L + K, :]
        uc = s_b[L + K:L + K + 1, :]

        Wu = _dot(uk, ruw[...]) + rub[...]               # (K, 2M)
        Wc = _dot(uc, rcw[...]) + rcb[...]               # (1, 2M)
        W = jnp.concatenate([Wc, Wu], axis=0)            # (K+1, 2M)
        ss = jnp.sum(W * W, axis=1, keepdims=True)       # (K+1, 1)
        ss = jnp.sum(ss, axis=0, keepdims=True)          # (1, 1)
        norm = jnp.maximum(jnp.sqrt(ss), eps)
        w_ref[b] = (W / norm) * sqrt_pt * jnp.sqrt(mu[0:1, 0:1])

        Rl = _dot(rl, rfw[...]) + rfb[...]               # (L, 2N)
        re = Rl[:, 0:N]
        im = Rl[:, N:2 * N]
        pn = jnp.maximum(jnp.sqrt(re * re + im * im), eps)
        ph_ref[b] = jnp.concatenate([re / pn, im / pn], axis=1)   # (L, 2N)


# ----------------------------------------------------------------------------
# Plain-JAX glue
# ----------------------------------------------------------------------------
def l1_normalize(x, axis):
    n = jnp.sum(jnp.abs(x), axis=axis, keepdims=True)
    return x / jnp.maximum(n, 1e-12)


def gen_laplacian(adj):
    # TODO(synk): gen_Laplacian is not defined in the reference source; we assume the
    # standard symmetric-normalized adjacency D^{-1/2} A D^{-1/2} used for GNN propagation.
    deg = jnp.sum(adj, axis=2)
    dinv = 1.0 / jnp.sqrt(jnp.maximum(deg, 1e-12))
    return adj * dinv[:, :, None] * dinv[:, None, :]


def build_adjacency(e, e_rc, L, K):
    B = e.shape[0]
    n = L + K + 1
    adj = jnp.zeros((B, n, n), jnp.float32)
    adj = adj.at[:, :L, L:L + K].set(e)
    adj = adj.at[:, L:L + K, :L].set(jnp.swapaxes(e, 1, 2))
    adj = adj.at[:, L:L + K, L:L + K].set(jnp.ones((B, K, K), jnp.float32))
    adj = adj.at[:, L + K, L:L + K].set(e_rc)
    adj = adj.at[:, L + K, L + K].set(1.0)
    return adj


# ----------------------------------------------------------------------------
# Parameter init (deterministic, PyTorch nn.Linear-style uniform init)
# ----------------------------------------------------------------------------
def _init_linear(key, din, dout):
    k1, k2 = jax.random.split(key)
    bound = 1.0 / np.sqrt(din)
    w = jax.random.uniform(k1, (din, dout), jnp.float32, -bound, bound)
    b = jax.random.uniform(k2, (dout,), jnp.float32, -bound, bound)
    return w, b


def _init_mlp(kiter, din, hid, dout):
    w1, b1 = _init_linear(next(kiter), din, hid)
    w2, b2 = _init_linear(next(kiter), hid, dout)
    return (w1, b1, w2, b2)


def init_params(key, M, N, L, D, ch):
    kiter = iter(jax.random.split(key, 64))
    params = {}
    in_dim0 = 2 * M * (N + 1)
    params["init"] = {
        "fu": _init_mlp(kiter, in_dim0, ch * 2, ch),
        "f": _init_mlp(kiter, ch, ch, ch),
    }
    params["update"] = []
    for d in range(D):
        in_dim = ch * (d + 1)
        params["update"].append({
            "fu": _init_mlp(kiter, in_dim * 3, ch * 2, ch),
            "f": _init_mlp(kiter, in_dim * 2, ch * 2, ch),
            "fc": _init_mlp(kiter, in_dim * 2, ch * 2, ch),
            "edge_update": _init_mlp(kiter, in_dim + ch, ch, 1),
        })
    in_dim_final = ch * (D + 1)
    params["cal_EE"] = {"binary": _init_mlp(kiter, in_dim_final, in_dim_final // 2, 2)}
    params["readout"] = {
        "fu": _init_linear(next(kiter), in_dim_final, M * 2),
        "f": _init_linear(next(kiter), in_dim_final, N * 2),
        "fc": _init_linear(next(kiter), in_dim_final, M * 2),
    }
    return params


def _mlp_args(m):
    w1, b1, w2, b2 = m
    return (w1, b1.reshape(1, -1), w2, b2.reshape(1, -1))


def _lin_args(m):
    w, b = m
    return (w, b.reshape(1, -1))


# ----------------------------------------------------------------------------
# Full forward
# ----------------------------------------------------------------------------
def node_update_fwd(params, user_feature, e, *, M, N, L, D, ch, Pmax):
    B, T, K, _ = user_feature.shape
    n = L + K + 1

    e_h = l1_normalize(e, axis=2)                              # (B, L, K)
    e_l = l1_normalize(jnp.swapaxes(e, 1, 2), axis=2)          # (B, K, L)

    # fused initial layer -> packed state S: rows [rl | uk | uc]
    p0 = params["init"]
    S = _fused_call(
        _init_kernel,
        (user_feature, e_h) + _mlp_args(p0["fu"]) + _mlp_args(p0["f"]),
        jax.ShapeDtypeStruct((B, n, ch), jnp.float32))

    e_rc = jnp.full((B, K, 1), 1.0 / K, jnp.float32)
    for d in range(D):
        pd = params["update"][d]
        C = ch * (d + 1)
        S, e_rc = _fused_call(
            _layer_kernel,
            (S, e_h, e_l, e_rc) + _mlp_args(pd["fu"]) + _mlp_args(pd["f"])
            + _mlp_args(pd["fc"]) + _mlp_args(pd["edge_update"]),
            (jax.ShapeDtypeStruct((B, n, C + ch), jnp.float32),
             jax.ShapeDtypeStruct((B, K, 1), jnp.float32)))

    e_rc_flat = e_rc[:, :, 0]                                  # (B, K)

    # cal_EE adjacency / Laplacian (tiny scatter, stays in JAX)
    adj = build_adjacency(e, e_rc_flat, L, K)
    lapT = jnp.swapaxes(gen_laplacian(adj), 1, 2)              # (B, n, n)

    pr = params["readout"]
    pb = params["cal_EE"]["binary"]
    mu, W, phase = _fused_call(
        functools.partial(_head_kernel, sqrt_pt=float(np.sqrt(Pmax))),
        (S, lapT) + _mlp_args(pb) + _lin_args(pr["fu"]) + _lin_args(pr["f"])
        + _lin_args(pr["fc"]),
        (jax.ShapeDtypeStruct((B, 2), jnp.float32),
         jax.ShapeDtypeStruct((B, K + 1, 2 * M), jnp.float32),
         jax.ShapeDtypeStruct((B, L, 2 * N), jnp.float32)))

    theta = jnp.stack([phase[:, :, :N], phase[:, :, N:]], axis=3)   # (B, L, N, 2)
    return W, theta, mu, e_rc_flat


# ----------------------------------------------------------------------------
# Driver
# ----------------------------------------------------------------------------
if __name__ == "__main__":
    # Small config: M antennas, N RIS elements, L RIS nodes, D update layers, K users.
    M, N, L, D, ch = 2, 2, 4, 2, 16
    Pmax, b = 4.0, 1.0   # b unused in the forward pass (matches the PyTorch module)
    B, T, K = 2, 2, 6
    in_dim0 = 2 * M * (N + 1)   # = 12

    key = jax.random.PRNGKey(0)
    kp, kh, ke = jax.random.split(key, 3)

    params = init_params(kp, M, N, L, D, ch)
    user_feature = jax.random.normal(kh, (B, T, K, in_dim0), jnp.float32)
    e = jax.random.uniform(ke, (B, L, K), jnp.float32, 0.1, 1.0)   # positive channel gains

    fwd = jax.jit(functools.partial(node_update_fwd,
                                    M=M, N=N, L=L, D=D, ch=ch, Pmax=Pmax))
    W, theta, mu, e_rc = fwd(params, user_feature, e)
    jax.block_until_ready((W, theta, mu, e_rc))

    assert W.shape == (B, K + 1, 2 * M)
    assert theta.shape == (B, L, N, 2)
    assert mu.shape == (B, 2)
    assert e_rc.shape == (B, K)
    print("KERNEL_OK")
</pallas_src>

<mosaic_0001>
module attributes {stable_mosaic.version = 11 : i64} {
  func.func @_init_kernel(%arg0: i32, %arg1: memref<2x2x6x12xf32, #tpu.memory_space<vmem>>, %arg2: memref<2x4x6xf32, #tpu.memory_space<vmem>>, %arg3: memref<12x32xf32, #tpu.memory_space<vmem>>, %arg4: memref<1x32xf32, #tpu.memory_space<vmem>>, %arg5: memref<32x16xf32, #tpu.memory_space<vmem>>, %arg6: memref<1x16xf32, #tpu.memory_space<vmem>>, %arg7: memref<16x16xf32, #tpu.memory_space<vmem>>, %arg8: memref<1x16xf32, #tpu.memory_space<vmem>>, %arg9: memref<16x16xf32, #tpu.memory_space<vmem>>, %arg10: memref<1x16xf32, #tpu.memory_space<vmem>>, %arg11: memref<2x11x16xf32, #tpu.memory_space<vmem>>) attributes {dimension_semantics = [#tpu.dimension_semantics<arbitrary>], iteration_bounds = array<i64: 1>, scalar_prefetch = 0 : i64, scratch_operands = 0 : i64, tpu.core_type = #tpu.core_type<tc>, window_params = [{pipeline_mode = #tpu.pipeline_mode<synchronous>, transform_indices = @transform_0, window_bounds = array<i64: 2, 2, 6, 12>}, {pipeline_mode = #tpu.pipeline_mode<synchronous>, transform_indices = @transform_1, window_bounds = array<i64: 2, 4, 6>}, {pipeline_mode = #tpu.pipeline_mode<synchronous>, transform_indices = @transform_2, window_bounds = array<i64: 12, 32>}, {pipeline_mode = #tpu.pipeline_mode<synchronous>, transform_indices = @transform_3, window_bounds = array<i64: 1, 32>}, {pipeline_mode = #tpu.pipeline_mode<synchronous>, transform_indices = @transform_4, window_bounds = array<i64: 32, 16>}, {pipeline_mode = #tpu.pipeline_mode<synchronous>, transform_indices = @transform_5, window_bounds = array<i64: 1, 16>}, {pipeline_mode = #tpu.pipeline_mode<synchronous>, transform_indices = @transform_6, window_bounds = array<i64: 16, 16>}, {pipeline_mode = #tpu.pipeline_mode<synchronous>, transform_indices = @transform_7, window_bounds = array<i64: 1, 16>}, {pipeline_mode = #tpu.pipeline_mode<synchronous>, transform_indices = @transform_8, window_bounds = array<i64: 16, 16>}, {pipeline_mode = #tpu.pipeline_mode<synchronous>, transform_indices = @transform_9, window_bounds = array<i64: 1, 16>}, {pipeline_mode = #tpu.pipeline_mode<synchronous>, transform_indices = @transform_10, window_bounds = array<i64: 2, 11, 16>}]} {
    %cst = arith.constant 0.000000e+00 : f32
    %0 = vector.broadcast %cst : f32 to vector<6x16xf32>
    %c0 = arith.constant 0 : index
    %c0_0 = arith.constant 0 : index
    %c0_1 = arith.constant 0 : index
    %c0_2 = arith.constant 0 : index
    %1 = vector.load %arg1[%c0, %c0_0, %c0_1, %c0_2] : memref<2x2x6x12xf32, #tpu.memory_space<vmem>>, vector<1x1x6x12xf32>
    %2 = vector.shape_cast %1 : vector<1x1x6x12xf32> to vector<6x12xf32>
    %c0_3 = arith.constant 0 : index
    %c0_4 = arith.constant 0 : index
    %3 = vector.load %arg3[%c0_3, %c0_4] : memref<12x32xf32, #tpu.memory_space<vmem>>, vector<12x32xf32>
    %cst_5 = arith.constant dense<0.000000e+00> : vector<6x32xf32>
    %4 = tpu.matmul %2, %3, %cst_5 {dimension_numbers = #tpu.dot_dimension_numbers<[1], [0], [0], [1], [0, 0, 1, 1], [], []>} : vector<6x12xf32>, vector<12x32xf32>, vector<6x32xf32> -> vector<6x32xf32>
    %c0_6 = arith.constant 0 : index
    %c0_7 = arith.constant 0 : index
    %5 = vector.load %arg4[%c0_6, %c0_7] : memref<1x32xf32, #tpu.memory_space<vmem>>, vector<1x32xf32>
    %6 = vector.broadcast %5 : vector<1x32xf32> to vector<6x32xf32>
    %7 = arith.addf %4, %6 : vector<6x32xf32>
    %cst_8 = arith.constant 0.000000e+00 : f32
    %8 = vector.broadcast %cst_8 : f32 to vector<6x32xf32>
    %9 = arith.maximumf %7, %8 : vector<6x32xf32>
    %c0_9 = arith.constant 0 : index
    %c0_10 = arith.constant 0 : index
    %10 = vector.load %arg5[%c0_9, %c0_10] : memref<32x16xf32, #tpu.memory_space<vmem>>, vector<32x16xf32>
    %cst_11 = arith.constant dense<0.000000e+00> : vector<6x16xf32>
    %11 = tpu.matmul %9, %10, %cst_11 {dimension_numbers = #tpu.dot_dimension_numbers<[1], [0], [0], [1], [0, 0, 1, 1], [], []>} : vector<6x32xf32>, vector<32x16xf32>, vector<6x16xf32> -> vector<6x16xf32>
    %12 = arith.addf %0, %11 : vector<6x16xf32>
    %c0_12 = arith.constant 0 : index
    %c0_13 = arith.constant 0 : index
    %13 = vector.load %arg6[%c0_12, %c0_13] : memref<1x16xf32, #tpu.memory_space<vmem>>, vector<1x16xf32>
    %14 = vector.broadcast %13 : vector<1x16xf32> to vector<6x16xf32>
    %15 = arith.addf %12, %14 : vector<6x16xf32>
    %c0_14 = arith.constant 0 : index
    %c1 = arith.constant 1 : index
    %c0_15 = arith.constant 0 : index
    %c0_16 = arith.constant 0 : index
    %16 = vector.load %arg1[%c0_14, %c1, %c0_15, %c0_16] : memref<2x2x6x12xf32, #tpu.memory_space<vmem>>, vector<1x1x6x12xf32>
    %17 = vector.shape_cast %16 : vector<1x1x6x12xf32> to vector<6x12xf32>
    %c0_17 = arith.constant 0 : index
    %c0_18 = arith.constant 0 : index
    %18 = vector.load %arg3[%c0_17, %c0_18] : memref<12x32xf32, #tpu.memory_space<vmem>>, vector<12x32xf32>
    %cst_19 = arith.constant dense<0.000000e+00> : vector<6x32xf32>
    %19 = tpu.matmul %17, %18, %cst_19 {dimension_numbers = #tpu.dot_dimension_numbers<[1], [0], [0], [1], [0, 0, 1, 1], [], []>} : vector<6x12xf32>, vector<12x32xf32>, vector<6x32xf32> -> vector<6x32xf32>
    %c0_20 = arith.constant 0 : index
    %c0_21 = arith.constant 0 : index
    %20 = vector.load %arg4[%c0_20, %c0_21] : memref<1x32xf32, #tpu.memory_space<vmem>>, vector<1x32xf32>
    %21 = vector.broadcast %20 : vector<1x32xf32> to vector<6x32xf32>
    %22 = arith.addf %19, %21 : vector<6x32xf32>
    %cst_22 = arith.constant 0.000000e+00 : f32
    %23 = vector.broadcast %cst_22 : f32 to vector<6x32xf32>
    %24 = arith.maximumf %22, %23 : vector<6x32xf32>
    %c0_23 = arith.constant 0 : index
    %c0_24 = arith.constant 0 : index
    %25 = vector.load %arg5[%c0_23, %c0_24] : memref<32x16xf32, #tpu.memory_space<vmem>>, vector<32x16xf32>
    %cst_25 = arith.constant dense<0.000000e+00> : vector<6x16xf32>
    %26 = tpu.matmul %24, %25, %cst_25 {dimension_numbers = #tpu.dot_dimension_numbers<[1], [0], [0], [1], [0, 0, 1, 1], [], []>} : vector<6x32xf32>, vector<32x16xf32>, vector<6x16xf32> -> vector<6x16xf32>
    %27 = arith.addf %15, %26 : vector<6x16xf32>
    %c0_26 = arith.constant 0 : index
    %c0_27 = arith.constant 0 : index
    %28 = vector.load %arg6[%c0_26, %c0_27] : memref<1x16xf32, #tpu.memory_space<vmem>>, vector<1x16xf32>
    %29 = vector.broadcast %28 : vector<1x16xf32> to vector<6x16xf32>
    %30 = arith.addf %27, %29 : vector<6x16xf32>
    %cst_28 = arith.constant 5.000000e-01 : f32
    %31 = vector.broadcast %cst_28 : f32 to vector<6x16xf32>
    %32 = arith.mulf %30, %31 : vector<6x16xf32>
    %c0_29 = arith.constant 0 : index
    %c0_30 = arith.constant 0 : index
    %c0_31 = arith.constant 0 : index
    %33 = vector.load %arg2[%c0_29, %c0_30, %c0_31] : memref<2x4x6xf32, #tpu.memory_space<vmem>>, vector<1x4x6xf32>
    %34 = vector.shape_cast %33 : vector<1x4x6xf32> to vector<4x6xf32>
    %cst_32 = arith.constant dense<0.000000e+00> : vector<4x16xf32>
    %35 = tpu.matmul %34, %32, %cst_32 {dimension_numbers = #tpu.dot_dimension_numbers<[1], [0], [0], [1], [0, 0, 1, 1], [], []>} : vector<4x6xf32>, vector<6x16xf32>, vector<4x16xf32> -> vector<4x16xf32>
    %c0_33 = arith.constant 0 : index
    %c0_34 = arith.constant 0 : index
    %36 = vector.load %arg7[%c0_33, %c0_34] : memref<16x16xf32, #tpu.memory_space<vmem>>, vector<16x16xf32>
    %cst_35 = arith.constant dense<0.000000e+00> : vector<4x16xf32>
    %37 = tpu.matmul %35, %36, %cst_35 {dimension_numbers = #tpu.dot_dimension_numbers<[1], [0], [0], [1], [0, 0, 1, 1], [], []>} : vector<4x16xf32>, vector<16x16xf32>, vector<4x16xf32> -> vector<4x16xf32>
    %c0_36 = arith.constant 0 : index
    %c0_37 = arith.constant 0 : index
    %38 = vector.load %arg8[%c0_36, %c0_37] : memref<1x16xf32, #tpu.memory_space<vmem>>, vector<1x16xf32>
    %39 = vector.broadcast %38 : vector<1x16xf32> to vector<4x16xf32>
    %40 = arith.addf %37, %39 : vector<4x16xf32>
    %cst_38 = arith.constant 0.000000e+00 : f32
    %41 = vector.broadcast %cst_38 : f32 to vector<4x16xf32>
    %42 = arith.maximumf %40, %41 : vector<4x16xf32>
    %c0_39 = arith.constant 0 : index
    %c0_40 = arith.constant 0 : index
    %43 = vector.load %arg9[%c0_39, %c0_40] : memref<16x16xf32, #tpu.memory_space<vmem>>, vector<16x16xf32>
    %cst_41 = arith.constant dense<0.000000e+00> : vector<4x16xf32>
    %44 = tpu.matmul %42, %43, %cst_41 {dimension_numbers = #tpu.dot_dimension_numbers<[1], [0], [0], [1], [0, 0, 1, 1], [], []>} : vector<4x16xf32>, vector<16x16xf32>, vector<4x16xf32> -> vector<4x16xf32>
    %c0_42 = arith.constant 0 : index
    %c0_43 = arith.constant 0 : index
    %45 = vector.load %arg10[%c0_42, %c0_43] : memref<1x16xf32, #tpu.memory_space<vmem>>, vector<1x16xf32>
    %46 = vector.broadcast %45 : vector<1x16xf32> to vector<4x16xf32>
    %47 = arith.addf %44, %46 : vector<4x16xf32>
    %cst_44 = arith.constant dense<0.000000e+00> : vector<16xf32>
    %48 = vector.multi_reduction <add>, %32, %cst_44 [0] : vector<6x16xf32> to vector<16xf32>
    %49 = vector.shape_cast %48 : vector<16xf32> to vector<1x16xf32>
    %cst_45 = arith.constant 6.000000e+00 : f32
    %50 = vector.broadcast %cst_45 : f32 to vector<1x16xf32>
    %51 = arith.divf %49, %50 : vector<1x16xf32>
    %52 = tpu.concatenate %47, %32, %51 in 0 : vector<4x16xf32>, vector<6x16xf32>, vector<1x16xf32> -> vector<11x16xf32>
    %c0_46 = arith.constant 0 : index
    %c0_47 = arith.constant 0 : index
    %c0_48 = arith.constant 0 : index
    %53 = vector.load %arg11[%c0_46, %c0_47, %c0_48] : memref<2x11x16xf32, #tpu.memory_space<vmem>>, vector<1x11x16xf32>
    %54 = vector.shape_cast %53 : vector<1x11x16xf32> to vector<11x16xf32>
    %55 = vector.shape_cast %52 : vector<11x16xf32> to vector<1x11x16xf32>
    tpu.vector_store %arg11[%c0_46, %c0_47, %c0_48], %55 {strides = array<i32>} : memref<2x11x16xf32, #tpu.memory_space<vmem>>, vector<1x11x16xf32>,
    %cst_49 = arith.constant 0.000000e+00 : f32
    %56 = vector.broadcast %cst_49 : f32 to vector<6x16xf32>
    %c1_50 = arith.constant 1 : index
    %c0_51 = arith.constant 0 : index
    %c0_52 = arith.constant 0 : index
    %c0_53 = arith.constant 0 : index
    %57 = vector.load %arg1[%c1_50, %c0_51, %c0_52, %c0_53] : memref<2x2x6x12xf32, #tpu.memory_space<vmem>>, vector<1x1x6x12xf32>
    %58 = vector.shape_cast %57 : vector<1x1x6x12xf32> to vector<6x12xf32>
    %c0_54 = arith.constant 0 : index
    %c0_55 = arith.constant 0 : index
    %59 = vector.load %arg3[%c0_54, %c0_55] : memref<12x32xf32, #tpu.memory_space<vmem>>, vector<12x32xf32>
    %cst_56 = arith.constant dense<0.000000e+00> : vector<6x32xf32>
    %60 = tpu.matmul %58, %59, %cst_56 {dimension_numbers = #tpu.dot_dimension_numbers<[1], [0], [0], [1], [0, 0, 1, 1], [], []>} : vector<6x12xf32>, vector<12x32xf32>, vector<6x32xf32> -> vector<6x32xf32>
    %c0_57 = arith.constant 0 : index
    %c0_58 = arith.constant 0 : index
    %61 = vector.load %arg4[%c0_57, %c0_58] : memref<1x32xf32, #tpu.memory_space<vmem>>, vector<1x32xf32>
    %62 = vector.broadcast %61 : vector<1x32xf32> to vector<6x32xf32>
    %63 = arith.addf %60, %62 : vector<6x32xf32>
    %cst_59 = arith.constant 0.000000e+00 : f32
    %64 = vector.broadcast %cst_59 : f32 to vector<6x32xf32>
    %65 = arith.maximumf %63, %64 : vector<6x32xf32>
    %c0_60 = arith.constant 0 : index
    %c0_61 = arith.constant 0 : index
    %66 = vector.load %arg5[%c0_60, %c0_61] : memref<32x16xf32, #tpu.memory_space<vmem>>, vector<32x16xf32>
    %cst_62 = arith.constant dense<0.000000e+00> : vector<6x16xf32>
    %67 = tpu.matmul %65, %66, %cst_62 {dimension_numbers = #tpu.dot_dimension_numbers<[1], [0], [0], [1], [0, 0, 1, 1], [], []>} : vector<6x32xf32>, vector<32x16xf32>, vector<6x16xf32> -> vector<6x16xf32>
    %68 = arith.addf %56, %67 : vector<6x16xf32>
    %c0_63 = arith.constant 0 : index
    %c0_64 = arith.constant 0 : index
    %69 = vector.load %arg6[%c0_63, %c0_64] : memref<1x16xf32, #tpu.memory_space<vmem>>, vector<1x16xf32>
    %70 = vector.broadcast %69 : vector<1x16xf32> to vector<6x16xf32>
    %71 = arith.addf %68, %70 : vector<6x16xf32>
    %c1_65 = arith.constant 1 : index
    %c1_66 = arith.constant 1 : index
    %c0_67 = arith.constant 0 : index
    %c0_68 = arith.constant 0 : index
    %72 = vector.load %arg1[%c1_65, %c1_66, %c0_67, %c0_68] : memref<2x2x6x12xf32, #tpu.memory_space<vmem>>, vector<1x1x6x12xf32>
    %73 = vector.shape_cast %72 : vector<1x1x6x12xf32> to vector<6x12xf32>
    %c0_69 = arith.constant 0 : index
    %c0_70 = arith.constant 0 : index
    %74 = vector.load %arg3[%c0_69, %c0_70] : memref<12x32xf32, #tpu.memory_space<vmem>>, vector<12x32xf32>
    %cst_71 = arith.constant dense<0.000000e+00> : vector<6x32xf32>
    %75 = tpu.matmul %73, %74, %cst_71 {dimension_numbers = #tpu.dot_dimension_numbers<[1], [0], [0], [1], [0, 0, 1, 1], [], []>} : vector<6x12xf32>, vector<12x32xf32>, vector<6x32xf32> -> vector<6x32xf32>
    %c0_72 = arith.constant 0 : index
    %c0_73 = arith.constant 0 : index
    %76 = vector.load %arg4[%c0_72, %c0_73] : memref<1x32xf32, #tpu.memory_space<vmem>>, vector<1x32xf32>
    %77 = vector.broadcast %76 : vector<1x32xf32> to vector<6x32xf32>
    %78 = arith.addf %75, %77 : vector<6x32xf32>
    %cst_74 = arith.constant 0.000000e+00 : f32
    %79 = vector.broadcast %cst_74 : f32 to vector<6x32xf32>
    %80 = arith.maximumf %78, %79 : vector<6x32xf32>
    %c0_75 = arith.constant 0 : index
    %c0_76 = arith.constant 0 : index
    %81 = vector.load %arg5[%c0_75, %c0_76] : memref<32x16xf32, #tpu.memory_space<vmem>>, vector<32x16xf32>
    %cst_77 = arith.constant dense<0.000000e+00> : vector<6x16xf32>
    %82 = tpu.matmul %80, %81, %cst_77 {dimension_numbers = #tpu.dot_dimension_numbers<[1], [0], [0], [1], [0, 0, 1, 1], [], []>} : vector<6x32xf32>, vector<32x16xf32>, vector<6x16xf32> -> vector<6x16xf32>
    %83 = arith.addf %71, %82 : vector<6x16xf32>
    %c0_78 = arith.constant 0 : index
    %c0_79 = arith.constant 0 : index
    %84 = vector.load %arg6[%c0_78, %c0_79] : memref<1x16xf32, #tpu.memory_space<vmem>>, vector<1x16xf32>
    %85 = vector.broadcast %84 : vector<1x16xf32> to vector<6x16xf32>
    %86 = arith.addf %83, %85 : vector<6x16xf32>
    %cst_80 = arith.constant 5.000000e-01 : f32
    %87 = vector.broadcast %cst_80 : f32 to vector<6x16xf32>
    %88 = arith.mulf %86, %87 : vector<6x16xf32>
    %c1_81 = arith.constant 1 : index
    %c0_82 = arith.constant 0 : index
    %c0_83 = arith.constant 0 : index
    %89 = vector.load %arg2[%c1_81, %c0_82, %c0_83] : memref<2x4x6xf32, #tpu.memory_space<vmem>>, vector<1x4x6xf32>
    %90 = vector.shape_cast %89 : vector<1x4x6xf32> to vector<4x6xf32>
    %cst_84 = arith.constant dense<0.000000e+00> : vector<4x16xf32>
    %91 = tpu.matmul %90, %88, %cst_84 {dimension_numbers = #tpu.dot_dimension_numbers<[1], [0], [0], [1], [0, 0, 1, 1], [], []>} : vector<4x6xf32>, vector<6x16xf32>, vector<4x16xf32> -> vector<4x16xf32>
    %c0_85 = arith.constant 0 : index
    %c0_86 = arith.constant 0 : index
    %92 = vector.load %arg7[%c0_85, %c0_86] : memref<16x16xf32, #tpu.memory_space<vmem>>, vector<16x16xf32>
    %cst_87 = arith.constant dense<0.000000e+00> : vector<4x16xf32>
    %93 = tpu.matmul %91, %92, %cst_87 {dimension_numbers = #tpu.dot_dimension_numbers<[1], [0], [0], [1], [0, 0, 1, 1], [], []>} : vector<4x16xf32>, vector<16x16xf32>, vector<4x16xf32> -> vector<4x16xf32>
    %c0_88 = arith.constant 0 : index
    %c0_89 = arith.constant 0 : index
    %94 = vector.load %arg8[%c0_88, %c0_89] : memref<1x16xf32, #tpu.memory_space<vmem>>, vector<1x16xf32>
    %95 = vector.broadcast %94 : vector<1x16xf32> to vector<4x16xf32>
    %96 = arith.addf %93, %95 : vector<4x16xf32>
    %cst_90 = arith.constant 0.000000e+00 : f32
    %97 = vector.broadcast %cst_90 : f32 to vector<4x16xf32>
    %98 = arith.maximumf %96, %97 : vector<4x16xf32>
    %c0_91 = arith.constant 0 : index
    %c0_92 = arith.constant 0 : index
    %99 = vector.load %arg9[%c0_91, %c0_92] : memref<16x16xf32, #tpu.memory_space<vmem>>, vector<16x16xf32>
    %cst_93 = arith.constant dense<0.000000e+00> : vector<4x16xf32>
    %100 = tpu.matmul %98, %99, %cst_93 {dimension_numbers = #tpu.dot_dimension_numbers<[1], [0], [0], [1], [0, 0, 1, 1], [], []>} : vector<4x16xf32>, vector<16x16xf32>, vector<4x16xf32> -> vector<4x16xf32>
    %c0_94 = arith.constant 0 : index
    %c0_95 = arith.constant 0 : index
    %101 = vector.load %arg10[%c0_94, %c0_95] : memref<1x16xf32, #tpu.memory_space<vmem>>, vector<1x16xf32>
    %102 = vector.broadcast %101 : vector<1x16xf32> to vector<4x16xf32>
    %103 = arith.addf %100, %102 : vector<4x16xf32>
    %cst_96 = arith.constant dense<0.000000e+00> : vector<16xf32>
    %104 = vector.multi_reduction <add>, %88, %cst_96 [0] : vector<6x16xf32> to vector<16xf32>
    %105 = vector.shape_cast %104 : vector<16xf32> to vector<1x16xf32>
    %cst_97 = arith.constant 6.000000e+00 : f32
    %106 = vector.broadcast %cst_97 : f32 to vector<1x16xf32>
    %107 = arith.divf %105, %106 : vector<1x16xf32>
    %108 = tpu.concatenate %103, %88, %107 in 0 : vector<4x16xf32>, vector<6x16xf32>, vector<1x16xf32> -> vector<11x16xf32>
    %c1_98 = arith.constant 1 : index
    %c0_99 = arith.constant 0 : index
    %c0_100 = arith.constant 0 : index
    %109 = vector.load %arg11[%c1_98, %c0_99, %c0_100] : memref<2x11x16xf32, #tpu.memory_space<vmem>>, vector<1x11x16xf32>
    %110 = vector.shape_cast %109 : vector<1x11x16xf32> to vector<11x16xf32>
    %111 = vector.shape_cast %108 : vector<11x16xf32> to vector<1x11x16xf32>
    tpu.vector_store %arg11[%c1_98, %c0_99, %c0_100], %111 {strides = array<i32>} : memref<2x11x16xf32, #tpu.memory_space<vmem>>, vector<1x11x16xf32>,
    return
  }
  func.func @transform_0(%arg0: i32) -> (i32, i32, i32, i32) {
    %c0_i32 = arith.constant 0 : i32
    %c0_i32_0 = arith.constant 0 : i32
    %c0_i32_1 = arith.constant 0 : i32
    %c0_i32_2 = arith.constant 0 : i32
    %c0_i32_3 = arith.constant 0 : i32
    return %c0_i32, %c0_i32_0, %c0_i32_1, %c0_i32_2 : i32, i32, i32, i32
  }
  func.func @transform_1(%arg0: i32) -> (i32, i32, i32) {
    %c0_i32 = arith.constant 0 : i32
    %c0_i32_0 = arith.constant 0 : i32
    %c0_i32_1 = arith.constant 0 : i32
    %c0_i32_2 = arith.constant 0 : i32
    return %c0_i32, %c0_i32_0, %c0_i32_1 : i32, i32, i32
  }
  func.func @transform_2(%arg0: i32) -> (i32, i32) {
    %c0_i32 = arith.constant 0 : i32
    %c0_i32_0 = arith.constant 0 : i32
    %c0_i32_1 = arith.constant 0 : i32
    return %c0_i32, %c0_i32_0 : i32, i32
  }
  func.func @transform_3(%arg0: i32) -> (i32, i32) {
    %c0_i32 = arith.constant 0 : i32
    %c0_i32_0 = arith.constant 0 : i32
    %c0_i32_1 = arith.constant 0 : i32
    return %c0_i32, %c0_i32_0 : i32, i32
  }
  func.func @transform_4(%arg0: i32) -> (i32, i32) {
    %c0_i32 = arith.constant 0 : i32
    %c0_i32_0 = arith.constant 0 : i32
    %c0_i32_1 = arith.constant 0 : i32
    return %c0_i32, %c0_i32_0 : i32, i32
  }
  func.func @transform_5(%arg0: i32) -> (i32, i32) {
    %c0_i32 = arith.constant 0 : i32
    %c0_i32_0 = arith.constant 0 : i32
    %c0_i32_1 = arith.constant 0 : i32
    return %c0_i32, %c0_i32_0 : i32, i32
  }
  func.func @transform_6(%arg0: i32) -> (i32, i32) {
    %c0_i32 = arith.constant 0 : i32
    %c0_i32_0 = arith.constant 0 : i32
    %c0_i32_1 = arith.constant 0 : i32
    return %c0_i32, %c0_i32_0 : i32, i32
  }
  func.func @transform_7(%arg0: i32) -> (i32, i32) {
    %c0_i32 = arith.constant 0 : i32
    %c0_i32_0 = arith.constant 0 : i32
    %c0_i32_1 = arith.constant 0 : i32
    return %c0_i32, %c0_i32_0 : i32, i32
  }
  func.func @transform_8(%arg0: i32) -> (i32, i32) {
    %c0_i32 = arith.constant 0 : i32
    %c0_i32_0 = arith.constant 0 : i32
    %c0_i32_1 = arith.constant 0 : i32
    return %c0_i32, %c0_i32_0 : i32, i32
  }
  func.func @transform_9(%arg0: i32) -> (i32, i32) {
    %c0_i32 = arith.constant 0 : i32
    %c0_i32_0 = arith.constant 0 : i32
    %c0_i32_1 = arith.constant 0 : i32
    return %c0_i32, %c0_i32_0 : i32, i32
  }
  func.func @transform_10(%arg0: i32) -> (i32, i32, i32) {
    %c0_i32 = arith.constant 0 : i32
    %c0_i32_0 = arith.constant 0 : i32
    %c0_i32_1 = arith.constant 0 : i32
    %c0_i32_2 = arith.constant 0 : i32
    return %c0_i32, %c0_i32_0, %c0_i32_1 : i32, i32, i32
  }
}

module attributes {stable_mosaic.version = 11 : i64} {
  func.func @_layer_kernel(%arg0: i32, %arg1: memref<2x11x16xf32, #tpu.memory_space<vmem>>, %arg2: memref<2x4x6xf32, #tpu.memory_space<vmem>>, %arg3: memref<2x6x4xf32, #tpu.memory_space<vmem>>, %arg4: memref<2x6x1xf32, #tpu.memory_space<vmem>>, %arg5: memref<48x32xf32, #tpu.memory_space<vmem>>, %arg6: memref<1x32xf32, #tpu.memory_space<vmem>>, %arg7: memref<32x16xf32, #tpu.memory_space<vmem>>, %arg8: memref<1x16xf32, #tpu.memory_space<vmem>>, %arg9: memref<32x32xf32, #tpu.memory_space<vmem>>, %arg10: memref<1x32xf32, #tpu.memory_space<vmem>>, %arg11: memref<32x16xf32, #tpu.memory_space<vmem>>, %arg12: memref<1x16xf32, #tpu.memory_space<vmem>>, %arg13: memref<32x32xf32, #tpu.memory_space<vmem>>, %arg14: memref<1x32xf32, #tpu.memory_space<vmem>>, %arg15: memref<32x16xf32, #tpu.memory_space<vmem>>, %arg16: memref<1x16xf32, #tpu.memory_space<vmem>>, %arg17: memref<32x16xf32, #tpu.memory_space<vmem>>, %arg18: memref<1x16xf32, #tpu.memory_space<vmem>>, %arg19: memref<16x1xf32, #tpu.memory_space<vmem>>, %arg20: memref<1x1xf32, #tpu.memory_space<vmem>>, %arg21: memref<2x11x32xf32, #tpu.memory_space<vmem>>, %arg22: memref<2x6x1xf32, #tpu.memory_space<vmem>>) attributes {dimension_semantics = [#tpu.dimension_semantics<arbitrary>], iteration_bounds = array<i64: 1>, scalar_prefetch = 0 : i64, scratch_operands = 0 : i64, tpu.core_type = #tpu.core_type<tc>, window_params = [{pipeline_mode = #tpu.pipeline_mode<synchronous>, transform_indices = @transform_0, window_bounds = array<i64: 2, 11, 16>}, {pipeline_mode = #tpu.pipeline_mode<synchronous>, transform_indices = @transform_1, window_bounds = array<i64: 2, 4, 6>}, {pipeline_mode = #tpu.pipeline_mode<synchronous>, transform_indices = @transform_2, window_bounds = array<i64: 2, 6, 4>}, {pipeline_mode = #tpu.pipeline_mode<synchronous>, transform_indices = @transform_3, window_bounds = array<i64: 2, 6, 1>}, {pipeline_mode = #tpu.pipeline_mode<synchronous>, transform_indices = @transform_4, window_bounds = array<i64: 48, 32>}, {pipeline_mode = #tpu.pipeline_mode<synchronous>, transform_indices = @transform_5, window_bounds = array<i64: 1, 32>}, {pipeline_mode = #tpu.pipeline_mode<synchronous>, transform_indices = @transform_6, window_bounds = array<i64: 32, 16>}, {pipeline_mode = #tpu.pipeline_mode<synchronous>, transform_indices = @transform_7, window_bounds = array<i64: 1, 16>}, {pipeline_mode = #tpu.pipeline_mode<synchronous>, transform_indices = @transform_8, window_bounds = array<i64: 32, 32>}, {pipeline_mode = #tpu.pipeline_mode<synchronous>, transform_indices = @transform_9, window_bounds = array<i64: 1, 32>}, {pipeline_mode = #tpu.pipeline_mode<synchronous>, transform_indices = @transform_10, window_bounds = array<i64: 32, 16>}, {pipeline_mode = #tpu.pipeline_mode<synchronous>, transform_indices = @transform_11, window_bounds = array<i64: 1, 16>}, {pipeline_mode = #tpu.pipeline_mode<synchronous>, transform_indices = @transform_12, window_bounds = array<i64: 32, 32>}, {pipeline_mode = #tpu.pipeline_mode<synchronous>, transform_indices = @transform_13, window_bounds = array<i64: 1, 32>}, {pipeline_mode = #tpu.pipeline_mode<synchronous>, transform_indices = @transform_14, window_bounds = array<i64: 32, 16>}, {pipeline_mode = #tpu.pipeline_mode<synchronous>, transform_indices = @transform_15, window_bounds = array<i64: 1, 16>}, {pipeline_mode = #tpu.pipeline_mode<synchronous>, transform_indices = @transform_16, window_bounds = array<i64: 32, 16>}, {pipeline_mode = #tpu.pipeline_mode<synchronous>, transform_indices = @transform_17, window_bounds = array<i64: 1, 16>}, {pipeline_mode = #tpu.pipeline_mode<synchronous>, transform_indices = @transform_18, window_bounds = array<i64: 16, 1>}, {pipeline_mode = #tpu.pipeline_mode<synchronous>, transform_indices = @transform_19, window_bounds = array<i64: 1, 1>}, {pipeline_mode = #tpu.pipeline_mode<synchronous>, transform_indices = @transform_20, window_bounds = array<i64: 2, 11, 32>}, {pipeline_mode = #tpu.pipeline_mode<synchronous>, transform_indices = @transform_21, window_bounds = array<i64: 2, 6, 1>}]} {
    %0 = tpu.iota {dimensions = array<i32: 0>} : vector<6x1xi32>
    %c0 = arith.constant 0 : index
    %c0_0 = arith.constant 0 : index
    %c0_1 = arith.constant 0 : index
    %1 = vector.load %arg1[%c0, %c0_0, %c0_1] : memref<2x11x16xf32, #tpu.memory_space<vmem>>, vector<1x11x16xf32>
    %2 = vector.shape_cast %1 : vector<1x11x16xf32> to vector<11x16xf32>
    %3 = vector.extract_strided_slice %2 {offsets = [0, 0], sizes = [4, 16], strides = [1, 1]} : vector<11x16xf32> to vector<4x16xf32>
    %4 = vector.extract_strided_slice %2 {offsets = [4, 0], sizes = [6, 16], strides = [1, 1]} : vector<11x16xf32> to vector<6x16xf32>
    %5 = vector.extract_strided_slice %2 {offsets = [10, 0], sizes = [1, 16], strides = [1, 1]} : vector<11x16xf32> to vector<1x16xf32>
    %c0_2 = arith.constant 0 : index
    %c0_3 = arith.constant 0 : index
    %c0_4 = arith.constant 0 : index
    %6 = vector.load %arg4[%c0_2, %c0_3, %c0_4] : memref<2x6x1xf32, #tpu.memory_space<vmem>>, vector<1x6x1xf32>
    %7 = vector.shape_cast %6 : vector<1x6x1xf32> to vector<6x1xf32>
    %c0_5 = arith.constant 0 : index
    %c0_6 = arith.constant 0 : index
    %c0_7 = arith.constant 0 : index
    %8 = vector.load %arg3[%c0_5, %c0_6, %c0_7] : memref<2x6x4xf32, #tpu.memory_space<vmem>>, vector<1x6x4xf32>
    %9 = vector.shape_cast %8 : vector<1x6x4xf32> to vector<6x4xf32>
    %cst = arith.constant dense<0.000000e+00> : vector<6x16xf32>
    %10 = tpu.matmul %9, %3, %cst {dimension_numbers = #tpu.dot_dimension_numbers<[1], [0], [0], [1], [0, 0, 1, 1], [], []>} : vector<6x4xf32>, vector<4x16xf32>, vector<6x16xf32> -> vector<6x16xf32>
    %c0_8 = arith.constant 0 : index
    %c0_9 = arith.constant 0 : index
    %c0_10 = arith.constant 0 : index
    %11 = vector.load %arg2[%c0_8, %c0_9, %c0_10] : memref<2x4x6xf32, #tpu.memory_space<vmem>>, vector<1x4x6xf32>
    %12 = vector.shape_cast %11 : vector<1x4x6xf32> to vector<4x6xf32>
    %cst_11 = arith.constant dense<0.000000e+00> : vector<4x16xf32>
    %13 = tpu.matmul %12, %4, %cst_11 {dimension_numbers = #tpu.dot_dimension_numbers<[1], [0], [0], [1], [0, 0, 1, 1], [], []>} : vector<4x6xf32>, vector<6x16xf32>, vector<4x16xf32> -> vector<4x16xf32>
    %14 = vector.broadcast %7 : vector<6x1xf32> to vector<6x16xf32>
    %15 = arith.mulf %14, %4 : vector<6x16xf32>
    %cst_12 = arith.constant dense<0.000000e+00> : vector<16xf32>
    %16 = vector.multi_reduction <add>, %15, %cst_12 [0] : vector<6x16xf32> to vector<16xf32>
    %17 = vector.shape_cast %16 : vector<16xf32> to vector<1x16xf32>
    %c0_i32 = arith.constant 0 : i32
    %18 = vector.broadcast %c0_i32 : i32 to vector<6x1xi32>
    %19 = arith.cmpi eq, %0, %18 : vector<6x1xi32>
    %cst_13 = arith.constant 0xFF800000 : f32
    %20 = vector.shape_cast %19 : vector<6x1xi1> to vector<6x1xi1>
    %21 = vector.broadcast %20 : vector<6x1xi1> to vector<6x16xi1>
    %22 = vector.broadcast %cst_13 : f32 to vector<6x16xf32>
    %23 = arith.select %21, %22, %4 : vector<6x16xi1>, vector<6x16xf32>
    %cst_14 = arith.constant dense<0xFF800000> : vector<16xf32>
    %24 = vector.multi_reduction <maximumf>, %23, %cst_14 [0] : vector<6x16xf32> to vector<16xf32>
    %25 = vector.shape_cast %24 : vector<16xf32> to vector<1x16xf32>
    %c1_i32 = arith.constant 1 : i32
    %26 = vector.broadcast %c1_i32 : i32 to vector<6x1xi32>
    %27 = arith.cmpi eq, %0, %26 : vector<6x1xi32>
    %cst_15 = arith.constant 0xFF800000 : f32
    %28 = vector.shape_cast %27 : vector<6x1xi1> to vector<6x1xi1>
    %29 = vector.broadcast %28 : vector<6x1xi1> to vector<6x16xi1>
    %30 = vector.broadcast %cst_15 : f32 to vector<6x16xf32>
    %31 = arith.select %29, %30, %4 : vector<6x16xi1>, vector<6x16xf32>
    %cst_16 = arith.constant dense<0xFF800000> : vector<16xf32>
    %32 = vector.multi_reduction <maximumf>, %31, %cst_16 [0] : vector<6x16xf32> to vector<16xf32>
    %33 = vector.shape_cast %32 : vector<16xf32> to vector<1x16xf32>
    %c2_i32 = arith.constant 2 : i32
    %34 = vector.broadcast %c2_i32 : i32 to vector<6x1xi32>
    %35 = arith.cmpi eq, %0, %34 : vector<6x1xi32>
    %cst_17 = arith.constant 0xFF800000 : f32
    %36 = vector.shape_cast %35 : vector<6x1xi1> to vector<6x1xi1>
    %37 = vector.broadcast %36 : vector<6x1xi1> to vector<6x16xi1>
    %38 = vector.broadcast %cst_17 : f32 to vector<6x16xf32>
    %39 = arith.select %37, %38, %4 : vector<6x16xi1>, vector<6x16xf32>
    %cst_18 = arith.constant dense<0xFF800000> : vector<16xf32>
    %40 = vector.multi_reduction <maximumf>, %39, %cst_18 [0] : vector<6x16xf32> to vector<16xf32>
    %41 = vector.shape_cast %40 : vector<16xf32> to vector<1x16xf32>
    %c3_i32 = arith.constant 3 : i32
    %42 = vector.broadcast %c3_i32 : i32 to vector<6x1xi32>
    %43 = arith.cmpi eq, %0, %42 : vector<6x1xi32>
    %cst_19 = arith.constant 0xFF800000 : f32
    %44 = vector.shape_cast %43 : vector<6x1xi1> to vector<6x1xi1>
    %45 = vector.broadcast %44 : vector<6x1xi1> to vector<6x16xi1>
    %46 = vector.broadcast %cst_19 : f32 to vector<6x16xf32>
    %47 = arith.select %45, %46, %4 : vector<6x16xi1>, vector<6x16xf32>
    %cst_20 = arith.constant dense<0xFF800000> : vector<16xf32>
    %48 = vector.multi_reduction <maximumf>, %47, %cst_20 [0] : vector<6x16xf32> to vector<16xf32>
    %49 = vector.shape_cast %48 : vector<16xf32> to vector<1x16xf32>
    %c4_i32 = arith.constant 4 : i32
    %50 = vector.broadcast %c4_i32 : i32 to vector<6x1xi32>
    %51 = arith.cmpi eq, %0, %50 : vector<6x1xi32>
    %cst_21 = arith.constant 0xFF800000 : f32
    %52 = vector.shape_cast %51 : vector<6x1xi1> to vector<6x1xi1>
    %53 = vector.broadcast %52 : vector<6x1xi1> to vector<6x16xi1>
    %54 = vector.broadcast %cst_21 : f32 to vector<6x16xf32>
    %55 = arith.select %53, %54, %4 : vector<6x16xi1>, vector<6x16xf32>
    %cst_22 = arith.constant dense<0xFF800000> : vector<16xf32>
    %56 = vector.multi_reduction <maximumf>, %55, %cst_22 [0] : vector<6x16xf32> to vector<16xf32>
    %57 = vector.shape_cast %56 : vector<16xf32> to vector<1x16xf32>
    %c5_i32 = arith.constant 5 : i32
    %58 = vector.broadcast %c5_i32 : i32 to vector<6x1xi32>
    %59 = arith.cmpi eq, %0, %58 : vector<6x1xi32>
    %cst_23 = arith.constant 0xFF800000 : f32
    %60 = vector.shape_cast %59 : vector<6x1xi1> to vector<6x1xi1>
    %61 = vector.broadcast %60 : vector<6x1xi1> to vector<6x16xi1>
    %62 = vector.broadcast %cst_23 : f32 to vector<6x16xf32>
    %63 = arith.select %61, %62, %4 : vector<6x16xi1>, vector<6x16xf32>
    %cst_24 = arith.constant dense<0xFF800000> : vector<16xf32>
    %64 = vector.multi_reduction <maximumf>, %63, %cst_24 [0] : vector<6x16xf32> to vector<16xf32>
    %65 = vector.shape_cast %64 : vector<16xf32> to vector<1x16xf32>
    %66 = tpu.concatenate %25, %33, %41, %49, %57, %65 in 0 : vector<1x16xf32>, vector<1x16xf32>, vector<1x16xf32>, vector<1x16xf32>, vector<1x16xf32>, vector<1x16xf32> -> vector<6x16xf32>
    %c0_25 = arith.constant 0 : index
    %c0_26 = arith.constant 0 : index
    %67 = vector.load %arg5[%c0_25, %c0_26] : memref<48x32xf32, #tpu.memory_space<vmem>>, vector<16x32xf32>
    %cst_27 = arith.constant dense<0.000000e+00> : vector<6x32xf32>
    %68 = tpu.matmul %4, %67, %cst_27 {dimension_numbers = #tpu.dot_dimension_numbers<[1], [0], [0], [1], [0, 0, 1, 1], [], []>} : vector<6x16xf32>, vector<16x32xf32>, vector<6x32xf32> -> vector<6x32xf32>
    %c16 = arith.constant 16 : index
    %c0_28 = arith.constant 0 : index
    %69 = vector.load %arg5[%c16, %c0_28] : memref<48x32xf32, #tpu.memory_space<vmem>>, vector<16x32xf32>
    %cst_29 = arith.constant dense<0.000000e+00> : vector<6x32xf32>
    %70 = tpu.matmul %66, %69, %cst_29 {dimension_numbers = #tpu.dot_dimension_numbers<[1], [0], [0], [1], [0, 0, 1, 1], [], []>} : vector<6x16xf32>, vector<16x32xf32>, vector<6x32xf32> -> vector<6x32xf32>
    %71 = arith.addf %68, %70 : vector<6x32xf32>
    %c32 = arith.constant 32 : index
    %c0_30 = arith.constant 0 : index
    %72 = vector.load %arg5[%c32, %c0_30] : memref<48x32xf32, #tpu.memory_space<vmem>>, vector<16x32xf32>
    %cst_31 = arith.constant dense<0.000000e+00> : vector<6x32xf32>
    %73 = tpu.matmul %10, %72, %cst_31 {dimension_numbers = #tpu.dot_dimension_numbers<[1], [0], [0], [1], [0, 0, 1, 1], [], []>} : vector<6x16xf32>, vector<16x32xf32>, vector<6x32xf32> -> vector<6x32xf32>
    %74 = arith.addf %71, %73 : vector<6x32xf32>
    %c0_32 = arith.constant 0 : index
    %c0_33 = arith.constant 0 : index
    %75 = vector.load %arg6[%c0_32, %c0_33] : memref<1x32xf32, #tpu.memory_space<vmem>>, vector<1x32xf32>
    %76 = vector.broadcast %75 : vector<1x32xf32> to vector<6x32xf32>
    %77 = arith.addf %74, %76 : vector<6x32xf32>
    %cst_34 = arith.constant 0.000000e+00 : f32
    %78 = vector.broadcast %cst_34 : f32 to vector<6x32xf32>
    %79 = arith.maximumf %77, %78 : vector<6x32xf32>
    %c0_35 = arith.constant 0 : index
    %c0_36 = arith.constant 0 : index
    %80 = vector.load %arg7[%c0_35, %c0_36] : memref<32x16xf32, #tpu.memory_space<vmem>>, vector<32x16xf32>
    %cst_37 = arith.constant dense<0.000000e+00> : vector<6x16xf32>
    %81 = tpu.matmul %79, %80, %cst_37 {dimension_numbers = #tpu.dot_dimension_numbers<[1], [0], [0], [1], [0, 0, 1, 1], [], []>} : vector<6x32xf32>, vector<32x16xf32>, vector<6x16xf32> -> vector<6x16xf32>
    %c0_38 = arith.constant 0 : index
    %c0_39 = arith.constant 0 : index
    %82 = vector.load %arg8[%c0_38, %c0_39] : memref<1x16xf32, #tpu.memory_space<vmem>>, vector<1x16xf32>
    %83 = vector.broadcast %82 : vector<1x16xf32> to vector<6x16xf32>
    %84 = arith.addf %81, %83 : vector<6x16xf32>
    %c0_40 = arith.constant 0 : index
    %c0_41 = arith.constant 0 : index
    %85 = vector.load %arg9[%c0_40, %c0_41] : memref<32x32xf32, #tpu.memory_space<vmem>>, vector<16x32xf32>
    %cst_42 = arith.constant dense<0.000000e+00> : vector<4x32xf32>
    %86 = tpu.matmul %3, %85, %cst_42 {dimension_numbers = #tpu.dot_dimension_numbers<[1], [0], [0], [1], [0, 0, 1, 1], [], []>} : vector<4x16xf32>, vector<16x32xf32>, vector<4x32xf32> -> vector<4x32xf32>
    %c16_43 = arith.constant 16 : index
    %c0_44 = arith.constant 0 : index
    %87 = vector.load %arg9[%c16_43, %c0_44] : memref<32x32xf32, #tpu.memory_space<vmem>>, vector<16x32xf32>
    %cst_45 = arith.constant dense<0.000000e+00> : vector<4x32xf32>
    %88 = tpu.matmul %13, %87, %cst_45 {dimension_numbers = #tpu.dot_dimension_numbers<[1], [0], [0], [1], [0, 0, 1, 1], [], []>} : vector<4x16xf32>, vector<16x32xf32>, vector<4x32xf32> -> vector<4x32xf32>
    %89 = arith.addf %86, %88 : vector<4x32xf32>
    %c0_46 = arith.constant 0 : index
    %c0_47 = arith.constant 0 : index
    %90 = vector.load %arg10[%c0_46, %c0_47] : memref<1x32xf32, #tpu.memory_space<vmem>>, vector<1x32xf32>
    %91 = vector.broadcast %90 : vector<1x32xf32> to vector<4x32xf32>
    %92 = arith.addf %89, %91 : vector<4x32xf32>
    %cst_48 = arith.constant 0.000000e+00 : f32
    %93 = vector.broadcast %cst_48 : f32 to vector<4x32xf32>
    %94 = arith.maximumf %92, %93 : vector<4x32xf32>
    %c0_49 = arith.constant 0 : index
    %c0_50 = arith.constant 0 : index
    %95 = vector.load %arg11[%c0_49, %c0_50] : memref<32x16xf32, #tpu.memory_space<vmem>>, vector<32x16xf32>
    %cst_51 = arith.constant dense<0.000000e+00> : vector<4x16xf32>
    %96 = tpu.matmul %94, %95, %cst_51 {dimension_numbers = #tpu.dot_dimension_numbers<[1], [0], [0], [1], [0, 0, 1, 1], [], []>} : vector<4x32xf32>, vector<32x16xf32>, vector<4x16xf32> -> vector<4x16xf32>
    %c0_52 = arith.constant 0 : index
    %c0_53 = arith.constant 0 : index
    %97 = vector.load %arg12[%c0_52, %c0_53] : memref<1x16xf32, #tpu.memory_space<vmem>>, vector<1x16xf32>
    %98 = vector.broadcast %97 : vector<1x16xf32> to vector<4x16xf32>
    %99 = arith.addf %96, %98 : vector<4x16xf32>
    %c0_54 = arith.constant 0 : index
    %c0_55 = arith.constant 0 : index
    %100 = vector.load %arg13[%c0_54, %c0_55] : memref<32x32xf32, #tpu.memory_space<vmem>>, vector<16x32xf32>
    %cst_56 = arith.constant dense<0.000000e+00> : vector<1x32xf32>
    %101 = tpu.matmul %17, %100, %cst_56 {dimension_numbers = #tpu.dot_dimension_numbers<[1], [0], [0], [1], [0, 0, 1, 1], [], []>} : vector<1x16xf32>, vector<16x32xf32>, vector<1x32xf32> -> vector<1x32xf32>
    %c16_57 = arith.constant 16 : index
    %c0_58 = arith.constant 0 : index
    %102 = vector.load %arg13[%c16_57, %c0_58] : memref<32x32xf32, #tpu.memory_space<vmem>>, vector<16x32xf32>
    %cst_59 = arith.constant dense<0.000000e+00> : vector<1x32xf32>
    %103 = tpu.matmul %5, %102, %cst_59 {dimension_numbers = #tpu.dot_dimension_numbers<[1], [0], [0], [1], [0, 0, 1, 1], [], []>} : vector<1x16xf32>, vector<16x32xf32>, vector<1x32xf32> -> vector<1x32xf32>
    %104 = arith.addf %101, %103 : vector<1x32xf32>
    %c0_60 = arith.constant 0 : index
    %c0_61 = arith.constant 0 : index
    %105 = vector.load %arg14[%c0_60, %c0_61] : memref<1x32xf32, #tpu.memory_space<vmem>>, vector<1x32xf32>
    %106 = arith.addf %104, %105 : vector<1x32xf32>
    %cst_62 = arith.constant 0.000000e+00 : f32
    %107 = vector.broadcast %cst_62 : f32 to vector<1x32xf32>
    %108 = arith.maximumf %106, %107 : vector<1x32xf32>
    %c0_63 = arith.constant 0 : index
    %c0_64 = arith.constant 0 : index
    %109 = vector.load %arg15[%c0_63, %c0_64] : memref<32x16xf32, #tpu.memory_space<vmem>>, vector<32x16xf32>
    %cst_65 = arith.constant dense<0.000000e+00> : vector<1x16xf32>
    %110 = tpu.matmul %108, %109, %cst_65 {dimension_numbers = #tpu.dot_dimension_numbers<[1], [0], [0], [1], [0, 0, 1, 1], [], []>} : vector<1x32xf32>, vector<32x16xf32>, vector<1x16xf32> -> vector<1x16xf32>
    %c0_66 = arith.constant 0 : index
    %c0_67 = arith.constant 0 : index
    %111 = vector.load %arg16[%c0_66, %c0_67] : memref<1x16xf32, #tpu.memory_space<vmem>>, vector<1x16xf32>
    %112 = arith.addf %110, %111 : vector<1x16xf32>
    %113 = vector.broadcast %112 : vector<1x16xf32> to vector<6x16xf32>
    %114 = arith.subf %113, %84 : vector<6x16xf32>
    %115 = math.absf %114 : vector<6x16xf32>
    %116 = vector.broadcast %5 : vector<1x16xf32> to vector<6x16xf32>
    %117 = arith.subf %116, %4 : vector<6x16xf32>
    %118 = math.absf %117 : vector<6x16xf32>
    %c0_68 = arith.constant 0 : index
    %c0_69 = arith.constant 0 : index
    %119 = vector.load %arg17[%c0_68, %c0_69] : memref<32x16xf32, #tpu.memory_space<vmem>>, vector<16x16xf32>
    %cst_70 = arith.constant dense<0.000000e+00> : vector<6x16xf32>
    %120 = tpu.matmul %115, %119, %cst_70 {dimension_numbers = #tpu.dot_dimension_numbers<[1], [0], [0], [1], [0, 0, 1, 1], [], []>} : vector<6x16xf32>, vector<16x16xf32>, vector<6x16xf32> -> vector<6x16xf32>
    %c16_71 = arith.constant 16 : index
    %c0_72 = arith.constant 0 : index
    %121 = vector.load %arg17[%c16_71, %c0_72] : memref<32x16xf32, #tpu.memory_space<vmem>>, vector<16x16xf32>
    %cst_73 = arith.constant dense<0.000000e+00> : vector<6x16xf32>
    %122 = tpu.matmul %118, %121, %cst_73 {dimension_numbers = #tpu.dot_dimension_numbers<[1], [0], [0], [1], [0, 0, 1, 1], [], []>} : vector<6x16xf32>, vector<16x16xf32>, vector<6x16xf32> -> vector<6x16xf32>
    %123 = arith.addf %120, %122 : vector<6x16xf32>
    %c0_74 = arith.constant 0 : index
    %c0_75 = arith.constant 0 : index
    %124 = vector.load %arg18[%c0_74, %c0_75] : memref<1x16xf32, #tpu.memory_space<vmem>>, vector<1x16xf32>
    %125 = vector.broadcast %124 : vector<1x16xf32> to vector<6x16xf32>
    %126 = arith.addf %123, %125 : vector<6x16xf32>
    %cst_76 = arith.constant 0.000000e+00 : f32
    %127 = vector.broadcast %cst_76 : f32 to vector<6x16xf32>
    %128 = arith.maximumf %126, %127 : vector<6x16xf32>
    %c0_77 = arith.constant 0 : index
    %c0_78 = arith.constant 0 : index
    %129 = vector.load %arg19[%c0_77, %c0_78] : memref<16x1xf32, #tpu.memory_space<vmem>>, vector<16x1xf32>
    %cst_79 = arith.constant dense<0.000000e+00> : vector<6x1xf32>
    %130 = tpu.matmul %128, %129, %cst_79 {dimension_numbers = #tpu.dot_dimension_numbers<[1], [0], [0], [1], [0, 0, 1, 1], [], []>} : vector<6x16xf32>, vector<16x1xf32>, vector<6x1xf32> -> vector<6x1xf32>
    %c0_80 = arith.constant 0 : index
    %c0_81 = arith.constant 0 : index
    %131 = vector.load %arg20[%c0_80, %c0_81] : memref<1x1xf32, #tpu.memory_space<vmem>>, vector<1x1xf32>
    %132 = vector.broadcast %131 : vector<1x1xf32> to vector<6x1xf32>
    %133 = arith.addf %130, %132 : vector<6x1xf32>
    %cst_82 = arith.constant dense<0xFF800000> : vector<1xf32>
    %134 = vector.multi_reduction <maximumf>, %133, %cst_82 [0] : vector<6x1xf32> to vector<1xf32>
    %135 = vector.shape_cast %134 : vector<1xf32> to vector<1x1xf32>
    %136 = vector.broadcast %135 : vector<1x1xf32> to vector<6x1xf32>
    %137 = arith.subf %133, %136 : vector<6x1xf32>
    %138 = math.exp %137 : vector<6x1xf32>
    %cst_83 = arith.constant dense<0.000000e+00> : vector<1xf32>
    %139 = vector.multi_reduction <add>, %138, %cst_83 [0] : vector<6x1xf32> to vector<1xf32>
    %140 = vector.shape_cast %139 : vector<1xf32> to vector<1x1xf32>
    %141 = vector.broadcast %140 : vector<1x1xf32> to vector<6x1xf32>
    %142 = arith.divf %138, %141 : vector<6x1xf32>
    %c0_84 = arith.constant 0 : index
    %c0_85 = arith.constant 0 : index
    %c0_86 = arith.constant 0 : index
    %143 = vector.load %arg22[%c0_84, %c0_85, %c0_86] : memref<2x6x1xf32, #tpu.memory_space<vmem>>, vector<1x6x1xf32>
    %144 = vector.shape_cast %143 : vector<1x6x1xf32> to vector<6x1xf32>
    %145 = vector.shape_cast %142 : vector<6x1xf32> to vector<1x6x1xf32>
    tpu.vector_store %arg22[%c0_84, %c0_85, %c0_86], %145 {strides = array<i32>} : memref<2x6x1xf32, #tpu.memory_space<vmem>>, vector<1x6x1xf32>,
    %146 = tpu.concatenate %99, %84, %112 in 0 : vector<4x16xf32>, vector<6x16xf32>, vector<1x16xf32> -> vector<11x16xf32>
    %147 = tpu.concatenate %146, %2 in 1 : vector<11x16xf32>, vector<11x16xf32> -> vector<11x32xf32>
    %c0_87 = arith.constant 0 : index
    %c0_88 = arith.constant 0 : index
    %c0_89 = arith.constant 0 : index
    %148 = vector.load %arg21[%c0_87, %c0_88, %c0_89] : memref<2x11x32xf32, #tpu.memory_space<vmem>>, vector<1x11x32xf32>
    %149 = vector.shape_cast %148 : vector<1x11x32xf32> to vector<11x32xf32>
    %150 = vector.shape_cast %147 : vector<11x32xf32> to vector<1x11x32xf32>
    tpu.vector_store %arg21[%c0_87, %c0_88, %c0_89], %150 {strides = array<i32>} : memref<2x11x32xf32, #tpu.memory_space<vmem>>, vector<1x11x32xf32>,
    %c1 = arith.constant 1 : index
    %c0_90 = arith.constant 0 : index
    %c0_91 = arith.constant 0 : index
    %151 = vector.load %arg1[%c1, %c0_90, %c0_91] : memref<2x11x16xf32, #tpu.memory_space<vmem>>, vector<1x11x16xf32>
    %152 = vector.shape_cast %151 : vector<1x11x16xf32> to vector<11x16xf32>
    %153 = vector.extract_strided_slice %152 {offsets = [0, 0], sizes = [4, 16], strides = [1, 1]} : vector<11x16xf32> to vector<4x16xf32>
    %154 = vector.extract_strided_slice %152 {offsets = [4, 0], sizes = [6, 16], strides = [1, 1]} : vector<11x16xf32> to vector<6x16xf32>
    %155 = vector.extract_strided_slice %152 {offsets = [10, 0], sizes = [1, 16], strides = [1, 1]} : vector<11x16xf32> to vector<1x16xf32>
    %c1_92 = arith.constant 1 : index
    %c0_93 = arith.constant 0 : index
    %c0_94 = arith.constant 0 : index
    %156 = vector.load %arg4[%c1_92, %c0_93, %c0_94] : memref<2x6x1xf32, #tpu.memory_space<vmem>>, vector<1x6x1xf32>
    %157 = vector.shape_cast %156 : vector<1x6x1xf32> to vector<6x1xf32>
    %c1_95 = arith.constant 1 : index
    %c0_96 = arith.constant 0 : index
    %c0_97 = arith.constant 0 : index
    %158 = vector.load %arg3[%c1_95, %c0_96, %c0_97] : memref<2x6x4xf32, #tpu.memory_space<vmem>>, vector<1x6x4xf32>
    %159 = vector.shape_cast %158 : vector<1x6x4xf32> to vector<6x4xf32>
    %cst_98 = arith.constant dense<0.000000e+00> : vector<6x16xf32>
    %160 = tpu.matmul %159, %153, %cst_98 {dimension_numbers = #tpu.dot_dimension_numbers<[1], [0], [0], [1], [0, 0, 1, 1], [], []>} : vector<6x4xf32>, vector<4x16xf32>, vector<6x16xf32> -> vector<6x16xf32>
    %c1_99 = arith.constant 1 : index
    %c0_100 = arith.constant 0 : index
    %c0_101 = arith.constant 0 : index
    %161 = vector.load %arg2[%c1_99, %c0_100, %c0_101] : memref<2x4x6xf32, #tpu.memory_space<vmem>>, vector<1x4x6xf32>
    %162 = vector.shape_cast %161 : vector<1x4x6xf32> to vector<4x6xf32>
    %cst_102 = arith.constant dense<0.000000e+00> : vector<4x16xf32>
    %163 = tpu.matmul %162, %154, %cst_102 {dimension_numbers = #tpu.dot_dimension_numbers<[1], [0], [0], [1], [0, 0, 1, 1], [], []>} : vector<4x6xf32>, vector<6x16xf32>, vector<4x16xf32> -> vector<4x16xf32>
    %164 = vector.broadcast %157 : vector<6x1xf32> to vector<6x16xf32>
    %165 = arith.mulf %164, %154 : vector<6x16xf32>
    %cst_103 = arith.constant dense<0.000000e+00> : vector<16xf32>
    %166 = vector.multi_reduction <add>, %165, %cst_103 [0] : vector<6x16xf32> to vector<16xf32>
    %167 = vector.shape_cast %166 : vector<16xf32> to vector<1x16xf32>
    %c0_i32_104 = arith.constant 0 : i32
    %168 = vector.broadcast %c0_i32_104 : i32 to vector<6x1xi32>
    %169 = arith.cmpi eq, %0, %168 : vector<6x1xi32>
    %cst_105 = arith.constant 0xFF800000 : f32
    %170 = vector.shape_cast %169 : vector<6x1xi1> to vector<6x1xi1>
    %171 = vector.broadcast %170 : vector<6x1xi1> to vector<6x16xi1>
    %172 = vector.broadcast %cst_105 : f32 to vector<6x16xf32>
    %173 = arith.select %171, %172, %154 : vector<6x16xi1>, vector<6x16xf32>
    %cst_106 = arith.constant dense<0xFF800000> : vector<16xf32>
    %174 = vector.multi_reduction <maximumf>, %173, %cst_106 [0] : vector<6x16xf32> to vector<16xf32>
    %175 = vector.shape_cast %174 : vector<16xf32> to vector<1x16xf32>
    %c1_i32_107 = arith.constant 1 : i32
    %176 = vector.broadcast %c1_i32_107 : i32 to vector<6x1xi32>
    %177 = arith.cmpi eq, %0, %176 : vector<6x1xi32>
    %cst_108 = arith.constant 0xFF800000 : f32
    %178 = vector.shape_cast %177 : vector<6x1xi1> to vector<6x1xi1>
    %179 = vector.broadcast %178 : vector<6x1xi1> to vector<6x16xi1>
    %180 = vector.broadcast %cst_108 : f32 to vector<6x16xf32>
    %181 = arith.select %179, %180, %154 : vector<6x16xi1>, vector<6x16xf32>
    %cst_109 = arith.constant dense<0xFF800000> : vector<16xf32>
    %182 = vector.multi_reduction <maximumf>, %181, %cst_109 [0] : vector<6x16xf32> to vector<16xf32>
    %183 = vector.shape_cast %182 : vector<16xf32> to vector<1x16xf32>
    %c2_i32_110 = arith.constant 2 : i32
    %184 = vector.broadcast %c2_i32_110 : i32 to vector<6x1xi32>
    %185 = arith.cmpi eq, %0, %184 : vector<6x1xi32>
    %cst_111 = arith.constant 0xFF800000 : f32
    %186 = vector.shape_cast %185 : vector<6x1xi1> to vector<6x1xi1>
    %187 = vector.broadcast %186 : vector<6x1xi1> to vector<6x16xi1>
    %188 = vector.broadcast %cst_111 : f32 to vector<6x16xf32>
    %189 = arith.select %187, %188, %154 : vector<6x16xi1>, vector<6x16xf32>
    %cst_112 = arith.constant dense<0xFF800000> : vector<16xf32>
    %190 = vector.multi_reduction <maximumf>, %189, %cst_112 [0] : vector<6x16xf32> to vector<16xf32>
    %191 = vector.shape_cast %190 : vector<16xf32> to vector<1x16xf32>
    %c3_i32_113 = arith.constant 3 : i32
    %192 = vector.broadcast %c3_i32_113 : i32 to vector<6x1xi32>
    %193 = arith.cmpi eq, %0, %192 : vector<6x1xi32>
    %cst_114 = arith.constant 0xFF800000 : f32
    %194 = vector.shape_cast %193 : vector<6x1xi1> to vector<6x1xi1>
    %195 = vector.broadcast %194 : vector<6x1xi1> to vector<6x16xi1>
    %196 = vector.broadcast %cst_114 : f32 to vector<6x16xf32>
    %197 = arith.select %195, %196, %154 : vector<6x16xi1>, vector<6x16xf32>
    %cst_115 = arith.constant dense<0xFF800000> : vector<16xf32>
    %198 = vector.multi_reduction <maximumf>, %197, %cst_115 [0] : vector<6x16xf32> to vector<16xf32>
    %199 = vector.shape_cast %198 : vector<16xf32> to vector<1x16xf32>
    %c4_i32_116 = arith.constant 4 : i32
    %200 = vector.broadcast %c4_i32_116 : i32 to vector<6x1xi32>
    %201 = arith.cmpi eq, %0, %200 : vector<6x1xi32>
    %cst_117 = arith.constant 0xFF800000 : f32
    %202 = vector.shape_cast %201 : vector<6x1xi1> to vector<6x1xi1>
    %203 = vector.broadcast %202 : vector<6x1xi1> to vector<6x16xi1>
    %204 = vector.broadcast %cst_117 : f32 to vector<6x16xf32>
    %205 = arith.select %203, %204, %154 : vector<6x16xi1>, vector<6x16xf32>
    %cst_118 = arith.constant dense<0xFF800000> : vector<16xf32>
    %206 = vector.multi_reduction <maximumf>, %205, %cst_118 [0] : vector<6x16xf32> to vector<16xf32>
    %207 = vector.shape_cast %206 : vector<16xf32> to vector<1x16xf32>
    %c5_i32_119 = arith.constant 5 : i32
    %208 = vector.broadcast %c5_i32_119 : i32 to vector<6x1xi32>
    %209 = arith.cmpi eq, %0, %208 : vector<6x1xi32>
    %cst_120 = arith.constant 0xFF800000 : f32
    %210 = vector.shape_cast %209 : vector<6x1xi1> to vector<6x1xi1>
    %211 = vector.broadcast %210 : vector<6x1xi1> to vector<6x16xi1>
    %212 = vector.broadcast %cst_120 : f32 to vector<6x16xf32>
    %213 = arith.select %211, %212, %154 : vector<6x16xi1>, vector<6x16xf32>
    %cst_121 = arith.constant dense<0xFF800000> : vector<16xf32>
    %214 = vector.multi_reduction <maximumf>, %213, %cst_121 [0] : vector<6x16xf32> to vector<16xf32>
    %215 = vector.shape_cast %214 : vector<16xf32> to vector<1x16xf32>
    %216 = tpu.concatenate %175, %183, %191, %199, %207, %215 in 0 : vector<1x16xf32>, vector<1x16xf32>, vector<1x16xf32>, vector<1x16xf32>, vector<1x16xf32>, vector<1x16xf32> -> vector<6x16xf32>
    %c0_122 = arith.constant 0 : index
    %c0_123 = arith.constant 0 : index
    %217 = vector.load %arg5[%c0_122, %c0_123] : memref<48x32xf32, #tpu.memory_space<vmem>>, vector<16x32xf32>
    %cst_124 = arith.constant dense<0.000000e+00> : vector<6x32xf32>
    %218 = tpu.matmul %154, %217, %cst_124 {dimension_numbers = #tpu.dot_dimension_numbers<[1], [0], [0], [1], [0, 0, 1, 1], [], []>} : vector<6x16xf32>, vector<16x32xf32>, vector<6x32xf32> -> vector<6x32xf32>
    %c16_125 = arith.constant 16 : index
    %c0_126 = arith.constant 0 : index
    %219 = vector.load %arg5[%c16_125, %c0_126] : memref<48x32xf32, #tpu.memory_space<vmem>>, vector<16x32xf32>
    %cst_127 = arith.constant dense<0.000000e+00> : vector<6x32xf32>
    %220 = tpu.matmul %216, %219, %cst_127 {dimension_numbers = #tpu.dot_dimension_numbers<[1], [0], [0], [1], [0, 0, 1, 1], [], []>} : vector<6x16xf32>, vector<16x32xf32>, vector<6x32xf32> -> vector<6x32xf32>
    %221 = arith.addf %218, %220 : vector<6x32xf32>
    %c32_128 = arith.constant 32 : index
    %c0_129 = arith.constant 0 : index
    %222 = vector.load %arg5[%c32_128, %c0_129] : memref<48x32xf32, #tpu.memory_space<vmem>>, vector<16x32xf32>
    %cst_130 = arith.constant dense<0.000000e+00> : vector<6x32xf32>
    %223 = tpu.matmul %160, %222, %cst_130 {dimension_numbers = #tpu.dot_dimension_numbers<[1], [0], [0], [1], [0, 0, 1, 1], [], []>} : vector<6x16xf32>, vector<16x32xf32>, vector<6x32xf32> -> vector<6x32xf32>
    %224 = arith.addf %221, %223 : vector<6x32xf32>
    %c0_131 = arith.constant 0 : index
    %c0_132 = arith.constant 0 : index
    %225 = vector.load %arg6[%c0_131, %c0_132] : memref<1x32xf32, #tpu.memory_space<vmem>>, vector<1x32xf32>
    %226 = vector.broadcast %225 : vector<1x32xf32> to vector<6x32xf32>
    %227 = arith.addf %224, %226 : vector<6x32xf32>
    %cst_133 = arith.constant 0.000000e+00 : f32
    %228 = vector.broadcast %cst_133 : f32 to vector<6x32xf32>
    %229 = arith.maximumf %227, %228 : vector<6x32xf32>
    %c0_134 = arith.constant 0 : index
    %c0_135 = arith.constant 0 : index
    %230 = vector.load %arg7[%c0_134, %c0_135] : memref<32x16xf32, #tpu.memory_space<vmem>>, vector<32x16xf32>
    %cst_136 = arith.constant dense<0.000000e+00> : vector<6x16xf32>
    %231 = tpu.matmul %229, %230, %cst_136 {dimension_numbers = #tpu.dot_dimension_numbers<[1], [0], [0], [1], [0, 0, 1, 1], [], []>} : vector<6x32xf32>, vector<32x16xf32>, vector<6x16xf32> -> vector<6x16xf32>
    %c0_137 = arith.constant 0 : index
    %c0_138 = arith.constant 0 : index
    %232 = vector.load %arg8[%c0_137, %c0_138] : memref<1x16xf32, #tpu.memory_space<vmem>>, vector<1x16xf32>
    %233 = vector.broadcast %232 : vector<1x16xf32> to vector<6x16xf32>
    %234 = arith.addf %231, %233 : vector<6x16xf32>
    %c0_139 = arith.constant 0 : index
    %c0_140 = arith.constant 0 : index
    %235 = vector.load %arg9[%c0_139, %c0_140] : memref<32x32xf32, #tpu.memory_space<vmem>>, vector<16x32xf32>
    %cst_141 = arith.constant dense<0.000000e+00> : vector<4x32xf32>
    %236 = tpu.matmul %153, %235, %cst_141 {dimension_numbers = #tpu.dot_dimension_numbers<[1], [0], [0], [1], [0, 0, 1, 1], [], []>} : vector<4x16xf32>, vector<16x32xf32>, vector<4x32xf32> -> vector<4x32xf32>
    %c16_142 = arith.constant 16 : index
    %c0_143 = arith.constant 0 : index
    %237 = vector.load %arg9[%c16_142, %c0_143] : memref<32x32xf32, #tpu.memory_space<vmem>>, vector<16x32xf32>
    %cst_144 = arith.constant dense<0.000000e+00> : vector<4x32xf32>
    %238 = tpu.matmul %163, %237, %cst_144 {dimension_numbers = #tpu.dot_dimension_numbers<[1], [0], [0], [1], [0, 0, 1, 1], [], []>} : vector<4x16xf32>, vector<16x32xf32>, vector<4x32xf32> -> vector<4x32xf32>
    %239 = arith.addf %236, %238 : vector<4x32xf32>
    %c0_145 = arith.constant 0 : index
    %c0_146 = arith.constant 0 : index
    %240 = vector.load %arg10[%c0_145, %c0_146] : memref<1x32xf32, #tpu.memory_space<vmem>>, vector<1x32xf32>
    %241 = vector.broadcast %240 : vector<1x32xf32> to vector<4x32xf32>
    %242 = arith.addf %239, %241 : vector<4x32xf32>
    %cst_147 = arith.constant 0.000000e+00 : f32
    %243 = vector.broadcast %cst_147 : f32 to vector<4x32xf32>
    %244 = arith.maximumf %242, %243 : vector<4x32xf32>
    %c0_148 = arith.constant 0 : index
    %c0_149 = arith.constant 0 : index
    %245 = vector.load %arg11[%c0_148, %c0_149] : memref<32x16xf32, #tpu.memory_space<vmem>>, vector<32x16xf32>
    %cst_150 = arith.constant dense<0.000000e+00> : vector<4x16xf32>
    %246 = tpu.matmul %244, %245, %cst_150 {dimension_numbers = #tpu.dot_dimension_numbers<[1], [0], [0], [1], [0, 0, 1, 1], [], []>} : vector<4x32xf32>, vector<32x16xf32>, vector<4x16xf32> -> vector<4x16xf32>
    %c0_151 = arith.constant 0 : index
    %c0_152 = arith.constant 0 : index
    %247 = vector.load %arg12[%c0_151, %c0_152] : memref<1x16xf32, #tpu.memory_space<vmem>>, vector<1x16xf32>
    %248 = vector.broadcast %247 : vector<1x16xf32> to vector<4x16xf32>
    %249 = arith.addf %246, %248 : vector<4x16xf32>
    %c0_153 = arith.constant 0 : index
    %c0_154 = arith.constant 0 : index
    %250 = vector.load %arg13[%c0_153, %c0_154] : memref<32x32xf32, #tpu.memory_space<vmem>>, vector<16x32xf32>
    %cst_155 = arith.constant dense<0.000000e+00> : vector<1x32xf32>
    %251 = tpu.matmul %167, %250, %cst_155 {dimension_numbers = #tpu.dot_dimension_numbers<[1], [0], [0], [1], [0, 0, 1, 1], [], []>} : vector<1x16xf32>, vector<16x32xf32>, vector<1x32xf32> -> vector<1x32xf32>
    %c16_156 = arith.constant 16 : index
    %c0_157 = arith.constant 0 : index
    %252 = vector.load %arg13[%c16_156, %c0_157] : memref<32x32xf32, #tpu.memory_space<vmem>>, vector<16x32xf32>
    %cst_158 = arith.constant dense<0.000000e+00> : vector<1x32xf32>
    %253 = tpu.matmul %155, %252, %cst_158 {dimension_numbers = #tpu.dot_dimension_numbers<[1], [0], [0], [1], [0, 0, 1, 1], [], []>} : vector<1x16xf32>, vector<16x32xf32>, vector<1x32xf32> -> vector<1x32xf32>
    %254 = arith.addf %251, %253 : vector<1x32xf32>
    %c0_159 = arith.constant 0 : index
    %c0_160 = arith.constant 0 : index
    %255 = vector.load %arg14[%c0_159, %c0_160] : memref<1x32xf32, #tpu.memory_space<vmem>>, vector<1x32xf32>
    %256 = arith.addf %254, %255 : vector<1x32xf32>
    %cst_161 = arith.constant 0.000000e+00 : f32
    %257 = vector.broadcast %cst_161 : f32 to vector<1x32xf32>
    %258 = arith.maximumf %256, %257 : vector<1x32xf32>
    %c0_162 = arith.constant 0 : index
    %c0_163 = arith.constant 0 : index
    %259 = vector.load %arg15[%c0_162, %c0_163] : memref<32x16xf32, #tpu.memory_space<vmem>>, vector<32x16xf32>
    %cst_164 = arith.constant dense<0.000000e+00> : vector<1x16xf32>
    %260 = tpu.matmul %258, %259, %cst_164 {dimension_numbers = #tpu.dot_dimension_numbers<[1], [0], [0], [1], [0, 0, 1, 1], [], []>} : vector<1x32xf32>, vector<32x16xf32>, vector<1x16xf32> -> vector<1x16xf32>
    %c0_165 = arith.constant 0 : index
    %c0_166 = arith.constant 0 : index
    %261 = vector.load %arg16[%c0_165, %c0_166] : memref<1x16xf32, #tpu.memory_space<vmem>>, vector<1x16xf32>
    %262 = arith.addf %260, %261 : vector<1x16xf32>
    %263 = vector.broadcast %262 : vector<1x16xf32> to vector<6x16xf32>
    %264 = arith.subf %263, %234 : vector<6x16xf32>
    %265 = math.absf %264 : vector<6x16xf32>
    %266 = vector.broadcast %155 : vector<1x16xf32> to vector<6x16xf32>
    %267 = arith.subf %266, %154 : vector<6x16xf32>
    %268 = math.absf %267 : vector<6x16xf32>
    %c0_167 = arith.constant 0 : index
    %c0_168 = arith.constant 0 : index
    %269 = vector.load %arg17[%c0_167, %c0_168] : memref<32x16xf32, #tpu.memory_space<vmem>>, vector<16x16xf32>
    %cst_169 = arith.constant dense<0.000000e+00> : vector<6x16xf32>
    %270 = tpu.matmul %265, %269, %cst_169 {dimension_numbers = #tpu.dot_dimension_numbers<[1], [0], [0], [1], [0, 0, 1, 1], [], []>} : vector<6x16xf32>, vector<16x16xf32>, vector<6x16xf32> -> vector<6x16xf32>
    %c16_170 = arith.constant 16 : index
    %c0_171 = arith.constant 0 : index
    %271 = vector.load %arg17[%c16_170, %c0_171] : memref<32x16xf32, #tpu.memory_space<vmem>>, vector<16x16xf32>
    %cst_172 = arith.constant dense<0.000000e+00> : vector<6x16xf32>
    %272 = tpu.matmul %268, %271, %cst_172 {dimension_numbers = #tpu.dot_dimension_numbers<[1], [0], [0], [1], [0, 0, 1, 1], [], []>} : vector<6x16xf32>, vector<16x16xf32>, vector<6x16xf32> -> vector<6x16xf32>
    %273 = arith.addf %270, %272 : vector<6x16xf32>
    %c0_173 = arith.constant 0 : index
    %c0_174 = arith.constant 0 : index
    %274 = vector.load %arg18[%c0_173, %c0_174] : memref<1x16xf32, #tpu.memory_space<vmem>>, vector<1x16xf32>
    %275 = vector.broadcast %274 : vector<1x16xf32> to vector<6x16xf32>
    %276 = arith.addf %273, %275 : vector<6x16xf32>
    %cst_175 = arith.constant 0.000000e+00 : f32
    %277 = vector.broadcast %cst_175 : f32 to vector<6x16xf32>
    %278 = arith.maximumf %276, %277 : vector<6x16xf32>
    %c0_176 = arith.constant 0 : index
    %c0_177 = arith.constant 0 : index
    %279 = vector.load %arg19[%c0_176, %c0_177] : memref<16x1xf32, #tpu.memory_space<vmem>>, vector<16x1xf32>
    %cst_178 = arith.constant dense<0.000000e+00> : vector<6x1xf32>
    %280 = tpu.matmul %278, %279, %cst_178 {dimension_numbers = #tpu.dot_dimension_numbers<[1], [0], [0], [1], [0, 0, 1, 1], [], []>} : vector<6x16xf32>, vector<16x1xf32>, vector<6x1xf32> -> vector<6x1xf32>
    %c0_179 = arith.constant 0 : index
    %c0_180 = arith.constant 0 : index
    %281 = vector.load %arg20[%c0_179, %c0_180] : memref<1x1xf32, #tpu.memory_space<vmem>>, vector<1x1xf32>
    %282 = vector.broadcast %281 : vector<1x1xf32> to vector<6x1xf32>
    %283 = arith.addf %280, %282 : vector<6x1xf32>
    %cst_181 = arith.constant dense<0xFF800000> : vector<1xf32>
    %284 = vector.multi_reduction <maximumf>, %283, %cst_181 [0] : vector<6x1xf32> to vector<1xf32>
    %285 = vector.shape_cast %284 : vector<1xf32> to vector<1x1xf32>
    %286 = vector.broadcast %285 : vector<1x1xf32> to vector<6x1xf32>
    %287 = arith.subf %283, %286 : vector<6x1xf32>
    %288 = math.exp %287 : vector<6x1xf32>
    %cst_182 = arith.constant dense<0.000000e+00> : vector<1xf32>
    %289 = vector.multi_reduction <add>, %288, %cst_182 [0] : vector<6x1xf32> to vector<1xf32>
    %290 = vector.shape_cast %289 : vector<1xf32> to vector<1x1xf32>
    %291 = vector.broadcast %290 : vector<1x1xf32> to vector<6x1xf32>
    %292 = arith.divf %288, %291 : vector<6x1xf32>
    %c1_183 = arith.constant 1 : index
    %c0_184 = arith.constant 0 : index
    %c0_185 = arith.constant 0 : index
    %293 = vector.load %arg22[%c1_183, %c0_184, %c0_185] : memref<2x6x1xf32, #tpu.memory_space<vmem>>, vector<1x6x1xf32>
    %294 = vector.shape_cast %293 : vector<1x6x1xf32> to vector<6x1xf32>
    %295 = vector.shape_cast %292 : vector<6x1xf32> to vector<1x6x1xf32>
    tpu.vector_store %arg22[%c1_183, %c0_184, %c0_185], %295 {strides = array<i32>} : memref<2x6x1xf32, #tpu.memory_space<vmem>>, vector<1x6x1xf32>,
    %296 = tpu.concatenate %249, %234, %262 in 0 : vector<4x16xf32>, vector<6x16xf32>, vector<1x16xf32> -> vector<11x16xf32>
    %297 = tpu.concatenate %296, %152 in 1 : vector<11x16xf32>, vector<11x16xf32> -> vector<11x32xf32>
    %c1_186 = arith.constant 1 : index
    %c0_187 = arith.constant 0 : index
    %c0_188 = arith.constant 0 : index
    %298 = vector.load %arg21[%c1_186, %c0_187, %c0_188] : memref<2x11x32xf32, #tpu.memory_space<vmem>>, vector<1x11x32xf32>
    %299 = vector.shape_cast %298 : vector<1x11x32xf32> to vector<11x32xf32>
    %300 = vector.shape_cast %297 : vector<11x32xf32> to vector<1x11x32xf32>
    tpu.vector_store %arg21[%c1_186, %c0_187, %c0_188], %300 {strides = array<i32>} : memref<2x11x32xf32, #tpu.memory_space<vmem>>, vector<1x11x32xf32>,
    return
  }
  func.func @transform_0(%arg0: i32) -> (i32, i32, i32) {
    %c0_i32 = arith.constant 0 : i32
    %c0_i32_0 = arith.constant 0 : i32
    %c0_i32_1 = arith.constant 0 : i32
    %c0_i32_2 = arith.constant 0 : i32
    return %c0_i32, %c0_i32_0, %c0_i32_1 : i32, i32, i32
  }
  func.func @transform_1(%arg0: i32) -> (i32, i32, i32) {
    %c0_i32 = arith.constant 0 : i32
    %c0_i32_0 = arith.constant 0 : i32
    %c0_i32_1 = arith.constant 0 : i32
    %c0_i32_2 = arith.constant 0 : i32
    return %c0_i32, %c0_i32_0, %c0_i32_1 : i32, i32, i32
  }
  func.func @transform_2(%arg0: i32) -> (i32, i32, i32) {
    %c0_i32 = arith.constant 0 : i32
    %c0_i32_0 = arith.constant 0 : i32
    %c0_i32_1 = arith.constant 0 : i32
    %c0_i32_2 = arith.constant 0 : i32
    return %c0_i32, %c0_i32_0, %c0_i32_1 : i32, i32, i32
  }
  func.func @transform_3(%arg0: i32) -> (i32, i32, i32) {
    %c0_i32 = arith.constant 0 : i32
    %c0_i32_0 = arith.constant 0 : i32
    %c0_i32_1 = arith.constant 0 : i32
    %c0_i32_2 = arith.constant 0 : i32
    return %c0_i32, %c0_i32_0, %c0_i32_1 : i32, i32, i32
  }
  func.func @transform_4(%arg0: i32) -> (i32, i32) {
    %c0_i32 = arith.constant 0 : i32
    %c0_i32_0 = arith.constant 0 : i32
    %c0_i32_1 = arith.constant 0 : i32
    return %c0_i32, %c0_i32_0 : i32, i32
  }
  func.func @transform_5(%arg0: i32) -> (i32, i32) {
    %c0_i32 = arith.constant 0 : i32
    %c0_i32_0 = arith.constant 0 : i32
    %c0_i32_1 = arith.constant 0 : i32
    return %c0_i32, %c0_i32_0 : i32, i32
  }
  func.func @transform_6(%arg0: i32) -> (i32, i32) {
    %c0_i32 = arith.constant 0 : i32
    %c0_i32_0 = arith.constant 0 : i32
    %c0_i32_1 = arith.constant 0 : i32
    return %c0_i32, %c0_i32_0 : i32, i32
  }
  func.func @transform_7(%arg0: i32) -> (i32, i32) {
    %c0_i32 = arith.constant 0 : i32
    %c0_i32_0 = arith.constant 0 : i32
    %c0_i32_1 = arith.constant 0 : i32
    return %c0_i32, %c0_i32_0 : i32, i32
  }
  func.func @transform_8(%arg0: i32) -> (i32, i32) {
    %c0_i32 = arith.constant 0 : i32
    %c0_i32_0 = arith.constant 0 : i32
    %c0_i32_1 = arith.constant 0 : i32
    return %c0_i32, %c0_i32_0 : i32, i32
  }
  func.func @transform_9(%arg0: i32) -> (i32, i32) {
    %c0_i32 = arith.constant 0 : i32
    %c0_i32_0 = arith.constant 0 : i32
    %c0_i32_1 = arith.constant 0 : i32
    return %c0_i32, %c0_i32_0 : i32, i32
  }
  func.func @transform_10(%arg0: i32) -> (i32, i32) {
    %c0_i32 = arith.constant 0 : i32
    %c0_i32_0 = arith.constant 0 : i32
    %c0_i32_1 = arith.constant 0 : i32
    return %c0_i32, %c0_i32_0 : i32, i32
  }
  func.func @transform_11(%arg0: i32) -> (i32, i32) {
    %c0_i32 = arith.constant 0 : i32
    %c0_i32_0 = arith.constant 0 : i32
    %c0_i32_1 = arith.constant 0 : i32
    return %c0_i32, %c0_i32_0 : i32, i32
  }
  func.func @transform_12(%arg0: i32) -> (i32, i32) {
    %c0_i32 = arith.constant 0 : i32
    %c0_i32_0 = arith.constant 0 : i32
    %c0_i32_1 = arith.constant 0 : i32
    return %c0_i32, %c0_i32_0 : i32, i32
  }
  func.func @transform_13(%arg0: i32) -> (i32, i32) {
    %c0_i32 = arith.constant 0 : i32
    %c0_i32_0 = arith.constant 0 : i32
    %c0_i32_1 = arith.constant 0 : i32
    return %c0_i32, %c0_i32_0 : i32, i32
  }
  func.func @transform_14(%arg0: i32) -> (i32, i32) {
    %c0_i32 = arith.constant 0 : i32
    %c0_i32_0 = arith.constant 0 : i32
    %c0_i32_1 = arith.constant 0 : i32
    return %c0_i32, %c0_i32_0 : i32, i32
  }
  func.func @transform_15(%arg0: i32) -> (i32, i32) {
    %c0_i32 = arith.constant 0 : i32
    %c0_i32_0 = arith.constant 0 : i32
    %c0_i32_1 = arith.constant 0 : i32
    return %c0_i32, %c0_i32_0 : i32, i32
  }
  func.func @transform_16(%arg0: i32) -> (i32, i32) {
    %c0_i32 = arith.constant 0 : i32
    %c0_i32_0 = arith.constant 0 : i32
    %c0_i32_1 = arith.constant 0 : i32
    return %c0_i32, %c0_i32_0 : i32, i32
  }
  func.func @transform_17(%arg0: i32) -> (i32, i32) {
    %c0_i32 = arith.constant 0 : i32
    %c0_i32_0 = arith.constant 0 : i32
    %c0_i32_1 = arith.constant 0 : i32
    return %c0_i32, %c0_i32_0 : i32, i32
  }
  func.func @transform_18(%arg0: i32) -> (i32, i32) {
    %c0_i32 = arith.constant 0 : i32
    %c0_i32_0 = arith.constant 0 : i32
    %c0_i32_1 = arith.constant 0 : i32
    return %c0_i32, %c0_i32_0 : i32, i32
  }
  func.func @transform_19(%arg0: i32) -> (i32, i32) {
    %c0_i32 = arith.constant 0 : i32
    %c0_i32_0 = arith.constant 0 : i32
    %c0_i32_1 = arith.constant 0 : i32
    return %c0_i32, %c0_i32_0 : i32, i32
  }
  func.func @transform_20(%arg0: i32) -> (i32, i32, i32) {
    %c0_i32 = arith.constant 0 : i32
    %c0_i32_0 = arith.constant 0 : i32
    %c0_i32_1 = arith.constant 0 : i32
    %c0_i32_2 = arith.constant 0 : i32
    return %c0_i32, %c0_i32_0, %c0_i32_1 : i32, i32, i32
  }
  func.func @transform_21(%arg0: i32) -> (i32, i32, i32) {
    %c0_i32 = arith.constant 0 : i32
    %c0_i32_0 = arith.constant 0 : i32
    %c0_i32_1 = arith.constant 0 : i32
    %c0_i32_2 = arith.constant 0 : i32
    return %c0_i32, %c0_i32_0, %c0_i32_1 : i32, i32, i32
  }
}

module attributes {stable_mosaic.version = 11 : i64} {
  func.func @_layer_kernel(%arg0: i32, %arg1: memref<2x11x32xf32, #tpu.memory_space<vmem>>, %arg2: memref<2x4x6xf32, #tpu.memory_space<vmem>>, %arg3: memref<2x6x4xf32, #tpu.memory_space<vmem>>, %arg4: memref<2x6x1xf32, #tpu.memory_space<vmem>>, %arg5: memref<96x32xf32, #tpu.memory_space<vmem>>, %arg6: memref<1x32xf32, #tpu.memory_space<vmem>>, %arg7: memref<32x16xf32, #tpu.memory_space<vmem>>, %arg8: memref<1x16xf32, #tpu.memory_space<vmem>>, %arg9: memref<64x32xf32, #tpu.memory_space<vmem>>, %arg10: memref<1x32xf32, #tpu.memory_space<vmem>>, %arg11: memref<32x16xf32, #tpu.memory_space<vmem>>, %arg12: memref<1x16xf32, #tpu.memory_space<vmem>>, %arg13: memref<64x32xf32, #tpu.memory_space<vmem>>, %arg14: memref<1x32xf32, #tpu.memory_space<vmem>>, %arg15: memref<32x16xf32, #tpu.memory_space<vmem>>, %arg16: memref<1x16xf32, #tpu.memory_space<vmem>>, %arg17: memref<48x16xf32, #tpu.memory_space<vmem>>, %arg18: memref<1x16xf32, #tpu.memory_space<vmem>>, %arg19: memref<16x1xf32, #tpu.memory_space<vmem>>, %arg20: memref<1x1xf32, #tpu.memory_space<vmem>>, %arg21: memref<2x11x48xf32, #tpu.memory_space<vmem>>, %arg22: memref<2x6x1xf32, #tpu.memory_space<vmem>>) attributes {dimension_semantics = [#tpu.dimension_semantics<arbitrary>], iteration_bounds = array<i64: 1>, scalar_prefetch = 0 : i64, scratch_operands = 0 : i64, tpu.core_type = #tpu.core_type<tc>, window_params = [{pipeline_mode = #tpu.pipeline_mode<synchronous>, transform_indices = @transform_0, window_bounds = array<i64: 2, 11, 32>}, {pipeline_mode = #tpu.pipeline_mode<synchronous>, transform_indices = @transform_1, window_bounds = array<i64: 2, 4, 6>}, {pipeline_mode = #tpu.pipeline_mode<synchronous>, transform_indices = @transform_2, window_bounds = array<i64: 2, 6, 4>}, {pipeline_mode = #tpu.pipeline_mode<synchronous>, transform_indices = @transform_3, window_bounds = array<i64: 2, 6, 1>}, {pipeline_mode = #tpu.pipeline_mode<synchronous>, transform_indices = @transform_4, window_bounds = array<i64: 96, 32>}, {pipeline_mode = #tpu.pipeline_mode<synchronous>, transform_indices = @transform_5, window_bounds = array<i64: 1, 32>}, {pipeline_mode = #tpu.pipeline_mode<synchronous>, transform_indices = @transform_6, window_bounds = array<i64: 32, 16>}, {pipeline_mode = #tpu.pipeline_mode<synchronous>, transform_indices = @transform_7, window_bounds = array<i64: 1, 16>}, {pipeline_mode = #tpu.pipeline_mode<synchronous>, transform_indices = @transform_8, window_bounds = array<i64: 64, 32>}, {pipeline_mode = #tpu.pipeline_mode<synchronous>, transform_indices = @transform_9, window_bounds = array<i64: 1, 32>}, {pipeline_mode = #tpu.pipeline_mode<synchronous>, transform_indices = @transform_10, window_bounds = array<i64: 32, 16>}, {pipeline_mode = #tpu.pipeline_mode<synchronous>, transform_indices = @transform_11, window_bounds = array<i64: 1, 16>}, {pipeline_mode = #tpu.pipeline_mode<synchronous>, transform_indices = @transform_12, window_bounds = array<i64: 64, 32>}, {pipeline_mode = #tpu.pipeline_mode<synchronous>, transform_indices = @transform_13, window_bounds = array<i64: 1, 32>}, {pipeline_mode = #tpu.pipeline_mode<synchronous>, transform_indices = @transform_14, window_bounds = array<i64: 32, 16>}, {pipeline_mode = #tpu.pipeline_mode<synchronous>, transform_indices = @transform_15, window_bounds = array<i64: 1, 16>}, {pipeline_mode = #tpu.pipeline_mode<synchronous>, transform_indices = @transform_16, window_bounds = array<i64: 48, 16>}, {pipeline_mode = #tpu.pipeline_mode<synchronous>, transform_indices = @transform_17, window_bounds = array<i64: 1, 16>}, {pipeline_mode = #tpu.pipeline_mode<synchronous>, transform_indices = @transform_18, window_bounds = array<i64: 16, 1>}, {pipeline_mode = #tpu.pipeline_mode<synchronous>, transform_indices = @transform_19, window_bounds = array<i64: 1, 1>}, {pipeline_mode = #tpu.pipeline_mode<synchronous>, transform_indices = @transform_20, window_bounds = array<i64: 2, 11, 48>}, {pipeline_mode = #tpu.pipeline_mode<synchronous>, transform_indices = @transform_21, window_bounds = array<i64: 2, 6, 1>}]} {
    %0 = tpu.iota {dimensions = array<i32: 0>} : vector<6x1xi32>
    %c0 = arith.constant 0 : index
    %c0_0 = arith.constant 0 : index
    %c0_1 = arith.constant 0 : index
    %1 = vector.load %arg1[%c0, %c0_0, %c0_1] : memref<2x11x32xf32, #tpu.memory_space<vmem>>, vector<1x11x32xf32>
    %2 = vector.shape_cast %1 : vector<1x11x32xf32> to vector<11x32xf32>
    %3 = vector.extract_strided_slice %2 {offsets = [0, 0], sizes = [4, 32], strides = [1, 1]} : vector<11x32xf32> to vector<4x32xf32>
    %4 = vector.extract_strided_slice %2 {offsets = [4, 0], sizes = [6, 32], strides = [1, 1]} : vector<11x32xf32> to vector<6x32xf32>
    %5 = vector.extract_strided_slice %2 {offsets = [10, 0], sizes = [1, 32], strides = [1, 1]} : vector<11x32xf32> to vector<1x32xf32>
    %c0_2 = arith.constant 0 : index
    %c0_3 = arith.constant 0 : index
    %c0_4 = arith.constant 0 : index
    %6 = vector.load %arg4[%c0_2, %c0_3, %c0_4] : memref<2x6x1xf32, #tpu.memory_space<vmem>>, vector<1x6x1xf32>
    %7 = vector.shape_cast %6 : vector<1x6x1xf32> to vector<6x1xf32>
    %c0_5 = arith.constant 0 : index
    %c0_6 = arith.constant 0 : index
    %c0_7 = arith.constant 0 : index
    %8 = vector.load %arg3[%c0_5, %c0_6, %c0_7] : memref<2x6x4xf32, #tpu.memory_space<vmem>>, vector<1x6x4xf32>
    %9 = vector.shape_cast %8 : vector<1x6x4xf32> to vector<6x4xf32>
    %cst = arith.constant dense<0.000000e+00> : vector<6x32xf32>
    %10 = tpu.matmul %9, %3, %cst {dimension_numbers = #tpu.dot_dimension_numbers<[1], [0], [0], [1], [0, 0, 1, 1], [], []>} : vector<6x4xf32>, vector<4x32xf32>, vector<6x32xf32> -> vector<6x32xf32>
    %c0_8 = arith.constant 0 : index
    %c0_9 = arith.constant 0 : index
    %c0_10 = arith.constant 0 : index
    %11 = vector.load %arg2[%c0_8, %c0_9, %c0_10] : memref<2x4x6xf32, #tpu.memory_space<vmem>>, vector<1x4x6xf32>
    %12 = vector.shape_cast %11 : vector<1x4x6xf32> to vector<4x6xf32>
    %cst_11 = arith.constant dense<0.000000e+00> : vector<4x32xf32>
    %13 = tpu.matmul %12, %4, %cst_11 {dimension_numbers = #tpu.dot_dimension_numbers<[1], [0], [0], [1], [0, 0, 1, 1], [], []>} : vector<4x6xf32>, vector<6x32xf32>, vector<4x32xf32> -> vector<4x32xf32>
    %14 = vector.broadcast %7 : vector<6x1xf32> to vector<6x32xf32>
    %15 = arith.mulf %14, %4 : vector<6x32xf32>
    %cst_12 = arith.constant dense<0.000000e+00> : vector<32xf32>
    %16 = vector.multi_reduction <add>, %15, %cst_12 [0] : vector<6x32xf32> to vector<32xf32>
    %17 = vector.shape_cast %16 : vector<32xf32> to vector<1x32xf32>
    %c0_i32 = arith.constant 0 : i32
    %18 = vector.broadcast %c0_i32 : i32 to vector<6x1xi32>
    %19 = arith.cmpi eq, %0, %18 : vector<6x1xi32>
    %cst_13 = arith.constant 0xFF800000 : f32
    %20 = vector.shape_cast %19 : vector<6x1xi1> to vector<6x1xi1>
    %21 = vector.broadcast %20 : vector<6x1xi1> to vector<6x32xi1>
    %22 = vector.broadcast %cst_13 : f32 to vector<6x32xf32>
    %23 = arith.select %21, %22, %4 : vector<6x32xi1>, vector<6x32xf32>
    %cst_14 = arith.constant dense<0xFF800000> : vector<32xf32>
    %24 = vector.multi_reduction <maximumf>, %23, %cst_14 [0] : vector<6x32xf32> to vector<32xf32>
    %25 = vector.shape_cast %24 : vector<32xf32> to vector<1x32xf32>
    %c1_i32 = arith.constant 1 : i32
    %26 = vector.broadcast %c1_i32 : i32 to vector<6x1xi32>
    %27 = arith.cmpi eq, %0, %26 : vector<6x1xi32>
    %cst_15 = arith.constant 0xFF800000 : f32
    %28 = vector.shape_cast %27 : vector<6x1xi1> to vector<6x1xi1>
    %29 = vector.broadcast %28 : vector<6x1xi1> to vector<6x32xi1>
    %30 = vector.broadcast %cst_15 : f32 to vector<6x32xf32>
    %31 = arith.select %29, %30, %4 : vector<6x32xi1>, vector<6x32xf32>
    %cst_16 = arith.constant dense<0xFF800000> : vector<32xf32>
    %32 = vector.multi_reduction <maximumf>, %31, %cst_16 [0] : vector<6x32xf32> to vector<32xf32>
    %33 = vector.shape_cast %32 : vector<32xf32> to vector<1x32xf32>
    %c2_i32 = arith.constant 2 : i32
    %34 = vector.broadcast %c2_i32 : i32 to vector<6x1xi32>
    %35 = arith.cmpi eq, %0, %34 : vector<6x1xi32>
    %cst_17 = arith.constant 0xFF800000 : f32
    %36 = vector.shape_cast %35 : vector<6x1xi1> to vector<6x1xi1>
    %37 = vector.broadcast %36 : vector<6x1xi1> to vector<6x32xi1>
    %38 = vector.broadcast %cst_17 : f32 to vector<6x32xf32>
    %39 = arith.select %37, %38, %4 : vector<6x32xi1>, vector<6x32xf32>
    %cst_18 = arith.constant dense<0xFF800000> : vector<32xf32>
    %40 = vector.multi_reduction <maximumf>, %39, %cst_18 [0] : vector<6x32xf32> to vector<32xf32>
    %41 = vector.shape_cast %40 : vector<32xf32> to vector<1x32xf32>
    %c3_i32 = arith.constant 3 : i32
    %42 = vector.broadcast %c3_i32 : i32 to vector<6x1xi32>
    %43 = arith.cmpi eq, %0, %42 : vector<6x1xi32>
    %cst_19 = arith.constant 0xFF800000 : f32
    %44 = vector.shape_cast %43 : vector<6x1xi1> to vector<6x1xi1>
    %45 = vector.broadcast %44 : vector<6x1xi1> to vector<6x32xi1>
    %46 = vector.broadcast %cst_19 : f32 to vector<6x32xf32>
    %47 = arith.select %45, %46, %4 : vector<6x32xi1>, vector<6x32xf32>
    %cst_20 = arith.constant dense<0xFF800000> : vector<32xf32>
    %48 = vector.multi_reduction <maximumf>, %47, %cst_20 [0] : vector<6x32xf32> to vector<32xf32>
    %49 = vector.shape_cast %48 : vector<32xf32> to vector<1x32xf32>
    %c4_i32 = arith.constant 4 : i32
    %50 = vector.broadcast %c4_i32 : i32 to vector<6x1xi32>
    %51 = arith.cmpi eq, %0, %50 : vector<6x1xi32>
    %cst_21 = arith.constant 0xFF800000 : f32
    %52 = vector.shape_cast %51 : vector<6x1xi1> to vector<6x1xi1>
    %53 = vector.broadcast %52 : vector<6x1xi1> to vector<6x32xi1>
    %54 = vector.broadcast %cst_21 : f32 to vector<6x32xf32>
    %55 = arith.select %53, %54, %4 : vector<6x32xi1>, vector<6x32xf32>
    %cst_22 = arith.constant dense<0xFF800000> : vector<32xf32>
    %56 = vector.multi_reduction <maximumf>, %55, %cst_22 [0] : vector<6x32xf32> to vector<32xf32>
    %57 = vector.shape_cast %56 : vector<32xf32> to vector<1x32xf32>
    %c5_i32 = arith.constant 5 : i32
    %58 = vector.broadcast %c5_i32 : i32 to vector<6x1xi32>
    %59 = arith.cmpi eq, %0, %58 : vector<6x1xi32>
    %cst_23 = arith.constant 0xFF800000 : f32
    %60 = vector.shape_cast %59 : vector<6x1xi1> to vector<6x1xi1>
    %61 = vector.broadcast %60 : vector<6x1xi1> to vector<6x32xi1>
    %62 = vector.broadcast %cst_23 : f32 to vector<6x32xf32>
    %63 = arith.select %61, %62, %4 : vector<6x32xi1>, vector<6x32xf32>
    %cst_24 = arith.constant dense<0xFF800000> : vector<32xf32>
    %64 = vector.multi_reduction <maximumf>, %63, %cst_24 [0] : vector<6x32xf32> to vector<32xf32>
    %65 = vector.shape_cast %64 : vector<32xf32> to vector<1x32xf32>
    %66 = tpu.concatenate %25, %33, %41, %49, %57, %65 in 0 : vector<1x32xf32>, vector<1x32xf32>, vector<1x32xf32>, vector<1x32xf32>, vector<1x32xf32>, vector<1x32xf32> -> vector<6x32xf32>
    %c0_25 = arith.constant 0 : index
    %c0_26 = arith.constant 0 : index
    %67 = vector.load %arg5[%c0_25, %c0_26] : memref<96x32xf32, #tpu.memory_space<vmem>>, vector<32x32xf32>
    %cst_27 = arith.constant dense<0.000000e+00> : vector<6x32xf32>
    %68 = tpu.matmul %4, %67, %cst_27 {dimension_numbers = #tpu.dot_dimension_numbers<[1], [0], [0], [1], [0, 0, 1, 1], [], []>} : vector<6x32xf32>, vector<32x32xf32>, vector<6x32xf32> -> vector<6x32xf32>
    %c32 = arith.constant 32 : index
    %c0_28 = arith.constant 0 : index
    %69 = vector.load %arg5[%c32, %c0_28] : memref<96x32xf32, #tpu.memory_space<vmem>>, vector<32x32xf32>
    %cst_29 = arith.constant dense<0.000000e+00> : vector<6x32xf32>
    %70 = tpu.matmul %66, %69, %cst_29 {dimension_numbers = #tpu.dot_dimension_numbers<[1], [0], [0], [1], [0, 0, 1, 1], [], []>} : vector<6x32xf32>, vector<32x32xf32>, vector<6x32xf32> -> vector<6x32xf32>
    %71 = arith.addf %68, %70 : vector<6x32xf32>
    %c64 = arith.constant 64 : index
    %c0_30 = arith.constant 0 : index
    %72 = vector.load %arg5[%c64, %c0_30] : memref<96x32xf32, #tpu.memory_space<vmem>>, vector<32x32xf32>
    %cst_31 = arith.constant dense<0.000000e+00> : vector<6x32xf32>
    %73 = tpu.matmul %10, %72, %cst_31 {dimension_numbers = #tpu.dot_dimension_numbers<[1], [0], [0], [1], [0, 0, 1, 1], [], []>} : vector<6x32xf32>, vector<32x32xf32>, vector<6x32xf32> -> vector<6x32xf32>
    %74 = arith.addf %71, %73 : vector<6x32xf32>
    %c0_32 = arith.constant 0 : index
    %c0_33 = arith.constant 0 : index
    %75 = vector.load %arg6[%c0_32, %c0_33] : memref<1x32xf32, #tpu.memory_space<vmem>>, vector<1x32xf32>
    %76 = vector.broadcast %75 : vector<1x32xf32> to vector<6x32xf32>
    %77 = arith.addf %74, %76 : vector<6x32xf32>
    %cst_34 = arith.constant 0.000000e+00 : f32
    %78 = vector.broadcast %cst_34 : f32 to vector<6x32xf32>
    %79 = arith.maximumf %77, %78 : vector<6x32xf32>
    %c0_35 = arith.constant 0 : index
    %c0_36 = arith.constant 0 : index
    %80 = vector.load %arg7[%c0_35, %c0_36] : memref<32x16xf32, #tpu.memory_space<vmem>>, vector<32x16xf32>
    %cst_37 = arith.constant dense<0.000000e+00> : vector<6x16xf32>
    %81 = tpu.matmul %79, %80, %cst_37 {dimension_numbers = #tpu.dot_dimension_numbers<[1], [0], [0], [1], [0, 0, 1, 1], [], []>} : vector<6x32xf32>, vector<32x16xf32>, vector<6x16xf32> -> vector<6x16xf32>
    %c0_38 = arith.constant 0 : index
    %c0_39 = arith.constant 0 : index
    %82 = vector.load %arg8[%c0_38, %c0_39] : memref<1x16xf32, #tpu.memory_space<vmem>>, vector<1x16xf32>
    %83 = vector.broadcast %82 : vector<1x16xf32> to vector<6x16xf32>
    %84 = arith.addf %81, %83 : vector<6x16xf32>
    %c0_40 = arith.constant 0 : index
    %c0_41 = arith.constant 0 : index
    %85 = vector.load %arg9[%c0_40, %c0_41] : memref<64x32xf32, #tpu.memory_space<vmem>>, vector<32x32xf32>
    %cst_42 = arith.constant dense<0.000000e+00> : vector<4x32xf32>
    %86 = tpu.matmul %3, %85, %cst_42 {dimension_numbers = #tpu.dot_dimension_numbers<[1], [0], [0], [1], [0, 0, 1, 1], [], []>} : vector<4x32xf32>, vector<32x32xf32>, vector<4x32xf32> -> vector<4x32xf32>
    %c32_43 = arith.constant 32 : index
    %c0_44 = arith.constant 0 : index
    %87 = vector.load %arg9[%c32_43, %c0_44] : memref<64x32xf32, #tpu.memory_space<vmem>>, vector<32x32xf32>
    %cst_45 = arith.constant dense<0.000000e+00> : vector<4x32xf32>
    %88 = tpu.matmul %13, %87, %cst_45 {dimension_numbers = #tpu.dot_dimension_numbers<[1], [0], [0], [1], [0, 0, 1, 1], [], []>} : vector<4x32xf32>, vector<32x32xf32>, vector<4x32xf32> -> vector<4x32xf32>
    %89 = arith.addf %86, %88 : vector<4x32xf32>
    %c0_46 = arith.constant 0 : index
    %c0_47 = arith.constant 0 : index
    %90 = vector.load %arg10[%c0_46, %c0_47] : memref<1x32xf32, #tpu.memory_space<vmem>>, vector<1x32xf32>
    %91 = vector.broadcast %90 : vector<1x32xf32> to vector<4x32xf32>
    %92 = arith.addf %89, %91 : vector<4x32xf32>
    %cst_48 = arith.constant 0.000000e+00 : f32
    %93 = vector.broadcast %cst_48 : f32 to vector<4x32xf32>
    %94 = arith.maximumf %92, %93 : vector<4x32xf32>
    %c0_49 = arith.constant 0 : index
    %c0_50 = arith.constant 0 : index
    %95 = vector.load %arg11[%c0_49, %c0_50] : memref<32x16xf32, #tpu.memory_space<vmem>>, vector<32x16xf32>
    %cst_51 = arith.constant dense<0.000000e+00> : vector<4x16xf32>
    %96 = tpu.matmul %94, %95, %cst_51 {dimension_numbers = #tpu.dot_dimension_numbers<[1], [0], [0], [1], [0, 0, 1, 1], [], []>} : vector<4x32xf32>, vector<32x16xf32>, vector<4x16xf32> -> vector<4x16xf32>
    %c0_52 = arith.constant 0 : index
    %c0_53 = arith.constant 0 : index
    %97 = vector.load %arg12[%c0_52, %c0_53] : memref<1x16xf32, #tpu.memory_space<vmem>>, vector<1x16xf32>
    %98 = vector.broadcast %97 : vector<1x16xf32> to vector<4x16xf32>
    %99 = arith.addf %96, %98 : vector<4x16xf32>
    %c0_54 = arith.constant 0 : index
    %c0_55 = arith.constant 0 : index
    %100 = vector.load %arg13[%c0_54, %c0_55] : memref<64x32xf32, #tpu.memory_space<vmem>>, vector<32x32xf32>
    %cst_56 = arith.constant dense<0.000000e+00> : vector<1x32xf32>
    %101 = tpu.matmul %17, %100, %cst_56 {dimension_numbers = #tpu.dot_dimension_numbers<[1], [0], [0], [1], [0, 0, 1, 1], [], []>} : vector<1x32xf32>, vector<32x32xf32>, vector<1x32xf32> -> vector<1x32xf32>
    %c32_57 = arith.constant 32 : index
    %c0_58 = arith.constant 0 : index
    %102 = vector.load %arg13[%c32_57, %c0_58] : memref<64x32xf32, #tpu.memory_space<vmem>>, vector<32x32xf32>
    %cst_59 = arith.constant dense<0.000000e+00> : vector<1x32xf32>
    %103 = tpu.matmul %5, %102, %cst_59 {dimension_numbers = #tpu.dot_dimension_numbers<[1], [0], [0], [1], [0, 0, 1, 1], [], []>} : vector<1x32xf32>, vector<32x32xf32>, vector<1x32xf32> -> vector<1x32xf32>
    %104 = arith.addf %101, %103 : vector<1x32xf32>
    %c0_60 = arith.constant 0 : index
    %c0_61 = arith.constant 0 : index
    %105 = vector.load %arg14[%c0_60, %c0_61] : memref<1x32xf32, #tpu.memory_space<vmem>>, vector<1x32xf32>
    %106 = arith.addf %104, %105 : vector<1x32xf32>
    %cst_62 = arith.constant 0.000000e+00 : f32
    %107 = vector.broadcast %cst_62 : f32 to vector<1x32xf32>
    %108 = arith.maximumf %106, %107 : vector<1x32xf32>
    %c0_63 = arith.constant 0 : index
    %c0_64 = arith.constant 0 : index
    %109 = vector.load %arg15[%c0_63, %c0_64] : memref<32x16xf32, #tpu.memory_space<vmem>>, vector<32x16xf32>
    %cst_65 = arith.constant dense<0.000000e+00> : vector<1x16xf32>
    %110 = tpu.matmul %108, %109, %cst_65 {dimension_numbers = #tpu.dot_dimension_numbers<[1], [0], [0], [1], [0, 0, 1, 1], [], []>} : vector<1x32xf32>, vector<32x16xf32>, vector<1x16xf32> -> vector<1x16xf32>
    %c0_66 = arith.constant 0 : index
    %c0_67 = arith.constant 0 : index
    %111 = vector.load %arg16[%c0_66, %c0_67] : memref<1x16xf32, #tpu.memory_space<vmem>>, vector<1x16xf32>
    %112 = arith.addf %110, %111 : vector<1x16xf32>
    %113 = vector.broadcast %112 : vector<1x16xf32> to vector<6x16xf32>
    %114 = arith.subf %113, %84 : vector<6x16xf32>
    %115 = math.absf %114 : vector<6x16xf32>
    %116 = vector.broadcast %5 : vector<1x32xf32> to vector<6x32xf32>
    %117 = arith.subf %116, %4 : vector<6x32xf32>
    %118 = math.absf %117 : vector<6x32xf32>
    %c0_68 = arith.constant 0 : index
    %c0_69 = arith.constant 0 : index
    %119 = vector.load %arg17[%c0_68, %c0_69] : memref<48x16xf32, #tpu.memory_space<vmem>>, vector<16x16xf32>
    %cst_70 = arith.constant dense<0.000000e+00> : vector<6x16xf32>
    %120 = tpu.matmul %115, %119, %cst_70 {dimension_numbers = #tpu.dot_dimension_numbers<[1], [0], [0], [1], [0, 0, 1, 1], [], []>} : vector<6x16xf32>, vector<16x16xf32>, vector<6x16xf32> -> vector<6x16xf32>
    %c16 = arith.constant 16 : index
    %c0_71 = arith.constant 0 : index
    %121 = vector.load %arg17[%c16, %c0_71] : memref<48x16xf32, #tpu.memory_space<vmem>>, vector<32x16xf32>
    %cst_72 = arith.constant dense<0.000000e+00> : vector<6x16xf32>
    %122 = tpu.matmul %118, %121, %cst_72 {dimension_numbers = #tpu.dot_dimension_numbers<[1], [0], [0], [1], [0, 0, 1, 1], [], []>} : vector<6x32xf32>, vector<32x16xf32>, vector<6x16xf32> -> vector<6x16xf32>
    %123 = arith.addf %120, %122 : vector<6x16xf32>
    %c0_73 = arith.constant 0 : index
    %c0_74 = arith.constant 0 : index
    %124 = vector.load %arg18[%c0_73, %c0_74] : memref<1x16xf32, #tpu.memory_space<vmem>>, vector<1x16xf32>
    %125 = vector.broadcast %124 : vector<1x16xf32> to vector<6x16xf32>
    %126 = arith.addf %123, %125 : vector<6x16xf32>
    %cst_75 = arith.constant 0.000000e+00 : f32
    %127 = vector.broadcast %cst_75 : f32 to vector<6x16xf32>
    %128 = arith.maximumf %126, %127 : vector<6x16xf32>
    %c0_76 = arith.constant 0 : index
    %c0_77 = arith.constant 0 : index
    %129 = vector.load %arg19[%c0_76, %c0_77] : memref<16x1xf32, #tpu.memory_space<vmem>>, vector<16x1xf32>
    %cst_78 = arith.constant dense<0.000000e+00> : vector<6x1xf32>
    %130 = tpu.matmul %128, %129, %cst_78 {dimension_numbers = #tpu.dot_dimension_numbers<[1], [0], [0], [1], [0, 0, 1, 1], [], []>} : vector<6x16xf32>, vector<16x1xf32>, vector<6x1xf32> -> vector<6x1xf32>
    %c0_79 = arith.constant 0 : index
    %c0_80 = arith.constant 0 : index
    %131 = vector.load %arg20[%c0_79, %c0_80] : memref<1x1xf32, #tpu.memory_space<vmem>>, vector<1x1xf32>
    %132 = vector.broadcast %131 : vector<1x1xf32> to vector<6x1xf32>
    %133 = arith.addf %130, %132 : vector<6x1xf32>
    %cst_81 = arith.constant dense<0xFF800000> : vector<1xf32>
    %134 = vector.multi_reduction <maximumf>, %133, %cst_81 [0] : vector<6x1xf32> to vector<1xf32>
    %135 = vector.shape_cast %134 : vector<1xf32> to vector<1x1xf32>
    %136 = vector.broadcast %135 : vector<1x1xf32> to vector<6x1xf32>
    %137 = arith.subf %133, %136 : vector<6x1xf32>
    %138 = math.exp %137 : vector<6x1xf32>
    %cst_82 = arith.constant dense<0.000000e+00> : vector<1xf32>
    %139 = vector.multi_reduction <add>, %138, %cst_82 [0] : vector<6x1xf32> to vector<1xf32>
    %140 = vector.shape_cast %139 : vector<1xf32> to vector<1x1xf32>
    %141 = vector.broadcast %140 : vector<1x1xf32> to vector<6x1xf32>
    %142 = arith.divf %138, %141 : vector<6x1xf32>
    %c0_83 = arith.constant 0 : index
    %c0_84 = arith.constant 0 : index
    %c0_85 = arith.constant 0 : index
    %143 = vector.load %arg22[%c0_83, %c0_84, %c0_85] : memref<2x6x1xf32, #tpu.memory_space<vmem>>, vector<1x6x1xf32>
    %144 = vector.shape_cast %143 : vector<1x6x1xf32> to vector<6x1xf32>
    %145 = vector.shape_cast %142 : vector<6x1xf32> to vector<1x6x1xf32>
    tpu.vector_store %arg22[%c0_83, %c0_84, %c0_85], %145 {strides = array<i32>} : memref<2x6x1xf32, #tpu.memory_space<vmem>>, vector<1x6x1xf32>,
    %146 = tpu.concatenate %99, %84, %112 in 0 : vector<4x16xf32>, vector<6x16xf32>, vector<1x16xf32> -> vector<11x16xf32>
    %147 = tpu.concatenate %146, %2 in 1 : vector<11x16xf32>, vector<11x32xf32> -> vector<11x48xf32>
    %c0_86 = arith.constant 0 : index
    %c0_87 = arith.constant 0 : index
    %c0_88 = arith.constant 0 : index
    %148 = vector.load %arg21[%c0_86, %c0_87, %c0_88] : memref<2x11x48xf32, #tpu.memory_space<vmem>>, vector<1x11x48xf32>
    %149 = vector.shape_cast %148 : vector<1x11x48xf32> to vector<11x48xf32>
    %150 = vector.shape_cast %147 : vector<11x48xf32> to vector<1x11x48xf32>
    tpu.vector_store %arg21[%c0_86, %c0_87, %c0_88], %150 {strides = array<i32>} : memref<2x11x48xf32, #tpu.memory_space<vmem>>, vector<1x11x48xf32>,
    %c1 = arith.constant 1 : index
    %c0_89 = arith.constant 0 : index
    %c0_90 = arith.constant 0 : index
    %151 = vector.load %arg1[%c1, %c0_89, %c0_90] : memref<2x11x32xf32, #tpu.memory_space<vmem>>, vector<1x11x32xf32>
    %152 = vector.shape_cast %151 : vector<1x11x32xf32> to vector<11x32xf32>
    %153 = vector.extract_strided_slice %152 {offsets = [0, 0], sizes = [4, 32], strides = [1, 1]} : vector<11x32xf32> to vector<4x32xf32>
    %154 = vector.extract_strided_slice %152 {offsets = [4, 0], sizes = [6, 32], strides = [1, 1]} : vector<11x32xf32> to vector<6x32xf32>
    %155 = vector.extract_strided_slice %152 {offsets = [10, 0], sizes = [1, 32], strides = [1, 1]} : vector<11x32xf32> to vector<1x32xf32>
    %c1_91 = arith.constant 1 : index
    %c0_92 = arith.constant 0 : index
    %c0_93 = arith.constant 0 : index
    %156 = vector.load %arg4[%c1_91, %c0_92, %c0_93] : memref<2x6x1xf32, #tpu.memory_space<vmem>>, vector<1x6x1xf32>
    %157 = vector.shape_cast %156 : vector<1x6x1xf32> to vector<6x1xf32>
    %c1_94 = arith.constant 1 : index
    %c0_95 = arith.constant 0 : index
    %c0_96 = arith.constant 0 : index
    %158 = vector.load %arg3[%c1_94, %c0_95, %c0_96] : memref<2x6x4xf32, #tpu.memory_space<vmem>>, vector<1x6x4xf32>
    %159 = vector.shape_cast %158 : vector<1x6x4xf32> to vector<6x4xf32>
    %cst_97 = arith.constant dense<0.000000e+00> : vector<6x32xf32>
    %160 = tpu.matmul %159, %153, %cst_97 {dimension_numbers = #tpu.dot_dimension_numbers<[1], [0], [0], [1], [0, 0, 1, 1], [], []>} : vector<6x4xf32>, vector<4x32xf32>, vector<6x32xf32> -> vector<6x32xf32>
    %c1_98 = arith.constant 1 : index
    %c0_99 = arith.constant 0 : index
    %c0_100 = arith.constant 0 : index
    %161 = vector.load %arg2[%c1_98, %c0_99, %c0_100] : memref<2x4x6xf32, #tpu.memory_space<vmem>>, vector<1x4x6xf32>
    %162 = vector.shape_cast %161 : vector<1x4x6xf32> to vector<4x6xf32>
    %cst_101 = arith.constant dense<0.000000e+00> : vector<4x32xf32>
    %163 = tpu.matmul %162, %154, %cst_101 {dimension_numbers = #tpu.dot_dimension_numbers<[1], [0], [0], [1], [0, 0, 1, 1], [], []>} : vector<4x6xf32>, vector<6x32xf32>, vector<4x32xf32> -> vector<4x32xf32>
    %164 = vector.broadcast %157 : vector<6x1xf32> to vector<6x32xf32>
    %165 = arith.mulf %164, %154 : vector<6x32xf32>
    %cst_102 = arith.constant dense<0.000000e+00> : vector<32xf32>
    %166 = vector.multi_reduction <add>, %165, %cst_102 [0] : vector<6x32xf32> to vector<32xf32>
    %167 = vector.shape_cast %166 : vector<32xf32> to vector<1x32xf32>
    %c0_i32_103 = arith.constant 0 : i32
    %168 = vector.broadcast %c0_i32_103 : i32 to vector<6x1xi32>
    %169 = arith.cmpi eq, %0, %168 : vector<6x1xi32>
    %cst_104 = arith.constant 0xFF800000 : f32
    %170 = vector.shape_cast %169 : vector<6x1xi1> to vector<6x1xi1>
    %171 = vector.broadcast %170 : vector<6x1xi1> to vector<6x32xi1>
    %172 = vector.broadcast %cst_104 : f32 to vector<6x32xf32>
    %173 = arith.select %171, %172, %154 : vector<6x32xi1>, vector<6x32xf32>
    %cst_105 = arith.constant dense<0xFF800000> : vector<32xf32>
    %174 = vector.multi_reduction <maximumf>, %173, %cst_105 [0] : vector<6x32xf32> to vector<32xf32>
    %175 = vector.shape_cast %174 : vector<32xf32> to vector<1x32xf32>
    %c1_i32_106 = arith.constant 1 : i32
    %176 = vector.broadcast %c1_i32_106 : i32 to vector<6x1xi32>
    %177 = arith.cmpi eq, %0, %176 : vector<6x1xi32>
    %cst_107 = arith.constant 0xFF800000 : f32
    %178 = vector.shape_cast %177 : vector<6x1xi1> to vector<6x1xi1>
    %179 = vector.broadcast %178 : vector<6x1xi1> to vector<6x32xi1>
    %180 = vector.broadcast %cst_107 : f32 to vector<6x32xf32>
    %181 = arith.select %179, %180, %154 : vector<6x32xi1>, vector<6x32xf32>
    %cst_108 = arith.constant dense<0xFF800000> : vector<32xf32>
    %182 = vector.multi_reduction <maximumf>, %181, %cst_108 [0] : vector<6x32xf32> to vector<32xf32>
    %183 = vector.shape_cast %182 : vector<32xf32> to vector<1x32xf32>
    %c2_i32_109 = arith.constant 2 : i32
    %184 = vector.broadcast %c2_i32_109 : i32 to vector<6x1xi32>
    %185 = arith.cmpi eq, %0, %184 : vector<6x1xi32>
    %cst_110 = arith.constant 0xFF800000 : f32
    %186 = vector.shape_cast %185 : vector<6x1xi1> to vector<6x1xi1>
    %187 = vector.broadcast %186 : vector<6x1xi1> to vector<6x32xi1>
    %188 = vector.broadcast %cst_110 : f32 to vector<6x32xf32>
    %189 = arith.select %187, %188, %154 : vector<6x32xi1>, vector<6x32xf32>
    %cst_111 = arith.constant dense<0xFF800000> : vector<32xf32>
    %190 = vector.multi_reduction <maximumf>, %189, %cst_111 [0] : vector<6x32xf32> to vector<32xf32>
    %191 = vector.shape_cast %190 : vector<32xf32> to vector<1x32xf32>
    %c3_i32_112 = arith.constant 3 : i32
    %192 = vector.broadcast %c3_i32_112 : i32 to vector<6x1xi32>
    %193 = arith.cmpi eq, %0, %192 : vector<6x1xi32>
    %cst_113 = arith.constant 0xFF800000 : f32
    %194 = vector.shape_cast %193 : vector<6x1xi1> to vector<6x1xi1>
    %195 = vector.broadcast %194 : vector<6x1xi1> to vector<6x32xi1>
    %196 = vector.broadcast %cst_113 : f32 to vector<6x32xf32>
    %197 = arith.select %195, %196, %154 : vector<6x32xi1>, vector<6x32xf32>
    %cst_114 = arith.constant dense<0xFF800000> : vector<32xf32>
    %198 = vector.multi_reduction <maximumf>, %197, %cst_114 [0] : vector<6x32xf32> to vector<32xf32>
    %199 = vector.shape_cast %198 : vector<32xf32> to vector<1x32xf32>
    %c4_i32_115 = arith.constant 4 : i32
    %200 = vector.broadcast %c4_i32_115 : i32 to vector<6x1xi32>
    %201 = arith.cmpi eq, %0, %200 : vector<6x1xi32>
    %cst_116 = arith.constant 0xFF800000 : f32
    %202 = vector.shape_cast %201 : vector<6x1xi1> to vector<6x1xi1>
    %203 = vector.broadcast %202 : vector<6x1xi1> to vector<6x32xi1>
    %204 = vector.broadcast %cst_116 : f32 to vector<6x32xf32>
    %205 = arith.select %203, %204, %154 : vector<6x32xi1>, vector<6x32xf32>
    %cst_117 = arith.constant dense<0xFF800000> : vector<32xf32>
    %206 = vector.multi_reduction <maximumf>, %205, %cst_117 [0] : vector<6x32xf32> to vector<32xf32>
    %207 = vector.shape_cast %206 : vector<32xf32> to vector<1x32xf32>
    %c5_i32_118 = arith.constant 5 : i32
    %208 = vector.broadcast %c5_i32_118 : i32 to vector<6x1xi32>
    %209 = arith.cmpi eq, %0, %208 : vector<6x1xi32>
    %cst_119 = arith.constant 0xFF800000 : f32
    %210 = vector.shape_cast %209 : vector<6x1xi1> to vector<6x1xi1>
    %211 = vector.broadcast %210 : vector<6x1xi1> to vector<6x32xi1>
    %212 = vector.broadcast %cst_119 : f32 to vector<6x32xf32>
    %213 = arith.select %211, %212, %154 : vector<6x32xi1>, vector<6x32xf32>
    %cst_120 = arith.constant dense<0xFF800000> : vector<32xf32>
    %214 = vector.multi_reduction <maximumf>, %213, %cst_120 [0] : vector<6x32xf32> to vector<32xf32>
    %215 = vector.shape_cast %214 : vector<32xf32> to vector<1x32xf32>
    %216 = tpu.concatenate %175, %183, %191, %199, %207, %215 in 0 : vector<1x32xf32>, vector<1x32xf32>, vector<1x32xf32>, vector<1x32xf32>, vector<1x32xf32>, vector<1x32xf32> -> vector<6x32xf32>
    %c0_121 = arith.constant 0 : index
    %c0_122 = arith.constant 0 : index
    %217 = vector.load %arg5[%c0_121, %c0_122] : memref<96x32xf32, #tpu.memory_space<vmem>>, vector<32x32xf32>
    %cst_123 = arith.constant dense<0.000000e+00> : vector<6x32xf32>
    %218 = tpu.matmul %154, %217, %cst_123 {dimension_numbers = #tpu.dot_dimension_numbers<[1], [0], [0], [1], [0, 0, 1, 1], [], []>} : vector<6x32xf32>, vector<32x32xf32>, vector<6x32xf32> -> vector<6x32xf32>
    %c32_124 = arith.constant 32 : index
    %c0_125 = arith.constant 0 : index
    %219 = vector.load %arg5[%c32_124, %c0_125] : memref<96x32xf32, #tpu.memory_space<vmem>>, vector<32x32xf32>
    %cst_126 = arith.constant dense<0.000000e+00> : vector<6x32xf32>
    %220 = tpu.matmul %216, %219, %cst_126 {dimension_numbers = #tpu.dot_dimension_numbers<[1], [0], [0], [1], [0, 0, 1, 1], [], []>} : vector<6x32xf32>, vector<32x32xf32>, vector<6x32xf32> -> vector<6x32xf32>
    %221 = arith.addf %218, %220 : vector<6x32xf32>
    %c64_127 = arith.constant 64 : index
    %c0_128 = arith.constant 0 : index
    %222 = vector.load %arg5[%c64_127, %c0_128] : memref<96x32xf32, #tpu.memory_space<vmem>>, vector<32x32xf32>
    %cst_129 = arith.constant dense<0.000000e+00> : vector<6x32xf32>
    %223 = tpu.matmul %160, %222, %cst_129 {dimension_numbers = #tpu.dot_dimension_numbers<[1], [0], [0], [1], [0, 0, 1, 1], [], []>} : vector<6x32xf32>, vector<32x32xf32>, vector<6x32xf32> -> vector<6x32xf32>
    %224 = arith.addf %221, %223 : vector<6x32xf32>
    %c0_130 = arith.constant 0 : index
    %c0_131 = arith.constant 0 : index
    %225 = vector.load %arg6[%c0_130, %c0_131] : memref<1x32xf32, #tpu.memory_space<vmem>>, vector<1x32xf32>
    %226 = vector.broadcast %225 : vector<1x32xf32> to vector<6x32xf32>
    %227 = arith.addf %224, %226 : vector<6x32xf32>
    %cst_132 = arith.constant 0.000000e+00 : f32
    %228 = vector.broadcast %cst_132 : f32 to vector<6x32xf32>
    %229 = arith.maximumf %227, %228 : vector<6x32xf32>
    %c0_133 = arith.constant 0 : index
    %c0_134 = arith.constant 0 : index
    %230 = vector.load %arg7[%c0_133, %c0_134] : memref<32x16xf32, #tpu.memory_space<vmem>>, vector<32x16xf32>
    %cst_135 = arith.constant dense<0.000000e+00> : vector<6x16xf32>
    %231 = tpu.matmul %229, %230, %cst_135 {dimension_numbers = #tpu.dot_dimension_numbers<[1], [0], [0], [1], [0, 0, 1, 1], [], []>} : vector<6x32xf32>, vector<32x16xf32>, vector<6x16xf32> -> vector<6x16xf32>
    %c0_136 = arith.constant 0 : index
    %c0_137 = arith.constant 0 : index
    %232 = vector.load %arg8[%c0_136, %c0_137] : memref<1x16xf32, #tpu.memory_space<vmem>>, vector<1x16xf32>
    %233 = vector.broadcast %232 : vector<1x16xf32> to vector<6x16xf32>
    %234 = arith.addf %231, %233 : vector<6x16xf32>
    %c0_138 = arith.constant 0 : index
    %c0_139 = arith.constant 0 : index
    %235 = vector.load %arg9[%c0_138, %c0_139] : memref<64x32xf32, #tpu.memory_space<vmem>>, vector<32x32xf32>
    %cst_140 = arith.constant dense<0.000000e+00> : vector<4x32xf32>
    %236 = tpu.matmul %153, %235, %cst_140 {dimension_numbers = #tpu.dot_dimension_numbers<[1], [0], [0], [1], [0, 0, 1, 1], [], []>} : vector<4x32xf32>, vector<32x32xf32>, vector<4x32xf32> -> vector<4x32xf32>
    %c32_141 = arith.constant 32 : index
    %c0_142 = arith.constant 0 : index
    %237 = vector.load %arg9[%c32_141, %c0_142] : memref<64x32xf32, #tpu.memory_space<vmem>>, vector<32x32xf32>
    %cst_143 = arith.constant dense<0.000000e+00> : vector<4x32xf32>
    %238 = tpu.matmul %163, %237, %cst_143 {dimension_numbers = #tpu.dot_dimension_numbers<[1], [0], [0], [1], [0, 0, 1, 1], [], []>} : vector<4x32xf32>, vector<32x32xf32>, vector<4x32xf32> -> vector<4x32xf32>
    %239 = arith.addf %236, %238 : vector<4x32xf32>
    %c0_144 = arith.constant 0 : index
    %c0_145 = arith.constant 0 : index
    %240 = vector.load %arg10[%c0_144, %c0_145] : memref<1x32xf32, #tpu.memory_space<vmem>>, vector<1x32xf32>
    %241 = vector.broadcast %240 : vector<1x32xf32> to vector<4x32xf32>
    %242 = arith.addf %239, %241 : vector<4x32xf32>
    %cst_146 = arith.constant 0.000000e+00 : f32
    %243 = vector.broadcast %cst_146 : f32 to vector<4x32xf32>
    %244 = arith.maximumf %242, %243 : vector<4x32xf32>
    %c0_147 = arith.constant 0 : index
    %c0_148 = arith.constant 0 : index
    %245 = vector.load %arg11[%c0_147, %c0_148] : memref<32x16xf32, #tpu.memory_space<vmem>>, vector<32x16xf32>
    %cst_149 = arith.constant dense<0.000000e+00> : vector<4x16xf32>
    %246 = tpu.matmul %244, %245, %cst_149 {dimension_numbers = #tpu.dot_dimension_numbers<[1], [0], [0], [1], [0, 0, 1, 1], [], []>} : vector<4x32xf32>, vector<32x16xf32>, vector<4x16xf32> -> vector<4x16xf32>
    %c0_150 = arith.constant 0 : index
    %c0_151 = arith.constant 0 : index
    %247 = vector.load %arg12[%c0_150, %c0_151] : memref<1x16xf32, #tpu.memory_space<vmem>>, vector<1x16xf32>
    %248 = vector.broadcast %247 : vector<1x16xf32> to vector<4x16xf32>
    %249 = arith.addf %246, %248 : vector<4x16xf32>
    %c0_152 = arith.constant 0 : index
    %c0_153 = arith.constant 0 : index
    %250 = vector.load %arg13[%c0_152, %c0_153] : memref<64x32xf32, #tpu.memory_space<vmem>>, vector<32x32xf32>
    %cst_154 = arith.constant dense<0.000000e+00> : vector<1x32xf32>
    %251 = tpu.matmul %167, %250, %cst_154 {dimension_numbers = #tpu.dot_dimension_numbers<[1], [0], [0], [1], [0, 0, 1, 1], [], []>} : vector<1x32xf32>, vector<32x32xf32>, vector<1x32xf32> -> vector<1x32xf32>
    %c32_155 = arith.constant 32 : index
    %c0_156 = arith.constant 0 : index
    %252 = vector.load %arg13[%c32_155, %c0_156] : memref<64x32xf32, #tpu.memory_space<vmem>>, vector<32x32xf32>
    %cst_157 = arith.constant dense<0.000000e+00> : vector<1x32xf32>
    %253 = tpu.matmul %155, %252, %cst_157 {dimension_numbers = #tpu.dot_dimension_numbers<[1], [0], [0], [1], [0, 0, 1, 1], [], []>} : vector<1x32xf32>, vector<32x32xf32>, vector<1x32xf32> -> vector<1x32xf32>
    %254 = arith.addf %251, %253 : vector<1x32xf32>
    %c0_158 = arith.constant 0 : index
    %c0_159 = arith.constant 0 : index
    %255 = vector.load %arg14[%c0_158, %c0_159] : memref<1x32xf32, #tpu.memory_space<vmem>>, vector<1x32xf32>
    %256 = arith.addf %254, %255 : vector<1x32xf32>
    %cst_160 = arith.constant 0.000000e+00 : f32
    %257 = vector.broadcast %cst_160 : f32 to vector<1x32xf32>
    %258 = arith.maximumf %256, %257 : vector<1x32xf32>
    %c0_161 = arith.constant 0 : index
    %c0_162 = arith.constant 0 : index
    %259 = vector.load %arg15[%c0_161, %c0_162] : memref<32x16xf32, #tpu.memory_space<vmem>>, vector<32x16xf32>
    %cst_163 = arith.constant dense<0.000000e+00> : vector<1x16xf32>
    %260 = tpu.matmul %258, %259, %cst_163 {dimension_numbers = #tpu.dot_dimension_numbers<[1], [0], [0], [1], [0, 0, 1, 1], [], []>} : vector<1x32xf32>, vector<32x16xf32>, vector<1x16xf32> -> vector<1x16xf32>
    %c0_164 = arith.constant 0 : index
    %c0_165 = arith.constant 0 : index
    %261 = vector.load %arg16[%c0_164, %c0_165] : memref<1x16xf32, #tpu.memory_space<vmem>>, vector<1x16xf32>
    %262 = arith.addf %260, %261 : vector<1x16xf32>
    %263 = vector.broadcast %262 : vector<1x16xf32> to vector<6x16xf32>
    %264 = arith.subf %263, %234 : vector<6x16xf32>
    %265 = math.absf %264 : vector<6x16xf32>
    %266 = vector.broadcast %155 : vector<1x32xf32> to vector<6x32xf32>
    %267 = arith.subf %266, %154 : vector<6x32xf32>
    %268 = math.absf %267 : vector<6x32xf32>
    %c0_166 = arith.constant 0 : index
    %c0_167 = arith.constant 0 : index
    %269 = vector.load %arg17[%c0_166, %c0_167] : memref<48x16xf32, #tpu.memory_space<vmem>>, vector<16x16xf32>
    %cst_168 = arith.constant dense<0.000000e+00> : vector<6x16xf32>
    %270 = tpu.matmul %265, %269, %cst_168 {dimension_numbers = #tpu.dot_dimension_numbers<[1], [0], [0], [1], [0, 0, 1, 1], [], []>} : vector<6x16xf32>, vector<16x16xf32>, vector<6x16xf32> -> vector<6x16xf32>
    %c16_169 = arith.constant 16 : index
    %c0_170 = arith.constant 0 : index
    %271 = vector.load %arg17[%c16_169, %c0_170] : memref<48x16xf32, #tpu.memory_space<vmem>>, vector<32x16xf32>
    %cst_171 = arith.constant dense<0.000000e+00> : vector<6x16xf32>
    %272 = tpu.matmul %268, %271, %cst_171 {dimension_numbers = #tpu.dot_dimension_numbers<[1], [0], [0], [1], [0, 0, 1, 1], [], []>} : vector<6x32xf32>, vector<32x16xf32>, vector<6x16xf32> -> vector<6x16xf32>
    %273 = arith.addf %270, %272 : vector<6x16xf32>
    %c0_172 = arith.constant 0 : index
    %c0_173 = arith.constant 0 : index
    %274 = vector.load %arg18[%c0_172, %c0_173] : memref<1x16xf32, #tpu.memory_space<vmem>>, vector<1x16xf32>
    %275 = vector.broadcast %274 : vector<1x16xf32> to vector<6x16xf32>
    %276 = arith.addf %273, %275 : vector<6x16xf32>
    %cst_174 = arith.constant 0.000000e+00 : f32
    %277 = vector.broadcast %cst_174 : f32 to vector<6x16xf32>
    %278 = arith.maximumf %276, %277 : vector<6x16xf32>
    %c0_175 = arith.constant 0 : index
    %c0_176 = arith.constant 0 : index
    %279 = vector.load %arg19[%c0_175, %c0_176] : memref<16x1xf32, #tpu.memory_space<vmem>>, vector<16x1xf32>
    %cst_177 = arith.constant dense<0.000000e+00> : vector<6x1xf32>
    %280 = tpu.matmul %278, %279, %cst_177 {dimension_numbers = #tpu.dot_dimension_numbers<[1], [0], [0], [1], [0, 0, 1, 1], [], []>} : vector<6x16xf32>, vector<16x1xf32>, vector<6x1xf32> -> vector<6x1xf32>
    %c0_178 = arith.constant 0 : index
    %c0_179 = arith.constant 0 : index
    %281 = vector.load %arg20[%c0_178, %c0_179] : memref<1x1xf32, #tpu.memory_space<vmem>>, vector<1x1xf32>
    %282 = vector.broadcast %281 : vector<1x1xf32> to vector<6x1xf32>
    %283 = arith.addf %280, %282 : vector<6x1xf32>
    %cst_180 = arith.constant dense<0xFF800000> : vector<1xf32>
    %284 = vector.multi_reduction <maximumf>, %283, %cst_180 [0] : vector<6x1xf32> to vector<1xf32>
    %285 = vector.shape_cast %284 : vector<1xf32> to vector<1x1xf32>
    %286 = vector.broadcast %285 : vector<1x1xf32> to vector<6x1xf32>
    %287 = arith.subf %283, %286 : vector<6x1xf32>
    %288 = math.exp %287 : vector<6x1xf32>
    %cst_181 = arith.constant dense<0.000000e+00> : vector<1xf32>
    %289 = vector.multi_reduction <add>, %288, %cst_181 [0] : vector<6x1xf32> to vector<1xf32>
    %290 = vector.shape_cast %289 : vector<1xf32> to vector<1x1xf32>
    %291 = vector.broadcast %290 : vector<1x1xf32> to vector<6x1xf32>
    %292 = arith.divf %288, %291 : vector<6x1xf32>
    %c1_182 = arith.constant 1 : index
    %c0_183 = arith.constant 0 : index
    %c0_184 = arith.constant 0 : index
    %293 = vector.load %arg22[%c1_182, %c0_183, %c0_184] : memref<2x6x1xf32, #tpu.memory_space<vmem>>, vector<1x6x1xf32>
    %294 = vector.shape_cast %293 : vector<1x6x1xf32> to vector<6x1xf32>
    %295 = vector.shape_cast %292 : vector<6x1xf32> to vector<1x6x1xf32>
    tpu.vector_store %arg22[%c1_182, %c0_183, %c0_184], %295 {strides = array<i32>} : memref<2x6x1xf32, #tpu.memory_space<vmem>>, vector<1x6x1xf32>,
    %296 = tpu.concatenate %249, %234, %262 in 0 : vector<4x16xf32>, vector<6x16xf32>, vector<1x16xf32> -> vector<11x16xf32>
    %297 = tpu.concatenate %296, %152 in 1 : vector<11x16xf32>, vector<11x32xf32> -> vector<11x48xf32>
    %c1_185 = arith.constant 1 : index
    %c0_186 = arith.constant 0 : index
    %c0_187 = arith.constant 0 : index
    %298 = vector.load %arg21[%c1_185, %c0_186, %c0_187] : memref<2x11x48xf32, #tpu.memory_space<vmem>>, vector<1x11x48xf32>
    %299 = vector.shape_cast %298 : vector<1x11x48xf32> to vector<11x48xf32>
    %300 = vector.shape_cast %297 : vector<11x48xf32> to vector<1x11x48xf32>
    tpu.vector_store %arg21[%c1_185, %c0_186, %c0_187], %300 {strides = array<i32>} : memref<2x11x48xf32, #tpu.memory_space<vmem>>, vector<1x11x48xf32>,
    return
  }
  func.func @transform_0(%arg0: i32) -> (i32, i32, i32) {
    %c0_i32 = arith.constant 0 : i32
    %c0_i32_0 = arith.constant 0 : i32
    %c0_i32_1 = arith.constant 0 : i32
    %c0_i32_2 = arith.constant 0 : i32
    return %c0_i32, %c0_i32_0, %c0_i32_1 : i32, i32, i32
  }
  func.func @transform_1(%arg0: i32) -> (i32, i32, i32) {
    %c0_i32 = arith.constant 0 : i32
    %c0_i32_0 = arith.constant 0 : i32
    %c0_i32_1 = arith.constant 0 : i32
    %c0_i32_2 = arith.constant 0 : i32
    return %c0_i32, %c0_i32_0, %c0_i32_1 : i32, i32, i32
  }
  func.func @transform_2(%arg0: i32) -> (i32, i32, i32) {
    %c0_i32 = arith.constant 0 : i32
    %c0_i32_0 = arith.constant 0 : i32
    %c0_i32_1 = arith.constant 0 : i32
    %c0_i32_2 = arith.constant 0 : i32
    return %c0_i32, %c0_i32_0, %c0_i32_1 : i32, i32, i32
  }
  func.func @transform_3(%arg0: i32) -> (i32, i32, i32) {
    %c0_i32 = arith.constant 0 : i32
    %c0_i32_0 = arith.constant 0 : i32
    %c0_i32_1 = arith.constant 0 : i32
    %c0_i32_2 = arith.constant 0 : i32
    return %c0_i32, %c0_i32_0, %c0_i32_1 : i32, i32, i32
  }
  func.func @transform_4(%arg0: i32) -> (i32, i32) {
    %c0_i32 = arith.constant 0 : i32
    %c0_i32_0 = arith.constant 0 : i32
    %c0_i32_1 = arith.constant 0 : i32
    return %c0_i32, %c0_i32_0 : i32, i32
  }
  func.func @transform_5(%arg0: i32) -> (i32, i32) {
    %c0_i32 = arith.constant 0 : i32
    %c0_i32_0 = arith.constant 0 : i32
    %c0_i32_1 = arith.constant 0 : i32
    return %c0_i32, %c0_i32_0 : i32, i32
  }
  func.func @transform_6(%arg0: i32) -> (i32, i32) {
    %c0_i32 = arith.constant 0 : i32
    %c0_i32_0 = arith.constant 0 : i32
    %c0_i32_1 = arith.constant 0 : i32
    return %c0_i32, %c0_i32_0 : i32, i32
  }
  func.func @transform_7(%arg0: i32) -> (i32, i32) {
    %c0_i32 = arith.constant 0 : i32
    %c0_i32_0 = arith.constant 0 : i32
    %c0_i32_1 = arith.constant 0 : i32
    return %c0_i32, %c0_i32_0 : i32, i32
  }
  func.func @transform_8(%arg0: i32) -> (i32, i32) {
    %c0_i32 = arith.constant 0 : i32
    %c0_i32_0 = arith.constant 0 : i32
    %c0_i32_1 = arith.constant 0 : i32
    return %c0_i32, %c0_i32_0 : i32, i32
  }
  func.func @transform_9(%arg0: i32) -> (i32, i32) {
    %c0_i32 = arith.constant 0 : i32
    %c0_i32_0 = arith.constant 0 : i32
    %c0_i32_1 = arith.constant 0 : i32
    return %c0_i32, %c0_i32_0 : i32, i32
  }
  func.func @transform_10(%arg0: i32) -> (i32, i32) {
    %c0_i32 = arith.constant 0 : i32
    %c0_i32_0 = arith.constant 0 : i32
    %c0_i32_1 = arith.constant 0 : i32
    return %c0_i32, %c0_i32_0 : i32, i32
  }
  func.func @transform_11(%arg0: i32) -> (i32, i32) {
    %c0_i32 = arith.constant 0 : i32
    %c0_i32_0 = arith.constant 0 : i32
    %c0_i32_1 = arith.constant 0 : i32
    return %c0_i32, %c0_i32_0 : i32, i32
  }
  func.func @transform_12(%arg0: i32) -> (i32, i32) {
    %c0_i32 = arith.constant 0 : i32
    %c0_i32_0 = arith.constant 0 : i32
    %c0_i32_1 = arith.constant 0 : i32
    return %c0_i32, %c0_i32_0 : i32, i32
  }
  func.func @transform_13(%arg0: i32) -> (i32, i32) {
    %c0_i32 = arith.constant 0 : i32
    %c0_i32_0 = arith.constant 0 : i32
    %c0_i32_1 = arith.constant 0 : i32
    return %c0_i32, %c0_i32_0 : i32, i32
  }
  func.func @transform_14(%arg0: i32) -> (i32, i32) {
    %c0_i32 = arith.constant 0 : i32
    %c0_i32_0 = arith.constant 0 : i32
    %c0_i32_1 = arith.constant 0 : i32
    return %c0_i32, %c0_i32_0 : i32, i32
  }
  func.func @transform_15(%arg0: i32) -> (i32, i32) {
    %c0_i32 = arith.constant 0 : i32
    %c0_i32_0 = arith.constant 0 : i32
    %c0_i32_1 = arith.constant 0 : i32
    return %c0_i32, %c0_i32_0 : i32, i32
  }
  func.func @transform_16(%arg0: i32) -> (i32, i32) {
    %c0_i32 = arith.constant 0 : i32
    %c0_i32_0 = arith.constant 0 : i32
    %c0_i32_1 = arith.constant 0 : i32
    return %c0_i32, %c0_i32_0 : i32, i32
  }
  func.func @transform_17(%arg0: i32) -> (i32, i32) {
    %c0_i32 = arith.constant 0 : i32
    %c0_i32_0 = arith.constant 0 : i32
    %c0_i32_1 = arith.constant 0 : i32
    return %c0_i32, %c0_i32_0 : i32, i32
  }
  func.func @transform_18(%arg0: i32) -> (i32, i32) {
    %c0_i32 = arith.constant 0 : i32
    %c0_i32_0 = arith.constant 0 : i32
    %c0_i32_1 = arith.constant 0 : i32
    return %c0_i32, %c0_i32_0 : i32, i32
  }
  func.func @transform_19(%arg0: i32) -> (i32, i32) {
    %c0_i32 = arith.constant 0 : i32
    %c0_i32_0 = arith.constant 0 : i32
    %c0_i32_1 = arith.constant 0 : i32
    return %c0_i32, %c0_i32_0 : i32, i32
  }
  func.func @transform_20(%arg0: i32) -> (i32, i32, i32) {
    %c0_i32 = arith.constant 0 : i32
    %c0_i32_0 = arith.constant 0 : i32
    %c0_i32_1 = arith.constant 0 : i32
    %c0_i32_2 = arith.constant 0 : i32
    return %c0_i32, %c0_i32_0, %c0_i32_1 : i32, i32, i32
  }
  func.func @transform_21(%arg0: i32) -> (i32, i32, i32) {
    %c0_i32 = arith.constant 0 : i32
    %c0_i32_0 = arith.constant 0 : i32
    %c0_i32_1 = arith.constant 0 : i32
    %c0_i32_2 = arith.constant 0 : i32
    return %c0_i32, %c0_i32_0, %c0_i32_1 : i32, i32, i32
  }
}

module attributes {stable_mosaic.version = 11 : i64} {
  func.func @_head_kernel(%arg0: i32, %arg1: memref<2x11x48xf32, #tpu.memory_space<vmem>>, %arg2: memref<2x11x11xf32, #tpu.memory_space<vmem>>, %arg3: memref<48x24xf32, #tpu.memory_space<vmem>>, %arg4: memref<1x24xf32, #tpu.memory_space<vmem>>, %arg5: memref<24x2xf32, #tpu.memory_space<vmem>>, %arg6: memref<1x2xf32, #tpu.memory_space<vmem>>, %arg7: memref<48x4xf32, #tpu.memory_space<vmem>>, %arg8: memref<1x4xf32, #tpu.memory_space<vmem>>, %arg9: memref<48x4xf32, #tpu.memory_space<vmem>>, %arg10: memref<1x4xf32, #tpu.memory_space<vmem>>, %arg11: memref<48x4xf32, #tpu.memory_space<vmem>>, %arg12: memref<1x4xf32, #tpu.memory_space<vmem>>, %arg13: memref<2x2xf32, #tpu.memory_space<vmem>>, %arg14: memref<2x7x4xf32, #tpu.memory_space<vmem>>, %arg15: memref<2x4x4xf32, #tpu.memory_space<vmem>>) attributes {dimension_semantics = [#tpu.dimension_semantics<arbitrary>], iteration_bounds = array<i64: 1>, scalar_prefetch = 0 : i64, scratch_operands = 0 : i64, tpu.core_type = #tpu.core_type<tc>, window_params = [{pipeline_mode = #tpu.pipeline_mode<synchronous>, transform_indices = @transform_0, window_bounds = array<i64: 2, 11, 48>}, {pipeline_mode = #tpu.pipeline_mode<synchronous>, transform_indices = @transform_1, window_bounds = array<i64: 2, 11, 11>}, {pipeline_mode = #tpu.pipeline_mode<synchronous>, transform_indices = @transform_2, window_bounds = array<i64: 48, 24>}, {pipeline_mode = #tpu.pipeline_mode<synchronous>, transform_indices = @transform_3, window_bounds = array<i64: 1, 24>}, {pipeline_mode = #tpu.pipeline_mode<synchronous>, transform_indices = @transform_4, window_bounds = array<i64: 24, 2>}, {pipeline_mode = #tpu.pipeline_mode<synchronous>, transform_indices = @transform_5, window_bounds = array<i64: 1, 2>}, {pipeline_mode = #tpu.pipeline_mode<synchronous>, transform_indices = @transform_6, window_bounds = array<i64: 48, 4>}, {pipeline_mode = #tpu.pipeline_mode<synchronous>, transform_indices = @transform_7, window_bounds = array<i64: 1, 4>}, {pipeline_mode = #tpu.pipeline_mode<synchronous>, transform_indices = @transform_8, window_bounds = array<i64: 48, 4>}, {pipeline_mode = #tpu.pipeline_mode<synchronous>, transform_indices = @transform_9, window_bounds = array<i64: 1, 4>}, {pipeline_mode = #tpu.pipeline_mode<synchronous>, transform_indices = @transform_10, window_bounds = array<i64: 48, 4>}, {pipeline_mode = #tpu.pipeline_mode<synchronous>, transform_indices = @transform_11, window_bounds = array<i64: 1, 4>}, {pipeline_mode = #tpu.pipeline_mode<synchronous>, transform_indices = @transform_12, window_bounds = array<i64: 2, 2>}, {pipeline_mode = #tpu.pipeline_mode<synchronous>, transform_indices = @transform_13, window_bounds = array<i64: 2, 7, 4>}, {pipeline_mode = #tpu.pipeline_mode<synchronous>, transform_indices = @transform_14, window_bounds = array<i64: 2, 4, 4>}]} {
    %c0 = arith.constant 0 : index
    %c0_0 = arith.constant 0 : index
    %c0_1 = arith.constant 0 : index
    %0 = vector.load %arg1[%c0, %c0_0, %c0_1] : memref<2x11x48xf32, #tpu.memory_space<vmem>>, vector<1x11x48xf32>
    %1 = vector.shape_cast %0 : vector<1x11x48xf32> to vector<11x48xf32>
    %c0_2 = arith.constant 0 : index
    %c0_3 = arith.constant 0 : index
    %c0_4 = arith.constant 0 : index
    %2 = vector.load %arg2[%c0_2, %c0_3, %c0_4] : memref<2x11x11xf32, #tpu.memory_space<vmem>>, vector<1x11x11xf32>
    %3 = vector.shape_cast %2 : vector<1x11x11xf32> to vector<11x11xf32>
    %cst = arith.constant dense<0.000000e+00> : vector<11x48xf32>
    %4 = tpu.matmul %3, %1, %cst {dimension_numbers = #tpu.dot_dimension_numbers<[1], [0], [0], [1], [0, 0, 1, 1], [], []>} : vector<11x11xf32>, vector<11x48xf32>, vector<11x48xf32> -> vector<11x48xf32>
    %cst_5 = arith.constant dense<0.000000e+00> : vector<48xf32>
    %5 = vector.multi_reduction <add>, %4, %cst_5 [0] : vector<11x48xf32> to vector<48xf32>
    %6 = vector.shape_cast %5 : vector<48xf32> to vector<1x48xf32>
    %cst_6 = arith.constant 1.100000e+01 : f32
    %7 = vector.broadcast %cst_6 : f32 to vector<1x48xf32>
    %8 = arith.divf %6, %7 : vector<1x48xf32>
    %c0_7 = arith.constant 0 : index
    %c0_8 = arith.constant 0 : index
    %9 = vector.load %arg3[%c0_7, %c0_8] : memref<48x24xf32, #tpu.memory_space<vmem>>, vector<48x24xf32>
    %cst_9 = arith.constant dense<0.000000e+00> : vector<1x24xf32>
    %10 = tpu.matmul %8, %9, %cst_9 {dimension_numbers = #tpu.dot_dimension_numbers<[1], [0], [0], [1], [0, 0, 1, 1], [], []>} : vector<1x48xf32>, vector<48x24xf32>, vector<1x24xf32> -> vector<1x24xf32>
    %c0_10 = arith.constant 0 : index
    %c0_11 = arith.constant 0 : index
    %11 = vector.load %arg4[%c0_10, %c0_11] : memref<1x24xf32, #tpu.memory_space<vmem>>, vector<1x24xf32>
    %12 = arith.addf %10, %11 : vector<1x24xf32>
    %cst_12 = arith.constant 0.000000e+00 : f32
    %13 = vector.broadcast %cst_12 : f32 to vector<1x24xf32>
    %14 = arith.maximumf %12, %13 : vector<1x24xf32>
    %c0_13 = arith.constant 0 : index
    %c0_14 = arith.constant 0 : index
    %15 = vector.load %arg5[%c0_13, %c0_14] : memref<24x2xf32, #tpu.memory_space<vmem>>, vector<24x2xf32>
    %cst_15 = arith.constant dense<0.000000e+00> : vector<1x2xf32>
    %16 = tpu.matmul %14, %15, %cst_15 {dimension_numbers = #tpu.dot_dimension_numbers<[1], [0], [0], [1], [0, 0, 1, 1], [], []>} : vector<1x24xf32>, vector<24x2xf32>, vector<1x2xf32> -> vector<1x2xf32>
    %c0_16 = arith.constant 0 : index
    %c0_17 = arith.constant 0 : index
    %17 = vector.load %arg6[%c0_16, %c0_17] : memref<1x2xf32, #tpu.memory_space<vmem>>, vector<1x2xf32>
    %18 = arith.addf %16, %17 : vector<1x2xf32>
    %cst_18 = arith.constant dense<0xFF800000> : vector<1xf32>
    %19 = vector.multi_reduction <maximumf>, %18, %cst_18 [1] : vector<1x2xf32> to vector<1xf32>
    %20 = vector.shape_cast %19 : vector<1xf32> to vector<1x1xf32>
    %21 = vector.broadcast %20 : vector<1x1xf32> to vector<1x2xf32>
    %22 = arith.subf %18, %21 : vector<1x2xf32>
    %23 = math.exp %22 : vector<1x2xf32>
    %cst_19 = arith.constant dense<0.000000e+00> : vector<1xf32>
    %24 = vector.multi_reduction <add>, %23, %cst_19 [1] : vector<1x2xf32> to vector<1xf32>
    %25 = vector.shape_cast %24 : vector<1xf32> to vector<1x1xf32>
    %26 = vector.broadcast %25 : vector<1x1xf32> to vector<1x2xf32>
    %27 = arith.divf %23, %26 : vector<1x2xf32>
    %c0_20 = arith.constant 0 : index
    %c0_21 = arith.constant 0 : index
    %28 = vector.load %arg13[%c0_20, %c0_21] : memref<2x2xf32, #tpu.memory_space<vmem>>, vector<1x2xf32>
    tpu.vector_store %arg13[%c0_20, %c0_21], %27 {strides = array<i32>} : memref<2x2xf32, #tpu.memory_space<vmem>>, vector<1x2xf32>,
    %29 = vector.extract_strided_slice %1 {offsets = [0, 0], sizes = [4, 48], strides = [1, 1]} : vector<11x48xf32> to vector<4x48xf32>
    %30 = vector.extract_strided_slice %1 {offsets = [4, 0], sizes = [6, 48], strides = [1, 1]} : vector<11x48xf32> to vector<6x48xf32>
    %31 = vector.extract_strided_slice %1 {offsets = [10, 0], sizes = [1, 48], strides = [1, 1]} : vector<11x48xf32> to vector<1x48xf32>
    %c0_22 = arith.constant 0 : index
    %c0_23 = arith.constant 0 : index
    %32 = vector.load %arg7[%c0_22, %c0_23] : memref<48x4xf32, #tpu.memory_space<vmem>>, vector<48x4xf32>
    %cst_24 = arith.constant dense<0.000000e+00> : vector<6x4xf32>
    %33 = tpu.matmul %30, %32, %cst_24 {dimension_numbers = #tpu.dot_dimension_numbers<[1], [0], [0], [1], [0, 0, 1, 1], [], []>} : vector<6x48xf32>, vector<48x4xf32>, vector<6x4xf32> -> vector<6x4xf32>
    %c0_25 = arith.constant 0 : index
    %c0_26 = arith.constant 0 : index
    %34 = vector.load %arg8[%c0_25, %c0_26] : memref<1x4xf32, #tpu.memory_space<vmem>>, vector<1x4xf32>
    %35 = vector.broadcast %34 : vector<1x4xf32> to vector<6x4xf32>
    %36 = arith.addf %33, %35 : vector<6x4xf32>
    %c0_27 = arith.constant 0 : index
    %c0_28 = arith.constant 0 : index
    %37 = vector.load %arg11[%c0_27, %c0_28] : memref<48x4xf32, #tpu.memory_space<vmem>>, vector<48x4xf32>
    %cst_29 = arith.constant dense<0.000000e+00> : vector<1x4xf32>
    %38 = tpu.matmul %31, %37, %cst_29 {dimension_numbers = #tpu.dot_dimension_numbers<[1], [0], [0], [1], [0, 0, 1, 1], [], []>} : vector<1x48xf32>, vector<48x4xf32>, vector<1x4xf32> -> vector<1x4xf32>
    %c0_30 = arith.constant 0 : index
    %c0_31 = arith.constant 0 : index
    %39 = vector.load %arg12[%c0_30, %c0_31] : memref<1x4xf32, #tpu.memory_space<vmem>>, vector<1x4xf32>
    %40 = arith.addf %38, %39 : vector<1x4xf32>
    %41 = tpu.concatenate %40, %36 in 0 : vector<1x4xf32>, vector<6x4xf32> -> vector<7x4xf32>
    %42 = arith.mulf %41, %41 : vector<7x4xf32>
    %cst_32 = arith.constant dense<0.000000e+00> : vector<7xf32>
    %43 = vector.multi_reduction <add>, %42, %cst_32 [1] : vector<7x4xf32> to vector<7xf32>
    %44 = vector.shape_cast %43 : vector<7xf32> to vector<7x1xf32>
    %cst_33 = arith.constant dense<0.000000e+00> : vector<1xf32>
    %45 = vector.multi_reduction <add>, %44, %cst_33 [0] : vector<7x1xf32> to vector<1xf32>
    %46 = vector.shape_cast %45 : vector<1xf32> to vector<1x1xf32>
    %47 = math.sqrt %46 : vector<1x1xf32>
    %cst_34 = arith.constant 9.99999996E-13 : f32
    %48 = vector.broadcast %cst_34 : f32 to vector<1x1xf32>
    %49 = arith.maximumf %47, %48 : vector<1x1xf32>
    %50 = vector.broadcast %49 : vector<1x1xf32> to vector<7x4xf32>
    %51 = arith.divf %41, %50 : vector<7x4xf32>
    %cst_35 = arith.constant 2.000000e+00 : f32
    %52 = vector.broadcast %cst_35 : f32 to vector<7x4xf32>
    %53 = arith.mulf %51, %52 : vector<7x4xf32>
    %54 = vector.extract_strided_slice %27 {offsets = [0, 0], sizes = [1, 1], strides = [1, 1]} : vector<1x2xf32> to vector<1x1xf32>
    %55 = math.sqrt %54 : vector<1x1xf32>
    %56 = vector.broadcast %55 : vector<1x1xf32> to vector<7x4xf32>
    %57 = arith.mulf %53, %56 : vector<7x4xf32>
    %c0_36 = arith.constant 0 : index
    %c0_37 = arith.constant 0 : index
    %c0_38 = arith.constant 0 : index
    %58 = vector.load %arg14[%c0_36, %c0_37, %c0_38] : memref<2x7x4xf32, #tpu.memory_space<vmem>>, vector<1x7x4xf32>
    %59 = vector.shape_cast %58 : vector<1x7x4xf32> to vector<7x4xf32>
    %60 = vector.shape_cast %57 : vector<7x4xf32> to vector<1x7x4xf32>
    tpu.vector_store %arg14[%c0_36, %c0_37, %c0_38], %60 {strides = array<i32>} : memref<2x7x4xf32, #tpu.memory_space<vmem>>, vector<1x7x4xf32>,
    %c0_39 = arith.constant 0 : index
    %c0_40 = arith.constant 0 : index
    %61 = vector.load %arg9[%c0_39, %c0_40] : memref<48x4xf32, #tpu.memory_space<vmem>>, vector<48x4xf32>
    %cst_41 = arith.constant dense<0.000000e+00> : vector<4x4xf32>
    %62 = tpu.matmul %29, %61, %cst_41 {dimension_numbers = #tpu.dot_dimension_numbers<[1], [0], [0], [1], [0, 0, 1, 1], [], []>} : vector<4x48xf32>, vector<48x4xf32>, vector<4x4xf32> -> vector<4x4xf32>
    %c0_42 = arith.constant 0 : index
    %c0_43 = arith.constant 0 : index
    %63 = vector.load %arg10[%c0_42, %c0_43] : memref<1x4xf32, #tpu.memory_space<vmem>>, vector<1x4xf32>
    %64 = vector.broadcast %63 : vector<1x4xf32> to vector<4x4xf32>
    %65 = arith.addf %62, %64 : vector<4x4xf32>
    %66 = vector.extract_strided_slice %65 {offsets = [0, 0], sizes = [4, 2], strides = [1, 1]} : vector<4x4xf32> to vector<4x2xf32>
    %67 = vector.extract_strided_slice %65 {offsets = [0, 2], sizes = [4, 2], strides = [1, 1]} : vector<4x4xf32> to vector<4x2xf32>
    %68 = arith.mulf %66, %66 : vector<4x2xf32>
    %69 = arith.mulf %67, %67 : vector<4x2xf32>
    %70 = arith.addf %68, %69 : vector<4x2xf32>
    %71 = math.sqrt %70 : vector<4x2xf32>
    %cst_44 = arith.constant 9.99999996E-13 : f32
    %72 = vector.broadcast %cst_44 : f32 to vector<4x2xf32>
    %73 = arith.maximumf %71, %72 : vector<4x2xf32>
    %74 = arith.divf %66, %73 : vector<4x2xf32>
    %75 = arith.divf %67, %73 : vector<4x2xf32>
    %76 = tpu.concatenate %74, %75 in 1 : vector<4x2xf32>, vector<4x2xf32> -> vector<4x4xf32>
    %c0_45 = arith.constant 0 : index
    %c0_46 = arith.constant 0 : index
    %c0_47 = arith.constant 0 : index
    %77 = vector.load %arg15[%c0_45, %c0_46, %c0_47] : memref<2x4x4xf32, #tpu.memory_space<vmem>>, vector<1x4x4xf32>
    %78 = vector.shape_cast %77 : vector<1x4x4xf32> to vector<4x4xf32>
    %79 = vector.shape_cast %76 : vector<4x4xf32> to vector<1x4x4xf32>
    tpu.vector_store %arg15[%c0_45, %c0_46, %c0_47], %79 {strides = array<i32>} : memref<2x4x4xf32, #tpu.memory_space<vmem>>, vector<1x4x4xf32>,
    %c1 = arith.constant 1 : index
    %c0_48 = arith.constant 0 : index
    %c0_49 = arith.constant 0 : index
    %80 = vector.load %arg1[%c1, %c0_48, %c0_49] : memref<2x11x48xf32, #tpu.memory_space<vmem>>, vector<1x11x48xf32>
    %81 = vector.shape_cast %80 : vector<1x11x48xf32> to vector<11x48xf32>
    %c1_50 = arith.constant 1 : index
    %c0_51 = arith.constant 0 : index
    %c0_52 = arith.constant 0 : index
    %82 = vector.load %arg2[%c1_50, %c0_51, %c0_52] : memref<2x11x11xf32, #tpu.memory_space<vmem>>, vector<1x11x11xf32>
    %83 = vector.shape_cast %82 : vector<1x11x11xf32> to vector<11x11xf32>
    %cst_53 = arith.constant dense<0.000000e+00> : vector<11x48xf32>
    %84 = tpu.matmul %83, %81, %cst_53 {dimension_numbers = #tpu.dot_dimension_numbers<[1], [0], [0], [1], [0, 0, 1, 1], [], []>} : vector<11x11xf32>, vector<11x48xf32>, vector<11x48xf32> -> vector<11x48xf32>
    %cst_54 = arith.constant dense<0.000000e+00> : vector<48xf32>
    %85 = vector.multi_reduction <add>, %84, %cst_54 [0] : vector<11x48xf32> to vector<48xf32>
    %86 = vector.shape_cast %85 : vector<48xf32> to vector<1x48xf32>
    %cst_55 = arith.constant 1.100000e+01 : f32
    %87 = vector.broadcast %cst_55 : f32 to vector<1x48xf32>
    %88 = arith.divf %86, %87 : vector<1x48xf32>
    %c0_56 = arith.constant 0 : index
    %c0_57 = arith.constant 0 : index
    %89 = vector.load %arg3[%c0_56, %c0_57] : memref<48x24xf32, #tpu.memory_space<vmem>>, vector<48x24xf32>
    %cst_58 = arith.constant dense<0.000000e+00> : vector<1x24xf32>
    %90 = tpu.matmul %88, %89, %cst_58 {dimension_numbers = #tpu.dot_dimension_numbers<[1], [0], [0], [1], [0, 0, 1, 1], [], []>} : vector<1x48xf32>, vector<48x24xf32>, vector<1x24xf32> -> vector<1x24xf32>
    %c0_59 = arith.constant 0 : index
    %c0_60 = arith.constant 0 : index
    %91 = vector.load %arg4[%c0_59, %c0_60] : memref<1x24xf32, #tpu.memory_space<vmem>>, vector<1x24xf32>
    %92 = arith.addf %90, %91 : vector<1x24xf32>
    %cst_61 = arith.constant 0.000000e+00 : f32
    %93 = vector.broadcast %cst_61 : f32 to vector<1x24xf32>
    %94 = arith.maximumf %92, %93 : vector<1x24xf32>
    %c0_62 = arith.constant 0 : index
    %c0_63 = arith.constant 0 : index
    %95 = vector.load %arg5[%c0_62, %c0_63] : memref<24x2xf32, #tpu.memory_space<vmem>>, vector<24x2xf32>
    %cst_64 = arith.constant dense<0.000000e+00> : vector<1x2xf32>
    %96 = tpu.matmul %94, %95, %cst_64 {dimension_numbers = #tpu.dot_dimension_numbers<[1], [0], [0], [1], [0, 0, 1, 1], [], []>} : vector<1x24xf32>, vector<24x2xf32>, vector<1x2xf32> -> vector<1x2xf32>
    %c0_65 = arith.constant 0 : index
    %c0_66 = arith.constant 0 : index
    %97 = vector.load %arg6[%c0_65, %c0_66] : memref<1x2xf32, #tpu.memory_space<vmem>>, vector<1x2xf32>
    %98 = arith.addf %96, %97 : vector<1x2xf32>
    %cst_67 = arith.constant dense<0xFF800000> : vector<1xf32>
    %99 = vector.multi_reduction <maximumf>, %98, %cst_67 [1] : vector<1x2xf32> to vector<1xf32>
    %100 = vector.shape_cast %99 : vector<1xf32> to vector<1x1xf32>
    %101 = vector.broadcast %100 : vector<1x1xf32> to vector<1x2xf32>
    %102 = arith.subf %98, %101 : vector<1x2xf32>
    %103 = math.exp %102 : vector<1x2xf32>
    %cst_68 = arith.constant dense<0.000000e+00> : vector<1xf32>
    %104 = vector.multi_reduction <add>, %103, %cst_68 [1] : vector<1x2xf32> to vector<1xf32>
    %105 = vector.shape_cast %104 : vector<1xf32> to vector<1x1xf32>
    %106 = vector.broadcast %105 : vector<1x1xf32> to vector<1x2xf32>
    %107 = arith.divf %103, %106 : vector<1x2xf32>
    %c1_69 = arith.constant 1 : index
    %c0_70 = arith.constant 0 : index
    %108 = vector.load %arg13[%c1_69, %c0_70] : memref<2x2xf32, #tpu.memory_space<vmem>>, vector<1x2xf32>
    tpu.vector_store %arg13[%c1_69, %c0_70], %107 {strides = array<i32>} : memref<2x2xf32, #tpu.memory_space<vmem>>, vector<1x2xf32>,
    %109 = vector.extract_strided_slice %81 {offsets = [0, 0], sizes = [4, 48], strides = [1, 1]} : vector<11x48xf32> to vector<4x48xf32>
    %110 = vector.extract_strided_slice %81 {offsets = [4, 0], sizes = [6, 48], strides = [1, 1]} : vector<11x48xf32> to vector<6x48xf32>
    %111 = vector.extract_strided_slice %81 {offsets = [10, 0], sizes = [1, 48], strides = [1, 1]} : vector<11x48xf32> to vector<1x48xf32>
    %c0_71 = arith.constant 0 : index
    %c0_72 = arith.constant 0 : index
    %112 = vector.load %arg7[%c0_71, %c0_72] : memref<48x4xf32, #tpu.memory_space<vmem>>, vector<48x4xf32>
    %cst_73 = arith.constant dense<0.000000e+00> : vector<6x4xf32>
    %113 = tpu.matmul %110, %112, %cst_73 {dimension_numbers = #tpu.dot_dimension_numbers<[1], [0], [0], [1], [0, 0, 1, 1], [], []>} : vector<6x48xf32>, vector<48x4xf32>, vector<6x4xf32> -> vector<6x4xf32>
    %c0_74 = arith.constant 0 : index
    %c0_75 = arith.constant 0 : index
    %114 = vector.load %arg8[%c0_74, %c0_75] : memref<1x4xf32, #tpu.memory_space<vmem>>, vector<1x4xf32>
    %115 = vector.broadcast %114 : vector<1x4xf32> to vector<6x4xf32>
    %116 = arith.addf %113, %115 : vector<6x4xf32>
    %c0_76 = arith.constant 0 : index
    %c0_77 = arith.constant 0 : index
    %117 = vector.load %arg11[%c0_76, %c0_77] : memref<48x4xf32, #tpu.memory_space<vmem>>, vector<48x4xf32>
    %cst_78 = arith.constant dense<0.000000e+00> : vector<1x4xf32>
    %118 = tpu.matmul %111, %117, %cst_78 {dimension_numbers = #tpu.dot_dimension_numbers<[1], [0], [0], [1], [0, 0, 1, 1], [], []>} : vector<1x48xf32>, vector<48x4xf32>, vector<1x4xf32> -> vector<1x4xf32>
    %c0_79 = arith.constant 0 : index
    %c0_80 = arith.constant 0 : index
    %119 = vector.load %arg12[%c0_79, %c0_80] : memref<1x4xf32, #tpu.memory_space<vmem>>, vector<1x4xf32>
    %120 = arith.addf %118, %119 : vector<1x4xf32>
    %121 = tpu.concatenate %120, %116 in 0 : vector<1x4xf32>, vector<6x4xf32> -> vector<7x4xf32>
    %122 = arith.mulf %121, %121 : vector<7x4xf32>
    %cst_81 = arith.constant dense<0.000000e+00> : vector<7xf32>
    %123 = vector.multi_reduction <add>, %122, %cst_81 [1] : vector<7x4xf32> to vector<7xf32>
    %124 = vector.shape_cast %123 : vector<7xf32> to vector<7x1xf32>
    %cst_82 = arith.constant dense<0.000000e+00> : vector<1xf32>
    %125 = vector.multi_reduction <add>, %124, %cst_82 [0] : vector<7x1xf32> to vector<1xf32>
    %126 = vector.shape_cast %125 : vector<1xf32> to vector<1x1xf32>
    %127 = math.sqrt %126 : vector<1x1xf32>
    %cst_83 = arith.constant 9.99999996E-13 : f32
    %128 = vector.broadcast %cst_83 : f32 to vector<1x1xf32>
    %129 = arith.maximumf %127, %128 : vector<1x1xf32>
    %130 = vector.broadcast %129 : vector<1x1xf32> to vector<7x4xf32>
    %131 = arith.divf %121, %130 : vector<7x4xf32>
    %cst_84 = arith.constant 2.000000e+00 : f32
    %132 = vector.broadcast %cst_84 : f32 to vector<7x4xf32>
    %133 = arith.mulf %131, %132 : vector<7x4xf32>
    %134 = vector.extract_strided_slice %107 {offsets = [0, 0], sizes = [1, 1], strides = [1, 1]} : vector<1x2xf32> to vector<1x1xf32>
    %135 = math.sqrt %134 : vector<1x1xf32>
    %136 = vector.broadcast %135 : vector<1x1xf32> to vector<7x4xf32>
    %137 = arith.mulf %133, %136 : vector<7x4xf32>
    %c1_85 = arith.constant 1 : index
    %c0_86 = arith.constant 0 : index
    %c0_87 = arith.constant 0 : index
    %138 = vector.load %arg14[%c1_85, %c0_86, %c0_87] : memref<2x7x4xf32, #tpu.memory_space<vmem>>, vector<1x7x4xf32>
    %139 = vector.shape_cast %138 : vector<1x7x4xf32> to vector<7x4xf32>
    %140 = vector.shape_cast %137 : vector<7x4xf32> to vector<1x7x4xf32>
    tpu.vector_store %arg14[%c1_85, %c0_86, %c0_87], %140 {strides = array<i32>} : memref<2x7x4xf32, #tpu.memory_space<vmem>>, vector<1x7x4xf32>,
    %c0_88 = arith.constant 0 : index
    %c0_89 = arith.constant 0 : index
    %141 = vector.load %arg9[%c0_88, %c0_89] : memref<48x4xf32, #tpu.memory_space<vmem>>, vector<48x4xf32>
    %cst_90 = arith.constant dense<0.000000e+00> : vector<4x4xf32>
    %142 = tpu.matmul %109, %141, %cst_90 {dimension_numbers = #tpu.dot_dimension_numbers<[1], [0], [0], [1], [0, 0, 1, 1], [], []>} : vector<4x48xf32>, vector<48x4xf32>, vector<4x4xf32> -> vector<4x4xf32>
    %c0_91 = arith.constant 0 : index
    %c0_92 = arith.constant 0 : index
    %143 = vector.load %arg10[%c0_91, %c0_92] : memref<1x4xf32, #tpu.memory_space<vmem>>, vector<1x4xf32>
    %144 = vector.broadcast %143 : vector<1x4xf32> to vector<4x4xf32>
    %145 = arith.addf %142, %144 : vector<4x4xf32>
    %146 = vector.extract_strided_slice %145 {offsets = [0, 0], sizes = [4, 2], strides = [1, 1]} : vector<4x4xf32> to vector<4x2xf32>
    %147 = vector.extract_strided_slice %145 {offsets = [0, 2], sizes = [4, 2], strides = [1, 1]} : vector<4x4xf32> to vector<4x2xf32>
    %148 = arith.mulf %146, %146 : vector<4x2xf32>
    %149 = arith.mulf %147, %147 : vector<4x2xf32>
    %150 = arith.addf %148, %149 : vector<4x2xf32>
    %151 = math.sqrt %150 : vector<4x2xf32>
    %cst_93 = arith.constant 9.99999996E-13 : f32
    %152 = vector.broadcast %cst_93 : f32 to vector<4x2xf32>
    %153 = arith.maximumf %151, %152 : vector<4x2xf32>
    %154 = arith.divf %146, %153 : vector<4x2xf32>
    %155 = arith.divf %147, %153 : vector<4x2xf32>
    %156 = tpu.concatenate %154, %155 in 1 : vector<4x2xf32>, vector<4x2xf32> -> vector<4x4xf32>
    %c1_94 = arith.constant 1 : index
    %c0_95 = arith.constant 0 : index
    %c0_96 = arith.constant 0 : index
    %157 = vector.load %arg15[%c1_94, %c0_95, %c0_96] : memref<2x4x4xf32, #tpu.memory_space<vmem>>, vector<1x4x4xf32>
    %158 = vector.shape_cast %157 : vector<1x4x4xf32> to vector<4x4xf32>
    %159 = vector.shape_cast %156 : vector<4x4xf32> to vector<1x4x4xf32>
    tpu.vector_store %arg15[%c1_94, %c0_95, %c0_96], %159 {strides = array<i32>} : memref<2x4x4xf32, #tpu.memory_space<vmem>>, vector<1x4x4xf32>,
    return
  }
  func.func @transform_0(%arg0: i32) -> (i32, i32, i32) {
    %c0_i32 = arith.constant 0 : i32
    %c0_i32_0 = arith.constant 0 : i32
    %c0_i32_1 = arith.constant 0 : i32
    %c0_i32_2 = arith.constant 0 : i32
    return %c0_i32, %c0_i32_0, %c0_i32_1 : i32, i32, i32
  }
  func.func @transform_1(%arg0: i32) -> (i32, i32, i32) {
    %c0_i32 = arith.constant 0 : i32
    %c0_i32_0 = arith.constant 0 : i32
    %c0_i32_1 = arith.constant 0 : i32
    %c0_i32_2 = arith.constant 0 : i32
    return %c0_i32, %c0_i32_0, %c0_i32_1 : i32, i32, i32
  }
  func.func @transform_2(%arg0: i32) -> (i32, i32) {
    %c0_i32 = arith.constant 0 : i32
    %c0_i32_0 = arith.constant 0 : i32
    %c0_i32_1 = arith.constant 0 : i32
    return %c0_i32, %c0_i32_0 : i32, i32
  }
  func.func @transform_3(%arg0: i32) -> (i32, i32) {
    %c0_i32 = arith.constant 0 : i32
    %c0_i32_0 = arith.constant 0 : i32
    %c0_i32_1 = arith.constant 0 : i32
    return %c0_i32, %c0_i32_0 : i32, i32
  }
  func.func @transform_4(%arg0: i32) -> (i32, i32) {
    %c0_i32 = arith.constant 0 : i32
    %c0_i32_0 = arith.constant 0 : i32
    %c0_i32_1 = arith.constant 0 : i32
    return %c0_i32, %c0_i32_0 : i32, i32
  }
  func.func @transform_5(%arg0: i32) -> (i32, i32) {
    %c0_i32 = arith.constant 0 : i32
    %c0_i32_0 = arith.constant 0 : i32
    %c0_i32_1 = arith.constant 0 : i32
    return %c0_i32, %c0_i32_0 : i32, i32
  }
  func.func @transform_6(%arg0: i32) -> (i32, i32) {
    %c0_i32 = arith.constant 0 : i32
    %c0_i32_0 = arith.constant 0 : i32
    %c0_i32_1 = arith.constant 0 : i32
    return %c0_i32, %c0_i32_0 : i32, i32
  }
  func.func @transform_7(%arg0: i32) -> (i32, i32) {
    %c0_i32 = arith.constant 0 : i32
    %c0_i32_0 = arith.constant 0 : i32
    %c0_i32_1 = arith.constant 0 : i32
    return %c0_i32, %c0_i32_0 : i32, i32
  }
  func.func @transform_8(%arg0: i32) -> (i32, i32) {
    %c0_i32 = arith.constant 0 : i32
    %c0_i32_0 = arith.constant 0 : i32
    %c0_i32_1 = arith.constant 0 : i32
    return %c0_i32, %c0_i32_0 : i32, i32
  }
  func.func @transform_9(%arg0: i32) -> (i32, i32) {
    %c0_i32 = arith.constant 0 : i32
    %c0_i32_0 = arith.constant 0 : i32
    %c0_i32_1 = arith.constant 0 : i32
    return %c0_i32, %c0_i32_0 : i32, i32
  }
  func.func @transform_10(%arg0: i32) -> (i32, i32) {
    %c0_i32 = arith.constant 0 : i32
    %c0_i32_0 = arith.constant 0 : i32
    %c0_i32_1 = arith.constant 0 : i32
    return %c0_i32, %c0_i32_0 : i32, i32
  }
  func.func @transform_11(%arg0: i32) -> (i32, i32) {
    %c0_i32 = arith.constant 0 : i32
    %c0_i32_0 = arith.constant 0 : i32
    %c0_i32_1 = arith.constant 0 : i32
    return %c0_i32, %c0_i32_0 : i32, i32
  }
  func.func @transform_12(%arg0: i32) -> (i32, i32) {
    %c0_i32 = arith.constant 0 : i32
    %c0_i32_0 = arith.constant 0 : i32
    %c0_i32_1 = arith.constant 0 : i32
    return %c0_i32, %c0_i32_0 : i32, i32
  }
  func.func @transform_13(%arg0: i32) -> (i32, i32, i32) {
    %c0_i32 = arith.constant 0 : i32
    %c0_i32_0 = arith.constant 0 : i32
    %c0_i32_1 = arith.constant 0 : i32
    %c0_i32_2 = arith.constant 0 : i32
    return %c0_i32, %c0_i32_0, %c0_i32_1 : i32, i32, i32
  }
  func.func @transform_14(%arg0: i32) -> (i32, i32, i32) {
    %c0_i32 = arith.constant 0 : i32
    %c0_i32_0 = arith.constant 0 : i32
    %c0_i32_1 = arith.constant 0 : i32
    %c0_i32_2 = arith.constant 0 : i32
    return %c0_i32, %c0_i32_0, %c0_i32_1 : i32, i32, i32
  }
}

</mosaic_0001>

<bundles_post_ra>
// kernel: node_update_fwd.4
= control target key start
LH: loop header
LB: loop body
LE: loop exit
PB: predicated region body
PF: predicated region fallthrough
CT: control target
= control target key end

     0   :  { %vm49_vm0 = vcmask 1043456   ;;  %v1458_v0 = vmov 0.0|0.0   ;;  %vm1459_vm1 = vmmov 1   ;;  %vm1460_vm3 = vmmov 0   ;;  %s1718_s2 = inlined_call_operand.vmem [shape: f32[12,32], index: 2, kind: input, shape index: {}]   ;;  %s1719_s4 = inlined_call_operand.vmem [shape: f32[32,16], index: 4, kind: input, shape index: {}]   ;;  %s1720_s0 = inlined_call_operand.vmem [shape: f32[2,2,6,12], index: 0, kind: input, shape index: {}]   ;;  %s1721_s3 = inlined_call_operand.vmem [shape: f32[1,32], index: 3, kind: input, shape index: {}]   ;;  %s1722_s5 = inlined_call_operand.vmem [shape: f32[1,16], index: 5, kind: input, shape index: {}]   ;;  %s1723_s6 = inlined_call_operand.vmem [shape: f32[16,16], index: 6, kind: input, shape index: {}]   ;;  %s1724_s1 = inlined_call_operand.vmem [shape: f32[2,4,6], index: 1, kind: input, shape index: {}]   ;;  %s1725_s10 = inlined_call_operand.vmem [shape: f32[2,11,16], index: 10, kind: output, shape index: {}]   ;;  %s1726_s8 = inlined_call_operand.vmem [shape: f32[16,16], index: 8, kind: input, shape index: {}]   ;;  %s1727_s7 = inlined_call_operand.vmem [shape: f32[1,16], index: 7, kind: input, shape index: {}]   ;;  %s1728_s9 = inlined_call_operand.vmem [shape: f32[1,16], index: 9, kind: input, shape index: {}]  }
   0x1   :  { %1402 = vmatprep.subr.bf16.mxu0 %v1458_v0  ;;  %v1521_v1 = vld [vmem:[%s1718_s2] sm:$0xff]  ;;  %v37_v2 = vld [vmem:[%s1718_s2 + $0x8] sm:$0xf]  ;;  %vm1527_vm2 = vmpackc.low %vm49_vm0, %vm1459_vm1  ;;  %1406 = vmatprep.subr.bf16.mxu1 %v1458_v0  ;;  %v1461_v5 = vmov 0.0   ;;  %vm45_vm4 = vcmask 97280   ;;  %vm135_vm5 = vcmask 261120  }
   0x2   :  { %v1403_v4 = vpack.c.bf16 %v37_v2, %v1521_v1  ;;  %1296 = vmatprep.mubr.msk.f32.mxu0 %vm1460_vm3, %v1461_v5  ;;  %v124_v6 = vld [vmem:[%s1719_s4] sm:$0xff]  ;;  %1307 = vmatprep.mubr.msk.f32.mxu1 %vm1460_vm3, %v1461_v5  ;;  %v125_v7 = vld [vmem:[%s1719_s4 + $0x8] sm:$0xff]  ;;  %v126_v11 = vld [vmem:[%s1719_s4 + $0x10] sm:$0xff]  ;;  %vm606_vm6 = vcmask 128000   ;;  %vm366_vm7 = vcmask 1045504   ;;  %vm362_vm8 = vcmask 48128  }
   0x3   :  { %v35_v8 = vld [vmem:[%s1720_s0] sm:$0x3f]  ;;  %v1548_v9 = vpack.c.bf16 %v125_v7, %v124_v6  ;;  %v1215_v10 = vld [vmem:[%s1720_s0 + $0x8] sm:$0x3f]  ;;  %v127_v12 = vld [vmem:[%s1719_s4 + $0x18] sm:$0xff]  ;;  %vm619_vm9 = vcmask 1041408  }
   0x4   :  { %1405 = vmatpush3.bf16.msk.msra.mxu0 %vm1527_vm2, %v1403_v4  ;;  %v1573_v13 = vpack.c.bf16 %v127_v12, %v126_v11  ;;  %v1582_v14 = vld [vmem:[%s1721_s3] ss:$0 sm:$0xff]  ;;  %v441_v31 = vld [vmem:[%s1723_s6 + $0x8] sm:$0xff]  ;;  %vm622_vm10 = vcmask 124928   ;;  %vm449_vm11 = vcmask 130048  }
   0x5   :  { %1412 = vmatprep.subr.bf16.mxu0 %v1458_v0  ;;  %1408 = vmatpush3.bf16.msra.mxu1 %v1548_v9  ;;  %v1595_v23 = vld [vmem:[%s1722_s5] ss:$0 sm:$0xff]  ;;  %v627_v46 = vld [vmem:[%s1718_s2 + $0x8] sm:$0xf]  ;;  %v1225_v50 = vld [vmem:[%s1720_s0 + $0x10] sm:$0x3f] }
   0x6   :  { %1409 = vmatprep.subr.bf16.mxu1 %v1458_v0  ;;  %v440_v30 = vld [vmem:[%s1723_s6] sm:$0xff]  ;;  %v1429_v47 = vpack.c.bf16 %v627_v46, %v1521_v1  ;;  %v1231_v51 = vld [vmem:[%s1720_s0 + $0x18] sm:$0x3f]  ;;  %v525_v53 = vld [vmem:[%s1726_s8 + $0x8] sm:$0xff] }
   0x7   :  { %1297 = vmatmul.mubr.msk.f32.vlgmr.msra.gmra.mrb[0].mxu0 %vm45_vm4, %v35_v8  ;;  %v361_v34 = vld [vmem:[%s1724_s1] sm:$0xf]  ;;  %v1610_v35 = vpack.c.bf16 %v441_v31, %v440_v30 }
   0x8   :  { %1415 = vmatpush3.bf16.msk.msra.mxu0 %vm1527_vm2, %v1403_v4  ;;  %1314 = vmatprep.mubr.msk.f32.mxu0 %vm1460_vm3, %v1461_v5  ;;  %v524_v52 = vld [vmem:[%s1726_s8] sm:$0xff] }
   0x9   :  { %1416 = vmatprep.subr.bf16.mxu0 %v1458_v0  ;;  %1411 = vmatpush3.bf16.msra.mxu1 %v1573_v13  ;;  %v1426_v54 = vpack.c.bf16 %v525_v53, %v524_v52  ;;  %v1221_v55 = vld [vmem:[%s1727_s7] ss:$0 sm:$0xff] }
   0xa   :  { %1328 = vmatprep.subr.mxu1 %v1461_v5  ;;  %v1223_v6 = vld [vmem:[%s1728_s9] ss:$0 sm:$0xff] }
   0xb   :  { %1315 = vmatmul.mubr.msk.f32.vlgmr.msra.gmra.mrb[2].mxu0 %vm45_vm4, %v1215_v10 }
   0xc   :  { %1418 = vmatpush3.bf16.msra.mxu0 %v1548_v9  ;;  %1325 = vmatprep.mubr.msk.f32.mxu0 %vm1460_vm3, %v1461_v5 }
   0xd   :  { %1419 = vmatprep.subr.bf16.mxu0 %v1458_v0 }
  0x10   :  { %1421 = vmatpush3.bf16.msra.mxu0 %v1573_v13 }
  0x11   :  { %1425 = vmatprep.subr.bf16.mxu0 %v1458_v0 }
  0xda   :  { %v119_v15 = vpop.f32.mrb[0].mxu0 }
  0xdb   :  { %v120_v16 = vadd.f32 %v1582_v14, %v119_v15  ;;  %v1298_v17 = vpop.f32.mrb[1].mxu0 }
  0xdd   :  { %v123_v18 = vmax.f32 %v120_v16, 0.0 }
  0xde   :  { %v280_v19 = vpop.f32.mrb[2].mxu0 }
  0xdf   :  { %v281_v20 = vadd.f32 %v1582_v14, %v280_v19  ;;  %1308 = vmatmul.mubr.msk.f32.vlgmr.msra.gmra.mrb[0].mxu1 %vm135_vm5, %v123_v18  ;;  %v1316_v21 = vpop.f32.mrb[3].mxu0  ;;  %v1235_v19 = vld [vmem:[%s1724_s1 + $0x4] sm:$0xf] }
  0xe0   :  { %1330 = vmatprep.mubr.msk.f32.mxu1 %vm1460_vm3, %v1461_v5 }
  0xe1   :  { %v284_v22 = vmax.f32 %v281_v20, 0.0 }
  0xe3   :  { %1326 = vmatmul.mubr.msk.f32.vlgmr.msra.gmra.mrb[4].mxu0 %vm135_vm5, %v284_v22 }
  0xe4   :  { %1344 = vmatprep.mubr.msk.f32.mxu0 %vm1460_vm3, %v1461_v5  ;;  %1427 = vmatpush3.bf16.msra.mxu0 %v1426_v54 }
  0xe5   :  { %1432 = vmatprep.subr.bf16.mxu0 %v1458_v0 }
 0x1b2   :  { %v205_v24 = vpop.f32.mrb[0].mxu1 }
 0x1b3   :  { %v1309_v25 = vpop.f32.mrb[1].mxu1  ;;  %v206_v26 = vadd.f32 %v1595_v23, %v205_v24 }
 0x1b6   :  { %v354_v27 = vpop.f32.mrb[4].mxu0 }
 0x1b7   :  { %v358_v28 = vadd.f32 %v354_v27, %v206_v26  ;;  %v1327_v29 = vpop.f32.mrb[5].mxu0 }
 0x1b9   :  { %v359_v32 = vadd.f32 %v1595_v23, %v358_v28 }
 0x1bb   :  { %v1605_v33 = vmul.f32 0.5, %v359_v32 }
 0x1bd   :  { %v607_v36 = vsel %vm606_vm6, %v1605_v33, 0.0  ;;  %1329 = vmatpush3.msk.msra.mxu1 %vm366_vm7, %v1605_v33  ;;  %v616_v44 = vrot.slane %v1605_v33, 4 }
 0x1be   :  { %v608_v37 = vrot.slane %v607_v36, 4  ;;  %1331 = vmatmul.mubr.msk.f32.vlgmr.msra.gmra.mrb[2].mxu1 %vm362_vm8, %v361_v34  ;;  %1422 = vmatprep.subr.bf16.mxu1 %v1458_v0 }
 0x1bf   :  { %1424 = vmatpush3.bf16.msra.mxu1 %v1610_v35  ;;  %1337 = vmatprep.mubr.msk.f32.mxu1 %vm1460_vm3, %v1461_v5 }
 0x1c0   :  { %v609_v38 = vadd.f32 %v608_v37, %v607_v36  ;;  %1428 = vmatprep.subr.bf16.mxu1 %v1458_v0 }
 0x1c2   :  { %v610_v39 = vrot.slane %v609_v38, 2 }
 0x1c4   :  { %v611_v40 = vadd.f32 %v610_v39, %v609_v38 }
 0x1c6   :  { %v612_v41 = vrot.slane %v611_v40, 1 }
 0x1c8   :  { %v613_v42 = vadd.f32 %v612_v41, %v611_v40 }
 0x1ca   :  { %v615_v43 = vmul.f32 0.16666667, %v613_v42 }
 0x1cc   :  { %v620_v45 = vsel %vm619_vm9, %v616_v44, %v615_v43 }
 0x1cd   :  { %623 = vst.msk [vmem:[%s1725_s10 + $0x8] sm:$0x7] %vm622_vm10, %v620_v45 }
 0x291   :  { %v436_v48 = vpop.f32.mrb[2].mxu1 }
 0x292   :  { %v1332_v49 = vpop.f32.mrb[3].mxu1  ;;  %1338 = vmatmul.mubr.msk.f32.vlgmr.msra.gmra.mrb[4].mxu1 %vm449_vm11, %v436_v48 }
 0x293   :  { %1431 = vmatpush3.bf16.msk.msra.mxu1 %vm1527_vm2, %v1429_v47  ;;  %1351 = vmatprep.mubr.msk.f32.mxu1 %vm1460_vm3, %v1461_v5 }
 0x294   :  { %1438 = vmatprep.subr.bf16.mxu1 %v1458_v0 }
 0x296   :  { %1352 = vmatmul.mubr.msk.f32.vlgmr.msra.gmra.mrb[6].mxu1 %vm45_vm4, %v1225_v50 }
 0x297   :  { %1441 = vmatpush3.bf16.msk.msra.mxu1 %vm1527_vm2, %v1429_v47  ;;  %1369 = vmatprep.mubr.msk.f32.mxu1 %vm1460_vm3, %v1461_v5 }
 0x298   :  { %1442 = vmatprep.subr.bf16.mxu1 %v1458_v0 }
 0x29a   :  { %1370 = vmatmul.mubr.msk.f32.vlgmr.msra.gmra.mrb[8].mxu1 %vm45_vm4, %v1231_v51 }
 0x29b   :  { %1444 = vmatpush3.bf16.msra.mxu1 %v1548_v9  ;;  %1380 = vmatprep.mubr.msk.f32.mxu1 %vm1460_vm3, %v1461_v5 }
 0x29c   :  { %1445 = vmatprep.subr.bf16.mxu1 %v1458_v0 }
 0x29f   :  { %1447 = vmatpush3.bf16.msra.mxu1 %v1573_v13 }
 0x2a0   :  { %1451 = vmatprep.subr.bf16.mxu1 %v1458_v0 }
 0x365   :  { %v519_v56 = vpop.f32.mrb[4].mxu1 }
 0x366   :  { %v520_v57 = vadd.f32 %v1221_v55, %v519_v56  ;;  %v1339_v58 = vpop.f32.mrb[5].mxu1 }
 0x368   :  { %v523_v59 = vmax.f32 %v520_v57, 0.0 }
 0x369   :  { %v707_v60 = vpop.f32.mrb[6].mxu1 }
 0x36a   :  { %1345 = vmatmul.mubr.msk.f32.vlgmr.msra.gmra.mrb[6].mxu0 %vm449_vm11, %v523_v59  ;;  %v1353_v61 = vpop.f32.mrb[7].mxu1  ;;  %v708_v62 = vadd.f32 %v1582_v14, %v707_v60 }
 0x36b   :  { %1434 = vmatpush3.bf16.msra.mxu0 %v1548_v9  ;;  %1362 = vmatprep.mubr.msk.f32.mxu0 %vm1460_vm3, %v1461_v5 }
 0x36c   :  { %1435 = vmatprep.subr.bf16.mxu0 %v1458_v0  ;;  %v711_v3 = vmax.f32 %v708_v62, 0.0 }
 0x36d   :  { %v867_v63 = vpop.f32.mrb[8].mxu1 }
 0x36e   :  { %v868_v1 = vadd.f32 %v1582_v14, %v867_v63  ;;  %v1371_v2 = vpop.f32.mrb[9].mxu1 }
 0x36f   :  { %1437 = vmatpush3.bf16.msra.mxu0 %v1573_v13 }
 0x370   :  { %v871_v4 = vmax.f32 %v868_v1, 0.0  ;;  %1383 = vmatprep.subr.mxu0 %v1461_v5 }
 0x372   :  { %1363 = vmatmul.mubr.msk.f32.vlgmr.msra.gmra.mrb[8].mxu0 %vm135_vm5, %v711_v3  ;;  %1381 = vmatmul.mubr.msk.f32.vlgmr.msra.gmra.mrb[10].mxu1 %vm135_vm5, %v871_v4 }
 0x373   :  { %1385 = vmatprep.mubr.msk.f32.mxu0 %vm1460_vm3, %v1461_v5  ;;  %1453 = vmatpush3.bf16.msra.mxu1 %v1426_v54 }
 0x374   :  { %1399 = vmatprep.mubr.msk.f32.mxu1 %vm1460_vm3, %v1461_v5 }
 0x43d   :  { %v602_v7 = vpop.f32.mrb[6].mxu0 }
 0x43e   :  { %v603_v8 = vadd.f32 %v1223_v6, %v602_v7  ;;  %v1346_v9 = vpop.f32.mrb[7].mxu0 }
 0x440   :  { %v618_v10 = vsel %vm49_vm0, %v603_v8, %v616_v44 }
 0x441   :  { %621 = vst.msk [vmem:[%s1725_s10] sm:$0xff] %vm449_vm11, %v618_v10 }
 0x445   :  { %v792_v11 = vpop.f32.mrb[8].mxu0  ;;  %v941_v12 = vpop.f32.mrb[10].mxu1 }
 0x446   :  { %v793_v13 = vadd.f32 %v1595_v23, %v792_v11  ;;  %v1364_v14 = vpop.f32.mrb[9].mxu0  ;;  %v1382_v15 = vpop.f32.mrb[11].mxu1 }
 0x448   :  { %v945_v16 = vadd.f32 %v941_v12, %v793_v13 }
 0x44a   :  { %v946_v17 = vadd.f32 %v1595_v23, %v945_v16 }
 0x44c   :  { %v947_v18 = vmul.f32 0.5, %v946_v17 }
 0x44e   :  { %v1191_v20 = vsel %vm606_vm6, %v947_v18, 0.0  ;;  %1384 = vmatpush3.msk.msra.mxu0 %vm366_vm7, %v947_v18  ;;  %v1199_v28 = vrot.slane %v947_v18, 4 }
 0x44f   :  { %v1192_v21 = vrot.slane %v1191_v20, 4  ;;  %1386 = vmatmul.mubr.msk.f32.vlgmr.msra.gmra.mrb[10].mxu0 %vm362_vm8, %v1235_v19  ;;  %1448 = vmatprep.subr.bf16.mxu0 %v1458_v0 }
 0x450   :  { %1450 = vmatpush3.bf16.msra.mxu0 %v1610_v35  ;;  %1392 = vmatprep.mubr.msk.f32.mxu0 %vm1460_vm3, %v1461_v5 }
 0x451   :  { %v1193_v22 = vadd.f32 %v1192_v21, %v1191_v20 }
 0x453   :  { %v1194_v23 = vrot.slane %v1193_v22, 2 }
 0x455   :  { %v1195_v24 = vadd.f32 %v1194_v23, %v1193_v22 }
 0x457   :  { %v1196_v25 = vrot.slane %v1195_v24, 1 }
 0x459   :  { %v1197_v26 = vadd.f32 %v1196_v25, %v1195_v24 }
 0x45b   :  { %v1198_v27 = vmul.f32 0.16666667, %v1197_v26 }
 0x45d   :  { %v1202_v29 = vsel %vm619_vm9, %v1199_v28, %v1198_v27 }
 0x45e   :  { %1243 = vst.msk [vmem:[%s1725_s10 + $0x18] sm:$0x7] %vm622_vm10, %v1202_v29 }
 0x522   :  { %v1022_v0 = vpop.f32.mrb[10].mxu0 }
 0x523   :  { %1393 = vmatmul.mubr.msk.f32.vlgmr.msra.gmra.mrb[12].mxu0 %vm449_vm11, %v1022_v0  ;;  %v1387_v30 = vpop.f32.mrb[11].mxu0 }
 0x5f6   :  { %v1104_v31 = vpop.f32.mrb[12].mxu0 }
 0x5f7   :  { %v1105_v5 = vadd.f32 %v1221_v55, %v1104_v31  ;;  %v1394_v32 = vpop.f32.mrb[13].mxu0 }
 0x5f9   :  { %v1108_v33 = vmax.f32 %v1105_v5, 0.0 }
 0x5fb   :  { %1400 = vmatmul.mubr.msk.f32.vlgmr.msra.gmra.mrb[12].mxu1 %vm449_vm11, %v1108_v33 }
 0x6ce   :  { %v1187_v34 = vpop.f32.mrb[12].mxu1 }
 0x6cf   :  { %v1188_v35 = vadd.f32 %v1223_v6, %v1187_v34  ;;  %v1401_v36 = vpop.f32.mrb[13].mxu1 }
 0x6d1   :  { %v1201_v37 = vsel %vm49_vm0, %v1188_v35, %v1199_v28 }
 0x6d2   :  { %1242 = vst.msk [vmem:[%s1725_s10 + $0x10] sm:$0xff] %vm449_vm11, %v1201_v37 }

// kernel: node_update_fwd.5
= control target key start
LH: loop header
LB: loop body
LE: loop exit
PB: predicated region body
PF: predicated region fallthrough
CT: control target
= control target key end

     0   :  { %vm79_vm0 = vcmask 1043456   ;;  %vm75_vm1 = vcmask 31744   ;;  %v3234_v0 = vmov 0.0   ;;  %vm3235_vm2 = vmmov 0   ;;  %s3882_s0 = inlined_call_operand.vmem [shape: f32[2,11,16], index: 0, kind: input, shape index: {}]   ;;  %s3883_s2 = inlined_call_operand.vmem [shape: f32[2,6,4], index: 2, kind: input, shape index: {}]   ;;  %s3884_s1 = inlined_call_operand.vmem [shape: f32[2,4,6], index: 1, kind: input, shape index: {}]   ;;  %s3885_s3 = inlined_call_operand.vmem [shape: f32[2,6,1], index: 3, kind: input, shape index: {}]   ;;  %s3886_s4 = inlined_call_operand.vmem [shape: f32[48,32], index: 4, kind: input, shape index: {}]   ;;  %s3887_s8 = inlined_call_operand.vmem [shape: f32[32,32], index: 8, kind: input, shape index: {}]   ;;  %s3888_s12 = inlined_call_operand.vmem [shape: f32[32,32], index: 12, kind: input, shape index: {}]   ;;  %s3889_s6 = inlined_call_operand.vmem [shape: f32[32,16], index: 6, kind: input, shape index: {}]   ;;  %s3890_s5 = inlined_call_operand.vmem [shape: f32[1,32], index: 5, kind: input, shape index: {}]   ;;  %s3891_s10 = inlined_call_operand.vmem [shape: f32[32,16], index: 10, kind: input, shape index: {}]   ;;  %s3892_s9 = inlined_call_operand.vmem [shape: f32[1,32], index: 9, kind: input, shape index: {}]   ;;  %s3893_s14 = inlined_call_operand.vmem [shape: f32[32,16], index: 14, kind: input, shape index: {}]   ;;  %s3894_s13 = inlined_call_operand.vmem [shape: f32[1,32], index: 13, kind: input, shape index: {}]   ;;  %s3895_s16 = inlined_call_operand.vmem [shape: f32[32,16], index: 16, kind: input, shape index: {}]   ;;  %s3896_s7 = inlined_call_operand.vmem [shape: f32[1,16], index: 7, kind: input, shape index: {}]   ;;  %s3897_s11 = inlined_call_operand.vmem [shape: f32[1,16], index: 11, kind: input, shape index: {}]   ;;  %s3898_s20 = inlined_call_operand.vmem [shape: f32[2,11,32], index: 20, kind: output, shape index: {0}]   ;;  %s3899_s15 = inlined_call_operand.vmem [shape: f32[1,16], index: 15, kind: input, shape index: {}]   ;;  %s3900_s18 = inlined_call_operand.vmem [shape: f32[16,1], index: 18, kind: input, shape index: {}]   ;;  %s3901_s19 = inlined_call_operand.<no memory space> [shape: f32[1,1], index: 19, kind: input, shape index: {}]   ;;  %s3902_s17 = inlined_call_operand.vmem [shape: f32[1,16], index: 17, kind: input, shape index: {}]   ;;  %s3903_s21 = inlined_call_operand.vmem [shape: f32[2,6,1], index: 21, kind: output, shape index: {1}]  }
   0x1   :  { %3913 = sst [smem:[#allocation3_spill]] %s3882_s0  ;;  %2898 = vmatprep.subr.mxu0 %v3234_v0  ;;  %2900 = vmatprep.mubr.msk.f32.mxu0 %vm3235_vm2, %v3234_v0  ;;  %vm3911_vm3 = vcmask 1045504   ;;  %vm3910_vm4 = vcmask 48128   ;;  %v3236_v9 = vmov 0   ;;  %v3237_v11 = vmov 0.0|0.0  }
   0x2   :  { %3914 = sst [smem:[#allocation4_spill]] %s3883_s2  ;;  %s3919_s26 = sld [smem:[#allocation3_spill]]  ;;  %2903 = vmatprep.subr.mxu1 %v3234_v0  ;;  %2905 = vmatprep.mubr.msk.f32.mxu1 %vm3235_vm2, %v3234_v0  ;;  %v69_v18 = vlaneseq  ;;  %vm329_vm5 = vcmask 130048   ;;  %vm242_vm6 = vcmask 128000   ;;  %vm316_vm13 = vcmask 1040384  }
   0x3   :  { %3915 = sst [smem:[#allocation5_spill]] %s3884_s1  ;;  %s3920_s0 = sld [smem:[#allocation4_spill]]  ;;  %3225 = vset.pattern.permute.xlu0 %v3236_v9  ;;  %vm318_vm14 = vcmask 1041408   ;;  %vm320_vm15 = vcmask 1042432  }
   0x4   :  { %3916 = sst [smem:[#allocation6_spill]] %s3885_s3  ;;  %v3413_v19 = vshrl.u32 %v69_v18, 7 }
   0x5   :  { %3917 = sst [smem:[#allocation7_spill]] %s3886_s4  ;;  %s3922_s2 = sld [smem:[#allocation6_spill]] }
   0x6   :  { %3918 = sst [smem:[#allocation8_spill]] %s3887_s8  ;;  %s3921_s8 = sld [smem:[#allocation5_spill]]  ;;  %vm250_vm7 = vcmp.eq.s32.totalorder %v3413_v19, 0  ;;  %vm261_vm8 = vcmp.eq.s32.totalorder %v3413_v19, 1  ;;  %vm272_vm9 = vcmp.eq.s32.totalorder %v3413_v19, 2  ;;  %vm283_vm10 = vcmp.eq.s32.totalorder %v3413_v19, 3 }
   0x7   :  { %s3923_s3 = sld [smem:[#allocation7_spill]]  ;;  %vm294_vm11 = vcmp.eq.s32.totalorder %v3413_v19, 4  ;;  %vm305_vm12 = vcmp.eq.s32.totalorder %v3413_v19, 5  ;;  %s3924_s28 = sld [smem:[#allocation8_spill]] }
   0x8   :  { %v3353_v1 = vld [vmem:[%s3919_s26] sm:$0xff]  ;;  %v3358_v2 = vld [vmem:[%s3919_s26 + $0x8] sm:$0x7] }
   0x9   :  { %2899 = vmatpush3.msk.msra.mxu0 %vm79_vm0, %v3353_v1  ;;  %v155_v3 = vrot.slane %v3353_v1, 4  ;;  %v156_v4 = vrot.slane %v3358_v2, 4  ;;  %v74_v5 = vld [vmem:[%s3920_s0] sm:$0x3f] }
   0xa   :  { %2901 = vmatmul.mubr.msk.f32.vlgmr.msra.gmra.mrb[0].mxu0 %vm75_vm1, %v74_v5  ;;  %3124 = vmatprep.subr.bf16.mxu0 %v3237_v11 }
   0xb   :  { %v3377_v7 = vsel %vm79_vm0, %v155_v3, %v156_v4  ;;  %v73_v8 = vld [vmem:[%s3922_s2] sm:$0x3f]  ;;  %2912 = vmatprep.mubr.msk.f32.mxu0 %vm3235_vm2, %v3234_v0  ;;  %v2771_v10 = vld [vmem:[%s3922_s2 + $0x8] sm:$0x3f] }
   0xc   :  { %v153_v6 = vld [vmem:[%s3921_s8] sm:$0xf]  ;;  %2904 = vmatpush3.msk.msra.mxu1 %vm3911_vm3, %v3377_v7  ;;  %237 = vperm.xlu0 %3225, %v73_v8   ;;  %v253_v20 = vsel %vm250_vm7, -inf, %v3377_v7  ;;  %v264_v21 = vsel %vm261_vm8, -inf, %v3377_v7  ;;  %v275_v22 = vsel %vm272_vm9, -inf, %v3377_v7  ;;  %v286_v23 = vsel %vm283_vm10, -inf, %v3377_v7 }
   0xd   :  { %2906 = vmatmul.mubr.msk.f32.vlgmr.msra.gmra.mrb[0].mxu1 %vm3910_vm4, %v153_v6  ;;  %v327_v12 = vld [vmem:[%s3923_s3 + $0x10] sm:$0xff]  ;;  %v328_v13 = vld [vmem:[%s3923_s3 + $0x18] sm:$0xff]  ;;  %3127 = vmatprep.subr.bf16.mxu1 %v3237_v11  ;;  %v325_v14 = vld [vmem:[%s3923_s3] sm:$0xff]  ;;  %v254_v24 = vsel %vm242_vm6, %v253_v20, -inf  ;;  %v265_v25 = vsel %vm242_vm6, %v264_v21, -inf  ;;  %v276_v26 = vsel %vm242_vm6, %v275_v22, -inf }
   0xe   :  { %2919 = vmatprep.mubr.msk.f32.mxu1 %vm3235_vm2, %v3234_v0  ;;  %v3403_v15 = vpack.c.bf16 %v328_v13, %v327_v12  ;;  %v326_v16 = vld [vmem:[%s3923_s3 + $0x8] sm:$0xff]  ;;  %v287_v27 = vsel %vm242_vm6, %v286_v23, -inf  ;;  %v255_v28 = vrot.slane %v254_v24, 4  ;;  %v266_v29 = vrot.slane %v265_v25, 4  ;;  %v475_v8 = vld [vmem:[%s3923_s3 + $0x20] sm:$0xff] }
   0xf   :  { %v3408_v17 = vpack.c.bf16 %v326_v16, %v325_v14  ;;  %v277_v30 = vrot.slane %v276_v26, 4  ;;  %v288_v31 = vrot.slane %v287_v27, 4  ;;  %v297_v36 = vsel %vm294_vm11, -inf, %v3377_v7  ;;  %v476_v9 = vld [vmem:[%s3923_s3 + $0x28] sm:$0xff] }
  0x10   :  { %1583 = vperm.xlu0 %3225, %v2771_v10   ;;  %3126 = vmatpush3.bf16.msra.mxu0 %v3403_v15  ;;  %v256_v32 = vmax.f32 %v254_v24, %v255_v28  ;;  %v267_v33 = vmax.f32 %v265_v25, %v266_v29  ;;  %v308_v37 = vsel %vm305_vm12, -inf, %v3377_v7  ;;  %v298_v42 = vsel %vm242_vm6, %v297_v36, -inf  ;;  %v647_v24 = vld [vmem:[%s3924_s28 + $0x10] sm:$0xff]  ;;  %v648_v25 = vld [vmem:[%s3924_s28 + $0x18] sm:$0xff]  ;;  %v645_v28 = vld [vmem:[%s3924_s28] sm:$0xff] }
  0x11   :  { %3129 = vmatpush3.bf16.msra.mxu1 %v3408_v17  ;;  %3130 = vmatprep.subr.bf16.mxu0 %v3237_v11  ;;  %v278_v34 = vmax.f32 %v276_v26, %v277_v30  ;;  %v289_v35 = vmax.f32 %v287_v27, %v288_v31  ;;  %v309_v43 = vsel %vm242_vm6, %v308_v37, -inf  ;;  %v299_v48 = vrot.slane %v298_v42, 4 }
  0x12   :  { %3133 = vmatprep.subr.bf16.mxu1 %v3237_v11  ;;  %v257_v38 = vrot.slane %v256_v32, 2  ;;  %v268_v39 = vrot.slane %v267_v33, 2  ;;  %v310_v49 = vrot.slane %v309_v43, 4  ;;  %vm3912_vm4 = vcmask 1044480  }
  0x13   :  { %v279_v40 = vrot.slane %v278_v34, 2  ;;  %v290_v41 = vrot.slane %v289_v35, 2  ;;  %v300_v54 = vmax.f32 %v298_v42, %v299_v48  ;;  %v3459_v14 = vpack.c.bf16 %v476_v9, %v475_v8  ;;  %v805_v9 = vld [vmem:[%s3891_s10 + $0x10] sm:$0xff] }
  0x14   :  { %2920 = vmatmul.mubr.msk.f32.vlgmr.msra.gmra.mrb[2].mxu1 %vm329_vm5, %v3377_v7  ;;  %v258_v44 = vmax.f32 %v256_v32, %v257_v38  ;;  %v269_v45 = vmax.f32 %v267_v33, %v268_v39  ;;  %v311_v55 = vmax.f32 %v309_v43, %v310_v49  ;;  %v3476_v26 = vpack.c.bf16 %v648_v25, %v647_v24  ;;  %v887_v39 = vld [vmem:[%s3888_s12] sm:$0xff] }
  0x15   :  { %2937 = vmatprep.mubr.msk.f32.mxu1 %vm3235_vm2, %v3234_v0  ;;  %v280_v46 = vmax.f32 %v278_v34, %v279_v40  ;;  %v291_v47 = vmax.f32 %v289_v35, %v290_v41  ;;  %v301_v59 = vrot.slane %v300_v54, 2  ;;  %v889_v34 = vld [vmem:[%s3888_s12 + $0x10] sm:$0xff]  ;;  %v890_v35 = vld [vmem:[%s3888_s12 + $0x18] sm:$0xff]  ;;  %v888_v40 = vld [vmem:[%s3888_s12 + $0x8] sm:$0xff]  ;;  %v891_v41 = vrot.slane %v3358_v2, 2 }
  0x16   :  { %v259_v50 = vrot.slane %v258_v44, 1  ;;  %v270_v51 = vrot.slane %v269_v45, 1  ;;  %v312_v60 = vrot.slane %v311_v55, 2  ;;  %v3501_v37 = vpack.c.bf16 %v890_v35, %v889_v34 }
  0x17   :  { %v281_v52 = vrot.slane %v280_v46, 1  ;;  %v292_v53 = vrot.slane %v291_v47, 1  ;;  %v302_v63 = vmax.f32 %v300_v54, %v301_v59  ;;  %v3516_v42 = vpack.c.bf16 %v888_v40, %v887_v39  ;;  %v563_v54 = vld [vmem:[%s3889_s6 + $0x18] sm:$0xff]  ;;  %v3564_v59 = vld [vmem:[%s3890_s5] ss:$0 sm:$0xff] }
  0x18   :  { %v260_v56 = vmax.f32 %v258_v44, %v259_v50  ;;  %v271_v57 = vmax.f32 %v269_v45, %v270_v51  ;;  %v313_v3 = vmax.f32 %v311_v55, %v312_v60  ;;  %v560_v50 = vld [vmem:[%s3889_s6] sm:$0xff]  ;;  %v561_v51 = vld [vmem:[%s3889_s6 + $0x8] sm:$0xff]  ;;  %vm571_vm3 = vcmask 261120  }
  0x19   :  { %v282_v58 = vmax.f32 %v280_v46, %v281_v52  ;;  %v293_v61 = vmax.f32 %v291_v47, %v292_v53  ;;  %v303_v5 = vrot.slane %v302_v63, 1  ;;  %v3533_v52 = vpack.c.bf16 %v561_v51, %v560_v50  ;;  %v562_v53 = vld [vmem:[%s3889_s6 + $0x10] sm:$0xff]  ;;  %v1133_v51 = vld [vmem:[%s3895_s16 + $0x8] sm:$0xff] }
  0x1a   :  { %v317_v62 = vsel %vm316_vm13, %v260_v56, %v271_v57  ;;  %v314_v6 = vrot.slane %v313_v3, 1  ;;  %v3543_v55 = vpack.c.bf16 %v563_v54, %v562_v53  ;;  %v3550_v56 = vld [vmem:[%s3919_s26 + $0x10] sm:$0xff]  ;;  %v3558_v57 = vld [vmem:[%s3919_s26 + $0x18] sm:$0x7]  ;;  %v1126_v39 = vsub.s32 2, %v3413_v19 }
  0x1b   :  { %v319_v4 = vsel %vm318_vm14, %v317_v62, %v282_v58  ;;  %v304_v12 = vmax.f32 %v302_v63, %v303_v5  ;;  %3135 = vmatpush3.bf16.msra.mxu1 %v3533_v52  ;;  %v803_v62 = vld [vmem:[%s3891_s10] sm:$0xff]  ;;  %v804_v63 = vld [vmem:[%s3891_s10 + $0x8] sm:$0xff] }
  0x1c   :  { %v321_v10 = vsel %vm320_vm15, %v319_v4, %v293_v61  ;;  %v315_v13 = vmax.f32 %v313_v3, %v314_v6  ;;  %3136 = vmatprep.subr.bf16.mxu1 %v3237_v11  ;;  %v3573_v5 = vpack.c.bf16 %v804_v63, %v803_v62  ;;  %v1127_v40 = vrot.slane %v3358_v2, %v1126_v39  ;;  %v3664_v62 = vld [vmem:[%s3897_s11] ss:$0 sm:$0xff] }
  0x1d   :  { %v322_v16 = vsel %vm79_vm0, %v321_v10, %v304_v12  ;;  %v806_v10 = vld [vmem:[%s3891_s10 + $0x18] sm:$0xff] }
  0x1e   :  { %v324_v18 = vsel %vm3912_vm4, %v322_v16, %v315_v13  ;;  %v3585_v13 = vld [vmem:[%s3892_s9] ss:$0 sm:$0xff]  ;;  %v3588_v16 = vpack.c.bf16 %v806_v10, %v805_v9  ;;  %vm1415_vm4 = vcmask 256000  }
  0x1f   :  { %2913 = vmatmul.mubr.msk.f32.vlgmr.msra.gmra.mrb[2].mxu0 %vm329_vm5, %v324_v18  ;;  %3138 = vmatpush3.bf16.msra.mxu1 %v3543_v55 }
  0x20   :  { %3132 = vmatpush3.bf16.msra.mxu0 %v3459_v14  ;;  %2926 = vmatprep.mubr.msk.f32.mxu0 %vm3235_vm2, %v3234_v0 }
  0x21   :  { %3139 = vmatprep.subr.bf16.mxu0 %v3237_v11  ;;  %3145 = vmatprep.subr.bf16.mxu1 %v3237_v11 }
  0x8b   :  { %v238_v20 = vpop.permute.xlu0 %237 }
  0x8c   :  { %v241_v21 = vmul.f32 %v238_v20, %v3377_v7  ;;  %v646_v7 = vld [vmem:[%s3924_s28 + $0x8] sm:$0xff]  ;;  %s3238_s28 = smov 16  }
  0x8d   :  { %v3488_v31 = vpack.c.bf16 %v646_v7, %v645_v28  ;;  %1406 = vrot.lane.b32.xlu1 %v3353_v1, %s3238_s28  ;;  %2727 = vrot.lane.b32.xlu0 %v3550_v56, %s3238_s28  ;;  %v1042_v7 = vld [vmem:[%s3893_s14 + $0x10] sm:$0xff] }
  0x8e   :  { %v243_v22 = vsel %vm242_vm6, %v241_v21, 0.0  ;;  %v1040_v21 = vld [vmem:[%s3893_s14] sm:$0xff] }
  0x8f   :  { %v244_v23 = vrot.slane %v243_v22, 4 }
  0x91   :  { %v245_v27 = vadd.f32 %v244_v23, %v243_v22  ;;  %1408 = vrot.lane.b32.xlu1 %v3358_v2, %s3238_s28  ;;  %v1041_v22 = vld [vmem:[%s3893_s14 + $0x8] sm:$0xff] }
  0x92   :  { %v3601_v25 = vpack.c.bf16 %v1041_v22, %v1040_v21 }
  0x93   :  { %v246_v32 = vrot.slane %v245_v27, 2 }
  0x95   :  { %v247_v38 = vadd.f32 %v246_v32, %v245_v27  ;;  %2729 = vrot.lane.b32.xlu1 %v3558_v57, %s3238_s28  ;;  %v1037_v32 = vld [vmem:[%s3894_s13] sm:$0x1] }
  0x97   :  { %v248_v43 = vrot.slane %v247_v38, 1 }
  0x99   :  { %v249_v44 = vadd.f32 %v248_v43, %v247_v38  ;;  %v1129_v43 = vsub.f32 %v1127_v40, %v3358_v2  ;;  %v1132_v2 = vld [vmem:[%s3895_s16] sm:$0xff] }
  0x9a   :  { %v3649_v53 = vpack.c.bf16 %v1133_v51, %v1132_v2 }
  0xdd   :  { %v149_v29 = vpop.f32.mrb[0].mxu0 }
  0xde   :  { %v2902_v30 = vpop.f32.mrb[1].mxu0  ;;  %2927 = vmatmul.mubr.msk.f32.vlgmr.msra.gmra.mrb[4].mxu0 %vm329_vm5, %v149_v29  ;;  %v1043_v29 = vld [vmem:[%s3893_s14 + $0x18] sm:$0xff] }
  0xdf   :  { %3141 = vmatpush3.bf16.msra.mxu0 %v3476_v26  ;;  %2944 = vmatprep.mubr.msk.f32.mxu0 %vm3235_vm2, %v3234_v0 }
  0xe0   :  { %v231_v33 = vpop.f32.mrb[0].mxu1  ;;  %3142 = vmatprep.subr.bf16.mxu0 %v3237_v11 }
  0xe1   :  { %v2907_v36 = vpop.f32.mrb[1].mxu1 }
  0xe2   :  { %2945 = vmatmul.mubr.msk.f32.vlgmr.msra.gmra.mrb[6].mxu0 %vm329_vm5, %v231_v33  ;;  %v3615_v33 = vpack.c.bf16 %v1043_v29, %v1042_v7 }
  0xe3   :  { %3144 = vmatpush3.bf16.msra.mxu0 %v3488_v31  ;;  %2951 = vmatprep.mubr.msk.f32.mxu0 %vm3235_vm2, %v3234_v0 }
  0xe4   :  { %3151 = vmatprep.subr.bf16.mxu0 %v3237_v11 }
  0xe6   :  { %2952 = vmatmul.mubr.msk.f32.vlgmr.msra.gmra.mrb[8].mxu0 %vm329_vm5, %v3353_v1 }
  0xe7   :  { %3153 = vmatpush3.bf16.msra.mxu0 %v3501_v37  ;;  %2969 = vmatprep.mubr.msk.f32.mxu0 %vm3235_vm2, %v3234_v0  ;;  %v471_v45 = vpop.f32.mrb[2].mxu1 }
  0xe8   :  { %3154 = vmatprep.subr.bf16.mxu0 %v3237_v11  ;;  %v2921_v46 = vpop.f32.mrb[3].mxu1 }
  0xea   :  { %2970 = vmatmul.mubr.msk.f32.vlgmr.msra.gmra.mrb[10].mxu0 %vm329_vm5, %v891_v41  ;;  %v1128_v41 = vsub.f32 %v1127_v40, %v3353_v1 }
  0xeb   :  { %3156 = vmatpush3.bf16.msra.mxu0 %v3516_v42  ;;  %2976 = vmatprep.mubr.msk.f32.mxu0 %vm3235_vm2, %v3234_v0 }
  0xec   :  { %3163 = vmatprep.subr.bf16.mxu0 %v3237_v11 }
  0xee   :  { %2977 = vmatmul.mubr.msk.f32.vlgmr.msra.gmra.mrb[12].mxu0 %vm329_vm5, %v249_v44  ;;  %v1134_v44 = vld [vmem:[%s3895_s16 + $0x10] sm:$0xff] }
  0xef   :  { %2994 = vmatprep.mubr.msk.f32.mxu0 %vm3235_vm2, %v3234_v0 }
  0xf2   :  { %v399_v47 = vpop.f32.mrb[2].mxu0 }
  0xf3   :  { %v2914_v48 = vpop.f32.mrb[3].mxu0  ;;  %v472_v49 = vadd.f32 %v471_v45, %v399_v47  ;;  %v1135_v45 = vld [vmem:[%s3895_s16 + $0x18] sm:$0xff]  ;;  %v1130_v47 = vand.u32 2147483647, %v1128_v41  ;;  %v1503_v41 = vrot.slane %v3550_v56, 4 }
  0xf4   :  { %v3637_v46 = vpack.c.bf16 %v1135_v45, %v1134_v44  ;;  %v1131_v48 = vand.u32 2147483647, %v1129_v43 }
  0xf6   :  { %3165 = vmatpush3.bf16.msra.mxu0 %v3637_v46  ;;  %v1139_v50 = vrot.slane %v1131_v48, 4 }
  0xf7   :  { %3166 = vmatprep.subr.bf16.mxu0 %v3237_v11 }
 0x1b1   :  { %v546_v58 = vpop.f32.mrb[4].mxu0 }
 0x1b2   :  { %v550_v60 = vadd.f32 %v546_v58, %v472_v49  ;;  %v2928_v61 = vpop.f32.mrb[5].mxu0  ;;  %v1138_v49 = vrot.slane %v1130_v47, 4 }
 0x1b4   :  { %v558_v3 = vadd.f32 %v3564_v59, %v550_v60  ;;  %v1140_v1 = vsel %vm79_vm0, %v1138_v49, %v1139_v50  ;;  %v3658_v60 = vld [vmem:[%s3896_s7] ss:$0 sm:$0xff] }
 0x1b5   :  { %v718_v4 = vpop.f32.mrb[6].mxu0  ;;  %2995 = vmatmul.mubr.msk.f32.vlgmr.msra.gmra.mrb[14].mxu0 %vm329_vm5, %v1140_v1 }
 0x1b6   :  { %v559_v6 = vmax.f32 %v558_v3, 0.0  ;;  %v2946_v8 = vpop.f32.mrb[7].mxu0  ;;  %3001 = vmatprep.mubr.msk.f32.mxu0 %vm3235_vm2, %v3234_v0  ;;  %3168 = vmatpush3.bf16.msra.mxu0 %v3649_v53 }
 0x1b7   :  { %3011 = vmatprep.subr.mxu0 %v3234_v0  ;;  %v1407_v8 = vpop.permute.xlu1 %1406 }
 0x1b8   :  { %2938 = vmatmul.mubr.msk.f32.vlgmr.msra.gmra.mrb[4].mxu1 %vm571_vm3, %v559_v6 }
 0x1b9   :  { %v790_v12 = vpop.f32.mrb[8].mxu0  ;;  %3147 = vmatpush3.bf16.msra.mxu1 %v3573_v5  ;;  %2962 = vmatprep.mubr.msk.f32.mxu1 %vm3235_vm2, %v3234_v0 }
 0x1ba   :  { %v791_v18 = vadd.f32 %v790_v12, %v718_v4  ;;  %v2953_v20 = vpop.f32.mrb[9].mxu0  ;;  %3148 = vmatprep.subr.bf16.mxu1 %v3237_v11  ;;  %v1044_v12 = vld [vmem:[%s3899_s15] sm:$0x1] }
 0x1bc   :  { %v801_v23 = vadd.f32 %v3585_v13, %v791_v18  ;;  %v1120_v18 = vsub.s32 0, %v3413_v19 }
 0x1bd   :  { %3150 = vmatpush3.bf16.msra.mxu1 %v3588_v16  ;;  %v960_v24 = vpop.f32.mrb[10].mxu0 }
 0x1be   :  { %v802_v27 = vmax.f32 %v801_v23, 0.0  ;;  %v2971_v28 = vpop.f32.mrb[11].mxu0  ;;  %3157 = vmatprep.subr.bf16.mxu1 %v3237_v11 }
 0x1c0   :  { %2963 = vmatmul.mubr.msk.f32.vlgmr.msra.gmra.mrb[6].mxu1 %vm571_vm3, %v802_v27  ;;  %v1409_v27 = vpop.permute.xlu1 %1408 }
 0x1c1   :  { %v1033_v30 = vpop.f32.mrb[12].mxu0  ;;  %3159 = vmatpush3.bf16.msra.mxu1 %v3601_v25  ;;  %2987 = vmatprep.mubr.msk.f32.mxu1 %vm3235_vm2, %v3234_v0 }
 0x1c2   :  { %v1034_v34 = vadd.f32 %v1033_v30, %v960_v24  ;;  %v2978_v35 = vpop.f32.mrb[13].mxu0  ;;  %3160 = vmatprep.subr.bf16.mxu1 %v3237_v11 }
 0x1c4   :  { %v1038_v36 = vadd.f32 %v1037_v32, %v1034_v34  ;;  %v2772_v32 = vld [vmem:[%s3920_s0 + $0x8] sm:$0x3f] }
 0x1c5   :  { %3162 = vmatpush3.bf16.msra.mxu1 %v3615_v33 }
 0x1c6   :  { %v1039_v38 = vmax.f32 %v1038_v36, 0.0  ;;  %3169 = vmatprep.subr.bf16.mxu1 %v3237_v11  ;;  %v1295_v36 = vld [vmem:[%s3900_s18] sm:$0xff] }
 0x1c8   :  { %2988 = vmatmul.mubr.msk.f32.vlgmr.msra.gmra.mrb[8].mxu1 %vm571_vm3, %v1039_v38  ;;  %v1296_v38 = vld [vmem:[%s3900_s18 + $0x8] sm:$0xff] }
 0x1c9   :  { %3008 = vmatprep.mubr.msk.f32.mxu1 %vm3235_vm2, %v3234_v0  ;;  %v3707_v40 = vpack.c.bf16 %v1296_v38, %v1295_v36 }
 0x1cb   :  { %3171 = vmatpush3.bf16.msra.mxu1 %v3707_v40 }
 0x1cc   :  { %3016 = vmatprep.subr.mxu1 %v3234_v0 }
 0x288   :  { %v3699_v34 = vpop.f32.mrb[14].mxu0 }
 0x289   :  { %v2996_v35 = vpop.f32.mrb[15].mxu0 }
 0x28b   :  { %v641_v54 = vpop.f32.mrb[4].mxu1 }
 0x28c   :  { %v2939_v58 = vpop.f32.mrb[5].mxu1  ;;  %v642_v61 = vadd.f32 %v3658_v60, %v641_v54 }
 0x28e   :  { %v1399_v3 = vrot.slane %v642_v61, 4 }
 0x293   :  { %v883_v63 = vpop.f32.mrb[6].mxu1 }
 0x294   :  { %v884_v4 = vadd.f32 %v3664_v62, %v883_v63  ;;  %v2964_v6 = vpop.f32.mrb[7].mxu1 }
 0x296   :  { %v1404_v9 = vsel %vm79_vm0, %v884_v4, %v1399_v3 }
 0x297   :  { %v1412_v10 = vsel %vm329_vm5, %v1404_v9, %v1407_v8 }
 0x298   :  { %1414 = vst.msk [vmem:[%s3898_s20] sm:$0xff] %vm571_vm3, %v1412_v10 }
 0x29b   :  { %v1114_v20 = vpop.f32.mrb[8].mxu1 }
 0x29c   :  { %v1115_v21 = vadd.f32 %v1114_v20, %v1044_v12  ;;  %v2989_v22 = vpop.f32.mrb[9].mxu1  ;;  %v27_v20 = vstv %s3901_s19 }
 0x29d   :  { %28 = vst [vmem:[#allocation2] sm:$0x1] %v27_v20 }
 0x29e   :  { %v1121_v23 = vrot.slane %v1115_v21, %v1120_v18  ;;  %v1402_v24 = vrot.slane %v1115_v21, 6 }
 0x2a0   :  { %v1122_v28 = vsub.f32 %v1121_v23, %v642_v61  ;;  %v1405_v7 = vsel %vm318_vm14, %v1399_v3, %v1402_v24 }
 0x2a1   :  { %v1413_v29 = vsel %vm329_vm5, %v1405_v7, %v1409_v27 }
 0x2a2   :  { %v1123_v30 = vand.u32 2147483647, %v1122_v28  ;;  %1416 = vst.msk [vmem:[%s3898_s20 + $0x8] sm:$0x7] %vm1415_vm4, %v1413_v29 }
 0x2a4   :  { %3002 = vmatmul.mubr.msk.f32.vlgmr.msra.gmra.mrb[16].mxu0 %vm329_vm5, %v1123_v30 }
 0x2a5   :  { %3012 = vmatpush3.msk.msra.mxu0 %vm79_vm0, %v3550_v56  ;;  %3013 = vmatprep.mubr.msk.f32.mxu0 %vm3235_vm2, %v3234_v0 }
 0x2a6   :  { %3172 = vmatprep.subr.bf16.mxu0 %v3237_v11 }
 0x2a8   :  { %3014 = vmatmul.mubr.msk.f32.vlgmr.msra.gmra.mrb[18].mxu0 %vm75_vm1, %v2772_v32  ;;  %vm3925_vm1 = vcmask 1044480  }
 0x2a9   :  { %3174 = vmatpush3.bf16.msra.mxu0 %v3403_v15  ;;  %3025 = vmatprep.mubr.msk.f32.mxu0 %vm3235_vm2, %v3234_v0  ;;  %v1504_v15 = vrot.slane %v3558_v57, 4 }
 0x2aa   :  { %3178 = vmatprep.subr.bf16.mxu0 %v3237_v11 }
 0x2ab   :  { %v3714_v43 = vsel %vm79_vm0, %v1503_v41, %v1504_v15 }
 0x2ac   :  { %v1595_v44 = vsel %vm250_vm7, -inf, %v3714_v43  ;;  %v1603_v45 = vsel %vm261_vm8, -inf, %v3714_v43  ;;  %v1611_v47 = vsel %vm272_vm9, -inf, %v3714_v43  ;;  %v1619_v48 = vsel %vm283_vm10, -inf, %v3714_v43 }
 0x2ad   :  { %v1596_v49 = vsel %vm242_vm6, %v1595_v44, -inf  ;;  %v1604_v50 = vsel %vm242_vm6, %v1603_v45, -inf  ;;  %v1612_v1 = vsel %vm242_vm6, %v1611_v47, -inf  ;;  %v1620_v2 = vsel %vm242_vm6, %v1619_v48, -inf }
 0x2ae   :  { %v1597_v51 = vrot.slane %v1596_v49, 4  ;;  %v1605_v54 = vrot.slane %v1604_v50, 4  ;;  %v1613_v58 = vrot.slane %v1612_v1, 4  ;;  %v1621_v61 = vrot.slane %v1620_v2, 4 }
 0x2af   :  { %v1627_v63 = vsel %vm294_vm11, -inf, %v3714_v43  ;;  %v1635_v3 = vsel %vm305_vm12, -inf, %v3714_v43  ;;  %vm3926_vm7 = vcmask 1045504   ;;  %vm3927_vm8 = vcmask 48128  }
 0x2b0   :  { %v1598_v4 = vmax.f32 %v1596_v49, %v1597_v51  ;;  %v1606_v6 = vmax.f32 %v1604_v50, %v1605_v54  ;;  %v1614_v8 = vmax.f32 %v1612_v1, %v1613_v58  ;;  %v1622_v9 = vmax.f32 %v1620_v2, %v1621_v61 }
 0x2b1   :  { %v1628_v10 = vsel %vm242_vm6, %v1627_v63, -inf  ;;  %v1636_v12 = vsel %vm242_vm6, %v1635_v3, -inf  ;;  %vm1377_vm9 = vcmask 5120  }
 0x2b2   :  { %v1599_v21 = vrot.slane %v1598_v4, 2  ;;  %v1607_v22 = vrot.slane %v1606_v6, 2  ;;  %v1615_v23 = vrot.slane %v1614_v8, 2  ;;  %v1623_v24 = vrot.slane %v1622_v9, 2 }
 0x2b3   :  { %v1629_v27 = vrot.slane %v1628_v10, 4  ;;  %v1637_v28 = vrot.slane %v1636_v12, 4 }
 0x2b4   :  { %v1600_v7 = vmax.f32 %v1598_v4, %v1599_v21  ;;  %v1608_v29 = vmax.f32 %v1606_v6, %v1607_v22  ;;  %v1616_v30 = vmax.f32 %v1614_v8, %v1615_v23  ;;  %v1624_v32 = vmax.f32 %v1622_v9, %v1623_v24 }
 0x2b5   :  { %v1630_v35 = vmax.f32 %v1628_v10, %v1629_v27  ;;  %v1638_v36 = vmax.f32 %v1636_v12, %v1637_v28  ;;  %v3756_v12 = vld [vmem:[%s3902_s17] ss:$0 sm:$0xff]  ;;  %v1584_v27 = vpop.permute.xlu0 %1583 }
 0x2b6   :  { %v1601_v38 = vrot.slane %v1600_v7, 1  ;;  %v1609_v15 = vrot.slane %v1608_v29, 1  ;;  %v1617_v41 = vrot.slane %v1616_v30, 1  ;;  %v1625_v44 = vrot.slane %v1624_v32, 1 }
 0x2b7   :  { %v1631_v45 = vrot.slane %v1630_v35, 2  ;;  %v1639_v47 = vrot.slane %v1638_v36, 2  ;;  %v1587_v28 = vmul.f32 %v1584_v27, %v3714_v43 }
 0x2b8   :  { %v1602_v48 = vmax.f32 %v1600_v7, %v1601_v38  ;;  %v1610_v49 = vmax.f32 %v1608_v29, %v1609_v15  ;;  %v1618_v50 = vmax.f32 %v1616_v30, %v1617_v41  ;;  %v1626_v1 = vmax.f32 %v1624_v32, %v1625_v44  ;;  %v3789_v30 = vld [vmem:[#allocation2] ss:$0 sm:$0xff] }
 0x2b9   :  { %v1632_v2 = vmax.f32 %v1630_v35, %v1631_v45  ;;  %v1640_v51 = vmax.f32 %v1638_v36, %v1639_v47  ;;  %v1588_v7 = vsel %vm242_vm6, %v1587_v28, 0.0 }
 0x2ba   :  { %v1643_v54 = vsel %vm316_vm13, %v1602_v48, %v1610_v49  ;;  %v1589_v29 = vrot.slane %v1588_v7, 4 }
 0x2bb   :  { %v1633_v58 = vrot.slane %v1632_v2, 1  ;;  %v1641_v61 = vrot.slane %v1640_v51, 1  ;;  %v1644_v63 = vsel %vm318_vm14, %v1643_v54, %v1618_v50 }
 0x2bc   :  { %v1645_v3 = vsel %vm320_vm15, %v1644_v63, %v1626_v1  ;;  %v1590_v32 = vadd.f32 %v1589_v29, %v1588_v7  ;;  %v2212_v1 = vrot.slane %v3558_v57, 2 }
 0x2bd   :  { %v1634_v4 = vmax.f32 %v1632_v2, %v1633_v58  ;;  %v1642_v6 = vmax.f32 %v1640_v51, %v1641_v61 }
 0x2be   :  { %v1591_v15 = vrot.slane %v1590_v32, 2 }
 0x2bf   :  { %v1646_v8 = vsel %vm79_vm0, %v1645_v3, %v1634_v4 }
 0x2c0   :  { %v1647_v9 = vsel %vm3925_vm1, %v1646_v8, %v1642_v6  ;;  %v1592_v48 = vadd.f32 %v1591_v15, %v1590_v32 }
 0x2c1   :  { %3026 = vmatmul.mubr.msk.f32.vlgmr.msra.gmra.mrb[20].mxu0 %vm329_vm5, %v1647_v9 }
 0x2c2   :  { %3180 = vmatpush3.bf16.msra.mxu0 %v3459_v14  ;;  %3039 = vmatprep.mubr.msk.f32.mxu0 %vm3235_vm2, %v3234_v0 }
 0x2c3   :  { %3187 = vmatprep.subr.bf16.mxu0 %v3237_v11 }
 0x377   :  { %v1282_v10 = vpop.f32.mrb[16].mxu0 }
 0x378   :  { %v1283_v20 = vadd.f32 %v1282_v10, %v3699_v34  ;;  %v3003_v21 = vpop.f32.mrb[17].mxu0  ;;  %v2775_v34 = vld [vmem:[%s3921_s8 + $0x4] sm:$0xf] }
 0x37a   :  { %v1293_v22 = vadd.f32 %v3756_v12, %v1283_v20 }
 0x37b   :  { %v1496_v23 = vpop.f32.mrb[18].mxu0 }
 0x37c   :  { %v1294_v24 = vmax.f32 %v1293_v22, 0.0  ;;  %3040 = vmatmul.mubr.msk.f32.vlgmr.msra.gmra.mrb[22].mxu0 %vm329_vm5, %v1496_v23  ;;  %v3015_v14 = vpop.f32.mrb[19].mxu0 }
 0x37d   :  { %3189 = vmatpush3.bf16.msra.mxu0 %v3476_v26  ;;  %3057 = vmatprep.mubr.msk.f32.mxu0 %vm3235_vm2, %v3234_v0 }
 0x37e   :  { %3009 = vmatmul.mubr.msk.f32.vlgmr.msra.gmra.mrb[10].mxu1 %vm329_vm5, %v1294_v24  ;;  %3190 = vmatprep.subr.bf16.mxu0 %v3237_v11 }
 0x37f   :  { %3017 = vmatpush3.msk.msra.mxu1 %vm3926_vm7, %v3714_v43  ;;  %3018 = vmatprep.mubr.msk.f32.mxu1 %vm3235_vm2, %v3234_v0 }
 0x380   :  { %3175 = vmatprep.subr.bf16.mxu1 %v3237_v11 }
 0x382   :  { %3019 = vmatmul.mubr.msk.f32.vlgmr.msra.gmra.mrb[12].mxu1 %vm3927_vm8, %v2775_v34 }
 0x383   :  { %3177 = vmatpush3.bf16.msra.mxu1 %v3408_v17  ;;  %3032 = vmatprep.mubr.msk.f32.mxu1 %vm3235_vm2, %v3234_v0 }
 0x384   :  { %3181 = vmatprep.subr.bf16.mxu1 %v3237_v11 }
 0x386   :  { %3033 = vmatmul.mubr.msk.f32.vlgmr.msra.gmra.mrb[14].mxu1 %vm329_vm5, %v3714_v43 }
 0x387   :  { %3183 = vmatpush3.bf16.msra.mxu1 %v3533_v52  ;;  %3050 = vmatprep.mubr.msk.f32.mxu1 %vm3235_vm2, %v3234_v0 }
 0x388   :  { %3184 = vmatprep.subr.bf16.mxu1 %v3237_v11 }
 0x38b   :  { %3186 = vmatpush3.bf16.msra.mxu1 %v3543_v55 }
 0x38c   :  { %3193 = vmatprep.subr.bf16.mxu1 %v3237_v11 }
 0x394   :  { %v1721_v17 = vpop.f32.mrb[20].mxu0 }
 0x395   :  { %v3027_v26 = vpop.f32.mrb[21].mxu0 }
 0x44f   :  { %v1868_v52 = vpop.f32.mrb[22].mxu0 }
 0x450   :  { %v3041_v35 = vpop.f32.mrb[23].mxu0 }
 0x451   :  { %v1373_v36 = vpop.f32.mrb[10].mxu1 }
 0x452   :  { %v1374_v38 = vadd.f32 %v3789_v30, %v1373_v36  ;;  %v3010_v55 = vpop.f32.mrb[11].mxu1 }
 0x454   :  { %v1378_v41 = vsel %vm1377_vm9, %v1374_v38, -inf }
 0x455   :  { %v1379_v44 = vrot.slane %v1378_v41, 4  ;;  %v1577_v45 = vpop.f32.mrb[12].mxu1 }
 0x456   :  { %v3020_v47 = vpop.f32.mrb[13].mxu1  ;;  %3058 = vmatmul.mubr.msk.f32.vlgmr.msra.gmra.mrb[24].mxu0 %vm329_vm5, %v1577_v45 }
 0x457   :  { %v1380_v43 = vmax.f32 %v1378_v41, %v1379_v44  ;;  %3192 = vmatpush3.bf16.msra.mxu0 %v3488_v31  ;;  %3064 = vmatprep.mubr.msk.f32.mxu0 %vm3235_vm2, %v3234_v0  ;;  %v1593_v31 = vrot.slane %v1592_v48, 1 }
 0x458   :  { %3199 = vmatprep.subr.bf16.mxu0 %v3237_v11 }
 0x459   :  { %v1381_v49 = vrot.slane %v1380_v43, 2  ;;  %v1793_v50 = vpop.f32.mrb[14].mxu1  ;;  %v1594_v4 = vadd.f32 %v1593_v31, %v1592_v48  ;;  %v2728_v48 = vpop.permute.xlu0 %2727 }
 0x45a   :  { %3065 = vmatmul.mubr.msk.f32.vlgmr.msra.gmra.mrb[26].mxu0 %vm329_vm5, %v3550_v56  ;;  %v1794_v2 = vadd.f32 %v1793_v50, %v1721_v17  ;;  %v3034_v51 = vpop.f32.mrb[15].mxu1 }
 0x45b   :  { %v1382_v54 = vmax.f32 %v1380_v43, %v1381_v49  ;;  %3201 = vmatpush3.bf16.msra.mxu0 %v3501_v37  ;;  %3082 = vmatprep.mubr.msk.f32.mxu0 %vm3235_vm2, %v3234_v0  ;;  %v2730_v51 = vpop.permute.xlu1 %2729 }
 0x45c   :  { %3202 = vmatprep.subr.bf16.mxu0 %v3237_v11  ;;  %v1872_v58 = vadd.f32 %v1868_v52, %v1794_v2  ;;  %v2358_v52 = vld [vmem:[%s3894_s13] sm:$0x1] }
 0x45d   :  { %v1383_v61 = vrot.slane %v1382_v54, 1 }
 0x45e   :  { %3083 = vmatmul.mubr.msk.f32.vlgmr.msra.gmra.mrb[28].mxu0 %vm329_vm5, %v2212_v1  ;;  %v1880_v63 = vadd.f32 %v3564_v59, %v1872_v58 }
 0x45f   :  { %v1384_v3 = vmax.f32 %v1382_v54, %v1383_v61  ;;  %3204 = vmatpush3.bf16.msra.mxu0 %v3516_v42  ;;  %3089 = vmatprep.mubr.msk.f32.mxu0 %vm3235_vm2, %v3234_v0 }
 0x460   :  { %v1881_v37 = vmax.f32 %v1880_v63, 0.0  ;;  %3211 = vmatprep.subr.bf16.mxu0 %v3237_v11 }
 0x461   :  { %v1385_v6 = vsub.f32 %v1374_v38, %v1384_v3 }
 0x462   :  { %3090 = vmatmul.mubr.msk.f32.vlgmr.msra.gmra.mrb[30].mxu0 %vm329_vm5, %v1594_v4  ;;  %3051 = vmatmul.mubr.msk.f32.vlgmr.msra.gmra.mrb[16].mxu1 %vm571_vm3, %v1881_v37 }
 0x463   :  { %v1386_v8 = vmul.f32 1.442695, %v1385_v6  ;;  %3195 = vmatpush3.bf16.msra.mxu1 %v3573_v5  ;;  %3075 = vmatprep.mubr.msk.f32.mxu1 %vm3235_vm2, %v3234_v0 }
 0x464   :  { %3196 = vmatprep.subr.bf16.mxu1 %v3237_v11  ;;  %3213 = vmatpush3.bf16.msra.mxu0 %v3637_v46 }
 0x465   :  { %3226 = vpow2.f32 %v1386_v8  ;;  %3107 = vmatprep.mubr.msk.f32.mxu0 %vm3235_vm2, %v3234_v0  ;;  %3214 = vmatprep.subr.bf16.mxu0 %v3237_v11 }
 0x467   :  { %3198 = vmatpush3.bf16.msra.mxu1 %v3588_v16 }
 0x468   :  { %3205 = vmatprep.subr.bf16.mxu1 %v3237_v11 }
 0x46f   :  { %v3227_v42 = vpop.eup %3226 }
 0x470   :  { %v1388_v59 = vsel %vm1377_vm9, %v3227_v42, 0.0 }
 0x471   :  { %v1389_v5 = vrot.slane %v1388_v59, 4 }
 0x473   :  { %v1390_v9 = vadd.f32 %v1389_v5, %v1388_v59 }
 0x475   :  { %v1391_v10 = vrot.slane %v1390_v9, 2 }
 0x477   :  { %v1392_v20 = vadd.f32 %v1391_v10, %v1390_v9 }
 0x479   :  { %v1393_v21 = vrot.slane %v1392_v20, 1 }
 0x47b   :  { %v1394_v22 = vadd.f32 %v1393_v21, %v1392_v20 }
 0x47d   :  { %3228 = vrcp.f32 %v1394_v22 }
 0x487   :  { %v3229_v46 = vpop.eup %3228 }
 0x488   :  { %v1396_v23 = vmul.f32 %v3229_v46, %v3227_v42 }
 0x48a   :  { %1397 = vst.msk [vmem:[%s3903_s21] sm:$0x3f] %vm1377_vm9, %v1396_v23 }
 0x529   :  { %v2039_v16 = vpop.f32.mrb[24].mxu0 }
 0x52a   :  { %v3059_v24 = vpop.f32.mrb[25].mxu0 }
 0x52d   :  { %v2111_v14 = vpop.f32.mrb[26].mxu0 }
 0x52e   :  { %v2112_v34 = vadd.f32 %v2111_v14, %v2039_v16  ;;  %v3066_v17 = vpop.f32.mrb[27].mxu0 }
 0x530   :  { %v2122_v26 = vadd.f32 %v3585_v13, %v2112_v34 }
 0x531   :  { %v2281_v27 = vpop.f32.mrb[28].mxu0 }
 0x532   :  { %v2123_v28 = vmax.f32 %v2122_v26, 0.0  ;;  %v3084_v7 = vpop.f32.mrb[29].mxu0 }
 0x534   :  { %3076 = vmatmul.mubr.msk.f32.vlgmr.msra.gmra.mrb[18].mxu1 %vm571_vm3, %v2123_v28 }
 0x535   :  { %v2354_v29 = vpop.f32.mrb[30].mxu0  ;;  %3207 = vmatpush3.bf16.msra.mxu1 %v3601_v25  ;;  %3100 = vmatprep.mubr.msk.f32.mxu1 %vm3235_vm2, %v3234_v0  ;;  %v1962_v32 = vpop.f32.mrb[16].mxu1  ;;  %v2448_v25 = vrot.slane %v3558_v57, %v1126_v39 }
 0x536   :  { %v2355_v35 = vadd.f32 %v2354_v29, %v2281_v27  ;;  %v3091_v36 = vpop.f32.mrb[31].mxu0  ;;  %3208 = vmatprep.subr.bf16.mxu1 %v3237_v11  ;;  %v3052_v13 = vpop.f32.mrb[17].mxu1 }
 0x537   :  { %v2449_v15 = vsub.f32 %v2448_v25, %v3550_v56  ;;  %v2450_v41 = vsub.f32 %v2448_v25, %v3558_v57 }
 0x538   :  { %v2359_v38 = vadd.f32 %v2358_v52, %v2355_v35 }
 0x539   :  { %3210 = vmatpush3.bf16.msra.mxu1 %v3615_v33  ;;  %v2451_v44 = vand.u32 2147483647, %v2449_v15  ;;  %v2452_v33 = vand.u32 2147483647, %v2450_v41 }
 0x53a   :  { %v2360_v55 = vmax.f32 %v2359_v38, 0.0  ;;  %3217 = vmatprep.subr.bf16.mxu1 %v3237_v11 }
 0x53b   :  { %v2459_v45 = vrot.slane %v2451_v44, 4  ;;  %v2460_v47 = vrot.slane %v2452_v33, 4 }
 0x53c   :  { %3101 = vmatmul.mubr.msk.f32.vlgmr.msra.gmra.mrb[20].mxu1 %vm571_vm3, %v2360_v55 }
 0x53d   :  { %3219 = vmatpush3.bf16.msra.mxu1 %v3707_v40  ;;  %3121 = vmatprep.mubr.msk.f32.mxu1 %vm3235_vm2, %v3234_v0  ;;  %v2461_v11 = vsel %vm79_vm0, %v2459_v45, %v2460_v47  ;;  %v1963_v40 = vadd.f32 %v3658_v60, %v1962_v32 }
 0x53e   :  { %3108 = vmatmul.mubr.msk.f32.vlgmr.msra.gmra.mrb[32].mxu0 %vm329_vm5, %v2461_v11 }
 0x53f   :  { %3216 = vmatpush3.bf16.msra.mxu0 %v3649_v53  ;;  %3114 = vmatprep.mubr.msk.f32.mxu0 %vm3235_vm2, %v3234_v0  ;;  %v2720_v43 = vrot.slane %v1963_v40, 4  ;;  %v2365_v0 = vld [vmem:[%s3899_s15] sm:$0x1] }
 0x607   :  { %v2204_v39 = vpop.f32.mrb[18].mxu1 }
 0x608   :  { %v2205_v56 = vadd.f32 %v3664_v62, %v2204_v39  ;;  %v3077_v57 = vpop.f32.mrb[19].mxu1 }
 0x60a   :  { %v2725_v49 = vsel %vm79_vm0, %v2205_v56, %v2720_v43 }
 0x60b   :  { %v2733_v50 = vsel %vm329_vm5, %v2725_v49, %v2728_v48 }
 0x60c   :  { %2798 = vst.msk [vmem:[%s3898_s20 + $0x10] sm:$0xff] %vm571_vm3, %v2733_v50 }
 0x60f   :  { %v2435_v53 = vpop.f32.mrb[20].mxu1 }
 0x610   :  { %v2436_v60 = vadd.f32 %v2435_v53, %v2365_v0  ;;  %v3102_v1 = vpop.f32.mrb[21].mxu1 }
 0x611   :  { %v2530_v63 = vpop.f32.mrb[32].mxu0 }
 0x612   :  { %v2442_v62 = vrot.slane %v2436_v60, %v1120_v18  ;;  %v2723_v2 = vrot.slane %v2436_v60, 6  ;;  %v3109_v3 = vpop.f32.mrb[33].mxu0 }
 0x614   :  { %v2443_v54 = vsub.f32 %v2442_v62, %v1963_v40  ;;  %v2726_v31 = vsel %vm318_vm14, %v2720_v43, %v2723_v2 }
 0x615   :  { %v2734_v58 = vsel %vm329_vm5, %v2726_v31, %v2730_v51 }
 0x616   :  { %v2444_v61 = vand.u32 2147483647, %v2443_v54  ;;  %2799 = vst.msk [vmem:[%s3898_s20 + $0x18] sm:$0x7] %vm1415_vm4, %v2734_v58 }
 0x618   :  { %3115 = vmatmul.mubr.msk.f32.vlgmr.msra.gmra.mrb[34].mxu0 %vm329_vm5, %v2444_v61 }
 0x6eb   :  { %v2603_v4 = vpop.f32.mrb[34].mxu0 }
 0x6ec   :  { %v2604_v19 = vadd.f32 %v2603_v4, %v2530_v63  ;;  %v3116_v18 = vpop.f32.mrb[35].mxu0 }
 0x6ee   :  { %v2614_v37 = vadd.f32 %v3756_v12, %v2604_v19 }
 0x6f0   :  { %v2615_v6 = vmax.f32 %v2614_v37, 0.0 }
 0x6f2   :  { %3122 = vmatmul.mubr.msk.f32.vlgmr.msra.gmra.mrb[22].mxu1 %vm329_vm5, %v2615_v6 }
 0x7c5   :  { %v2694_v8 = vpop.f32.mrb[22].mxu1 }
 0x7c6   :  { %v2695_v42 = vadd.f32 %v3789_v30, %v2694_v8  ;;  %v3123_v59 = vpop.f32.mrb[23].mxu1 }
 0x7c8   :  { %v2698_v5 = vsel %vm1377_vm9, %v2695_v42, -inf }
 0x7c9   :  { %v2699_v9 = vrot.slane %v2698_v5, 4 }
 0x7cb   :  { %v2700_v10 = vmax.f32 %v2698_v5, %v2699_v9 }
 0x7cd   :  { %v2701_v20 = vrot.slane %v2700_v10, 2 }
 0x7cf   :  { %v2702_v21 = vmax.f32 %v2700_v10, %v2701_v20 }
 0x7d1   :  { %v2703_v22 = vrot.slane %v2702_v21, 1 }
 0x7d3   :  { %v2704_v46 = vmax.f32 %v2702_v21, %v2703_v22 }
 0x7d5   :  { %v2705_v23 = vsub.f32 %v2695_v42, %v2704_v46 }
 0x7d7   :  { %v2706_v16 = vmul.f32 1.442695, %v2705_v23 }
 0x7d9   :  { %3230 = vpow2.f32 %v2706_v16 }
 0x7e3   :  { %v3231_v24 = vpop.eup %3230 }
 0x7e4   :  { %v2708_v12 = vsel %vm1377_vm9, %v3231_v24, 0.0 }
 0x7e5   :  { %v2709_v14 = vrot.slane %v2708_v12, 4 }
 0x7e7   :  { %v2710_v34 = vadd.f32 %v2709_v14, %v2708_v12 }
 0x7e9   :  { %v2711_v17 = vrot.slane %v2710_v34, 2 }
 0x7eb   :  { %v2712_v26 = vadd.f32 %v2711_v17, %v2710_v34 }
 0x7ed   :  { %v2713_v30 = vrot.slane %v2712_v26, 1 }
 0x7ef   :  { %v2714_v27 = vadd.f32 %v2713_v30, %v2712_v26 }
 0x7f1   :  { %3232 = vrcp.f32 %v2714_v27 }
 0x7fb   :  { %v3233_v28 = vpop.eup %3232 }
 0x7fc   :  { %v2716_v7 = vmul.f32 %v3233_v28, %v3231_v24 }
 0x7fe   :  { %2797 = vst.msk [vmem:[%s3903_s21 + $0x8] sm:$0x3f] %vm1377_vm9, %v2716_v7 }

// kernel: node_update_fwd.6
= control target key start
LH: loop header
LB: loop body
LE: loop exit
PB: predicated region body
PF: predicated region fallthrough
CT: control target
= control target key end

     0   :  { %vm79_vm0 = vcmask 1043456   ;;  %vm75_vm1 = vcmask 31744   ;;  %v3411_v0 = vmov 0.0   ;;  %vm3412_vm2 = vmmov 0   ;;  %s3415_s23 = smov 16   ;;  %s4163_s0 = inlined_call_operand.vmem [shape: f32[2,11,32], index: 0, kind: input, shape index: {}]   ;;  %s4164_s2 = inlined_call_operand.vmem [shape: f32[2,6,4], index: 2, kind: input, shape index: {}]   ;;  %s4165_s4 = inlined_call_operand.vmem [shape: f32[96,32], index: 4, kind: input, shape index: {}]   ;;  %s4166_s1 = inlined_call_operand.vmem [shape: f32[2,4,6], index: 1, kind: input, shape index: {}]   ;;  %s4167_s6 = inlined_call_operand.vmem [shape: f32[32,16], index: 6, kind: input, shape index: {}]   ;;  %s4168_s8 = inlined_call_operand.vmem [shape: f32[64,32], index: 8, kind: input, shape index: {}]   ;;  %s4169_s3 = inlined_call_operand.vmem [shape: f32[2,6,1], index: 3, kind: input, shape index: {}]   ;;  %s4170_s5 = inlined_call_operand.vmem [shape: f32[1,32], index: 5, kind: input, shape index: {}]   ;;  %s4171_s10 = inlined_call_operand.vmem [shape: f32[32,16], index: 10, kind: input, shape index: {}]   ;;  %s4172_s12 = inlined_call_operand.vmem [shape: f32[64,32], index: 12, kind: input, shape index: {}]   ;;  %s4173_s9 = inlined_call_operand.vmem [shape: f32[1,32], index: 9, kind: input, shape index: {}]   ;;  %s4174_s14 = inlined_call_operand.vmem [shape: f32[32,16], index: 14, kind: input, shape index: {}]   ;;  %s4175_s7 = inlined_call_operand.vmem [shape: f32[1,16], index: 7, kind: input, shape index: {}]   ;;  %s4176_s11 = inlined_call_operand.vmem [shape: f32[1,16], index: 11, kind: input, shape index: {}]   ;;  %s4177_s20 = inlined_call_operand.vmem [shape: f32[2,11,48], index: 20, kind: output, shape index: {0}]   ;;  %s4178_s13 = inlined_call_operand.vmem [shape: f32[1,32], index: 13, kind: input, shape index: {}]   ;;  %s4179_s16 = inlined_call_operand.vmem [shape: f32[48,16], index: 16, kind: input, shape index: {}]   ;;  %s4180_s15 = inlined_call_operand.vmem [shape: f32[1,16], index: 15, kind: input, shape index: {}]   ;;  %s4181_s18 = inlined_call_operand.vmem [shape: f32[16,1], index: 18, kind: input, shape index: {}]   ;;  %s4182_s19 = inlined_call_operand.<no memory space> [shape: f32[1,1], index: 19, kind: input, shape index: {}]   ;;  %s4183_s17 = inlined_call_operand.vmem [shape: f32[1,16], index: 17, kind: input, shape index: {}]   ;;  %s4184_s21 = inlined_call_operand.vmem [shape: f32[2,6,1], index: 21, kind: output, shape index: {1}]  }
   0x1   :  { %4194 = sst [smem:[#allocation3_spill]] %s4163_s0  ;;  %2963 = vmatprep.subr.mxu0 %v3411_v0  ;;  %2965 = vmatprep.mubr.msk.f32.mxu0 %vm3412_vm2, %v3411_v0  ;;  %v69_v3 = vlaneseq  ;;  %vm4192_vm3 = vcmask 1045504   ;;  %v3413_v7 = vmov 0.0|0.0   ;;  %vm4191_vm4 = vcmask 48128  }
   0x2   :  { %4195 = sst [smem:[#allocation4_spill]] %s4164_s2  ;;  %s4200_s26 = sld [smem:[#allocation3_spill]]  ;;  %2968 = vmatprep.subr.mxu1 %v3411_v0  ;;  %2970 = vmatprep.mubr.msk.f32.mxu1 %vm3412_vm2, %v3411_v0  ;;  %vm242_vm5 = vcmask 259072   ;;  %vm316_vm12 = vcmask 1040384   ;;  %vm333_vm13 = vcmask 261120   ;;  %vm318_vm14 = vcmask 1041408  }
   0x3   :  { %4196 = sst [smem:[#allocation5_spill]] %s4165_s4  ;;  %s4201_s0 = sld [smem:[#allocation4_spill]]  ;;  %v3555_v10 = vshrl.u32 %v69_v3, 7  ;;  %vm320_vm15 = vcmask 1042432  }
   0x4   :  { %4197 = sst [smem:[#allocation6_spill]] %s4166_s1 }
   0x5   :  { %4198 = sst [smem:[#allocation7_spill]] %s4167_s6  ;;  %s4203_s4 = sld [smem:[#allocation6_spill]]  ;;  %vm250_vm6 = vcmp.eq.s32.totalorder %v3555_v10, 0  ;;  %vm261_vm7 = vcmp.eq.s32.totalorder %v3555_v10, 1  ;;  %vm272_vm8 = vcmp.eq.s32.totalorder %v3555_v10, 2  ;;  %vm283_vm9 = vcmp.eq.s32.totalorder %v3555_v10, 3 }
   0x6   :  { %4199 = sst [smem:[#allocation8_spill]] %s4168_s8  ;;  %s4202_s8 = sld [smem:[#allocation5_spill]]  ;;  %vm294_vm10 = vcmp.eq.s32.totalorder %v3555_v10, 4  ;;  %vm305_vm11 = vcmp.eq.s32.totalorder %v3555_v10, 5 }
   0x7   :  { %s4205_s29 = sld [smem:[#allocation8_spill]] }
   0x8   :  { %v3530_v1 = vld [vmem:[%s4200_s26] sm:$0xff]  ;;  %v3535_v2 = vld [vmem:[%s4200_s26 + $0x8] sm:$0x7] }
   0x9   :  { %2964 = vmatpush3.msk.msra.mxu0 %vm79_vm0, %v3530_v1  ;;  %v155_v4 = vrot.slane %v3530_v1, 4  ;;  %v156_v5 = vrot.slane %v3535_v2, 4  ;;  %v74_v6 = vld [vmem:[%s4201_s0] sm:$0x3f]  ;;  %1422 = vrot.lane.b32.xlu1 %v3530_v1, %s3415_s23 }
   0xa   :  { %2966 = vmatmul.mubr.msk.f32.vlgmr.msra.gmra.mrb[0].mxu0 %vm75_vm1, %v74_v6  ;;  %3253 = vmatprep.subr.bf16.mxu0 %v3413_v7 }
   0xb   :  { %v3558_v11 = vsel %vm79_vm0, %v155_v4, %v156_v5  ;;  %v153_v13 = vld [vmem:[%s4203_s4] sm:$0xf]  ;;  %2981 = vmatprep.mubr.msk.f32.mxu0 %vm3412_vm2, %v3411_v0 }
   0xc   :  { %v329_v8 = vld [vmem:[%s4202_s8 + $0x20] sm:$0xff]  ;;  %v330_v9 = vld [vmem:[%s4202_s8 + $0x28] sm:$0xff]  ;;  %2969 = vmatpush3.msk.msra.mxu1 %vm4192_vm3, %v3558_v11  ;;  %v331_v16 = vld [vmem:[%s4202_s8 + $0x30] sm:$0xff]  ;;  %v253_v22 = vsel %vm250_vm6, -inf, %v3558_v11  ;;  %v264_v23 = vsel %vm261_vm7, -inf, %v3558_v11  ;;  %v275_v27 = vsel %vm272_vm8, -inf, %v3558_v11 }
   0xd   :  { %v3562_v12 = vpack.c.bf16 %v330_v9, %v329_v8  ;;  %v325_v14 = vld [vmem:[%s4202_s8] sm:$0xff]  ;;  %v326_v15 = vld [vmem:[%s4202_s8 + $0x8] sm:$0xff]  ;;  %v332_v17 = vld [vmem:[%s4202_s8 + $0x38] sm:$0xff]  ;;  %3259 = vmatprep.subr.bf16.mxu1 %v3413_v7  ;;  %2971 = vmatmul.mubr.msk.f32.vlgmr.msra.gmra.mrb[0].mxu1 %vm4191_vm4, %v153_v13  ;;  %v254_v25 = vsel %vm242_vm5, %v253_v22, -inf  ;;  %v265_v26 = vsel %vm242_vm5, %v264_v23, -inf  ;;  %v276_v30 = vsel %vm242_vm5, %v275_v27, -inf }
   0xe   :  { %v3588_v18 = vpack.c.bf16 %v326_v15, %v325_v14  ;;  %v3590_v19 = vpack.c.bf16 %v332_v17, %v331_v16  ;;  %v327_v20 = vld [vmem:[%s4202_s8 + $0x10] sm:$0xff]  ;;  %v328_v21 = vld [vmem:[%s4202_s8 + $0x18] sm:$0xff]  ;;  %v255_v28 = vrot.slane %v254_v25, 4  ;;  %v266_v29 = vrot.slane %v265_v26, 4  ;;  %2992 = vmatprep.mubr.msk.f32.mxu1 %vm3412_vm2, %v3411_v0  ;;  %v479_v8 = vld [vmem:[%s4202_s8 + $0x40] sm:$0xff]  ;;  %1424 = vrot.lane.b32.xlu1 %v3535_v2, %s3415_s23 }
   0xf   :  { %3255 = vmatpush3.bf16.msra.mxu0 %v3562_v12  ;;  %v3606_v24 = vpack.c.bf16 %v328_v21, %v327_v20  ;;  %v277_v31 = vrot.slane %v276_v30, 4  ;;  %v286_v32 = vsel %vm283_vm9, -inf, %v3558_v11  ;;  %v297_v36 = vsel %vm294_vm10, -inf, %v3558_v11  ;;  %v480_v9 = vld [vmem:[%s4202_s8 + $0x48] sm:$0xff]  ;;  %v481_v23 = vld [vmem:[%s4202_s8 + $0x50] sm:$0xff] }
  0x10   :  { %3256 = vmatprep.subr.bf16.mxu0 %v3413_v7  ;;  %3261 = vmatpush3.bf16.msra.mxu1 %v3588_v18  ;;  %v256_v33 = vmax.f32 %v254_v25, %v255_v28  ;;  %v267_v34 = vmax.f32 %v265_v26, %v266_v29  ;;  %v287_v35 = vsel %vm242_vm5, %v286_v32, -inf  ;;  %v298_v39 = vsel %vm242_vm5, %v297_v36, -inf  ;;  %v482_v25 = vld [vmem:[%s4202_s8 + $0x58] sm:$0xff]  ;;  %s4204_s8 = sld [smem:[#allocation7_spill]]  ;;  %v655_v32 = vld [vmem:[%s4205_s29 + $0x28] sm:$0xff] }
  0x11   :  { %3262 = vmatprep.subr.bf16.mxu1 %v3413_v7  ;;  %v278_v37 = vmax.f32 %v276_v30, %v277_v31  ;;  %v288_v38 = vrot.slane %v287_v35, 4  ;;  %v308_v40 = vsel %vm305_vm11, -inf, %v3558_v11  ;;  %v299_v43 = vrot.slane %v298_v39, 4  ;;  %v654_v31 = vld [vmem:[%s4205_s29 + $0x20] sm:$0xff] }
  0x12   :  { %v257_v41 = vrot.slane %v256_v33, 2  ;;  %v268_v42 = vrot.slane %v267_v34, 2  ;;  %v309_v44 = vsel %vm242_vm5, %v308_v40, -inf  ;;  %vm4193_vm4 = vcmask 1044480  }
  0x13   :  { %3258 = vmatpush3.bf16.msra.mxu0 %v3590_v19  ;;  %v279_v45 = vrot.slane %v278_v37, 2  ;;  %v289_v46 = vmax.f32 %v287_v35, %v288_v38  ;;  %v310_v47 = vrot.slane %v309_v44, 4  ;;  %v300_v50 = vmax.f32 %v298_v39, %v299_v43  ;;  %v657_v35 = vld [vmem:[%s4205_s29 + $0x38] sm:$0xff] }
  0x14   :  { %3265 = vmatprep.subr.bf16.mxu0 %v3413_v7  ;;  %3264 = vmatpush3.bf16.msra.mxu1 %v3606_v24  ;;  %v258_v48 = vmax.f32 %v256_v33, %v257_v41  ;;  %v269_v49 = vmax.f32 %v267_v34, %v268_v42  ;;  %v3650_v21 = vpack.c.bf16 %v480_v9, %v479_v8  ;;  %v656_v34 = vld [vmem:[%s4205_s29 + $0x30] sm:$0xff]  ;;  %vm1228_vm3 = vcmask 130048  }
  0x15   :  { %3271 = vmatprep.subr.bf16.mxu1 %v3413_v7  ;;  %v280_v51 = vmax.f32 %v278_v37, %v279_v45  ;;  %v290_v52 = vrot.slane %v289_v46, 2  ;;  %v311_v53 = vmax.f32 %v309_v44, %v310_v47  ;;  %v301_v56 = vrot.slane %v300_v50, 2  ;;  %v814_v9 = vld [vmem:[%s4171_s10 + $0x10] sm:$0xff] }
  0x16   :  { %v259_v54 = vrot.slane %v258_v48, 1  ;;  %v270_v55 = vrot.slane %v269_v49, 1  ;;  %v3662_v27 = vpack.c.bf16 %v482_v25, %v481_v23  ;;  %v566_v28 = vld [vmem:[%s4204_s8] sm:$0xff]  ;;  %v567_v29 = vld [vmem:[%s4204_s8 + $0x8] sm:$0xff]  ;;  %v3685_v33 = vpack.c.bf16 %v655_v32, %v654_v31  ;;  %v569_v47 = vld [vmem:[%s4204_s8 + $0x18] sm:$0xff] }
  0x17   :  { %v281_v57 = vrot.slane %v280_v51, 1  ;;  %v291_v58 = vmax.f32 %v289_v46, %v290_v52  ;;  %v312_v59 = vrot.slane %v311_v53, 2  ;;  %v302_v62 = vmax.f32 %v300_v50, %v301_v56  ;;  %2993 = vmatmul.mubr.msk.f32.vlgmr.msra.gmra.mrb[2].mxu1 %vm333_vm13, %v3558_v11  ;;  %v568_v46 = vld [vmem:[%s4204_s8 + $0x10] sm:$0xff]  ;;  %v73_v50 = vld [vmem:[%s4169_s3] sm:$0x3f] }
  0x18   :  { %v260_v60 = vmax.f32 %v258_v48, %v259_v54  ;;  %v271_v61 = vmax.f32 %v269_v49, %v270_v55  ;;  %3014 = vmatprep.mubr.msk.f32.mxu1 %vm3412_vm2, %v3411_v0  ;;  %v3675_v30 = vpack.c.bf16 %v567_v29, %v566_v28  ;;  %v3695_v38 = vpack.c.bf16 %v657_v35, %v656_v34  ;;  %v650_v56 = vld [vmem:[%s4205_s29] sm:$0xff]  ;;  %v3809_v28 = vld [vmem:[%s4200_s26 + $0x18] sm:$0x7] }
  0x19   :  { %v282_v63 = vmax.f32 %v280_v51, %v281_v57  ;;  %v292_v3 = vrot.slane %v291_v58, 1  ;;  %v313_v4 = vmax.f32 %v311_v53, %v312_v59  ;;  %v303_v5 = vrot.slane %v302_v62, 1  ;;  %v2804_v51 = vld [vmem:[%s4169_s3 + $0x8] sm:$0x3f]  ;;  %v3724_v53 = vld [vmem:[%s4170_s5] ss:$0 sm:$0xff]  ;;  %2762 = vrot.lane.b32.xlu1 %v3809_v28, %s3415_s23 }
  0x1a   :  { %v317_v6 = vsel %vm316_vm12, %v260_v60, %v271_v61  ;;  %3273 = vmatpush3.bf16.msra.mxu1 %v3675_v30  ;;  %v3711_v48 = vpack.c.bf16 %v569_v47, %v568_v46  ;;  %v3414_v49 = vmov 0   ;;  %v651_v57 = vld [vmem:[%s4205_s29 + $0x8] sm:$0xff]  ;;  %v652_v61 = vld [vmem:[%s4205_s29 + $0x10] sm:$0xff]  ;;  %v904_v25 = vrot.slane %v3535_v2, 2 }
  0x1b   :  { %v293_v13 = vmax.f32 %v291_v58, %v292_v3  ;;  %v314_v14 = vrot.slane %v313_v4, 1  ;;  %v319_v15 = vsel %vm318_vm14, %v317_v6, %v282_v63  ;;  %v304_v16 = vmax.f32 %v302_v62, %v303_v5  ;;  %3274 = vmatprep.subr.bf16.mxu1 %v3413_v7  ;;  %3402 = vset.pattern.permute.xlu0 %v3414_v49  ;;  %v653_v62 = vld [vmem:[%s4205_s29 + $0x18] sm:$0xff]  ;;  %v812_v5 = vld [vmem:[%s4171_s10] sm:$0xff]  ;;  %v813_v6 = vld [vmem:[%s4171_s10 + $0x8] sm:$0xff] }
  0x1c   :  { %237 = vperm.xlu0 %3402, %v73_v50   ;;  %v3733_v59 = vpack.c.bf16 %v651_v57, %v650_v56  ;;  %v3743_v63 = vpack.c.bf16 %v653_v62, %v652_v61  ;;  %v3760_v8 = vpack.c.bf16 %v813_v6, %v812_v5  ;;  %v898_v50 = vld [vmem:[%s4172_s12 + $0x10] sm:$0xff]  ;;  %v1053_v56 = vld [vmem:[%s4174_s14] sm:$0xff]  ;;  %v1054_v57 = vld [vmem:[%s4174_s14 + $0x8] sm:$0xff] }
  0x1d   :  { %v315_v17 = vmax.f32 %v313_v4, %v314_v14  ;;  %v321_v20 = vsel %vm320_vm15, %v319_v15, %v293_v13  ;;  %v815_v13 = vld [vmem:[%s4171_s10 + $0x18] sm:$0xff]  ;;  %v900_v15 = vld [vmem:[%s4172_s12 + $0x20] sm:$0xff]  ;;  %v1055_v62 = vld [vmem:[%s4174_s14 + $0x10] sm:$0xff] }
  0x1e   :  { %v322_v22 = vsel %vm79_vm0, %v321_v20, %v304_v16  ;;  %3276 = vmatpush3.bf16.msra.mxu1 %v3711_v48  ;;  %v3770_v14 = vpack.c.bf16 %v815_v13, %v814_v9  ;;  %v901_v16 = vld [vmem:[%s4172_s12 + $0x28] sm:$0xff]  ;;  %v902_v20 = vld [vmem:[%s4172_s12 + $0x30] sm:$0xff]  ;;  %v3869_v5 = vld [vmem:[%s4175_s7] ss:$0 sm:$0xff] }
  0x1f   :  { %v324_v26 = vsel %vm4193_vm4, %v322_v22, %v315_v17  ;;  %3283 = vmatprep.subr.bf16.mxu1 %v3413_v7  ;;  %v3779_v17 = vpack.c.bf16 %v901_v16, %v900_v15  ;;  %v903_v22 = vld [vmem:[%s4172_s12 + $0x38] sm:$0xff]  ;;  %v3877_v9 = vld [vmem:[%s4176_s11] ss:$0 sm:$0xff]  ;;  %vm1430_vm4 = vcmask 392192  }
  0x20   :  { %2982 = vmatmul.mubr.msk.f32.vlgmr.msra.gmra.mrb[2].mxu0 %vm333_vm13, %v324_v26  ;;  %1600 = vperm.xlu0 %3402, %v2804_v51   ;;  %v3790_v23 = vpack.c.bf16 %v903_v22, %v902_v20  ;;  %v3799_v26 = vld [vmem:[%s4200_s26 + $0x10] sm:$0xff]  ;;  %v899_v51 = vld [vmem:[%s4172_s12 + $0x18] sm:$0xff] }
  0x21   :  { %3267 = vmatpush3.bf16.msra.mxu0 %v3650_v21  ;;  %3003 = vmatprep.mubr.msk.f32.mxu0 %vm3412_vm2, %v3411_v0 }
  0x22   :  { %3268 = vmatprep.subr.bf16.mxu0 %v3413_v7 }
  0x24   :  { %2760 = vrot.lane.b32.xlu0 %v3799_v26, %s3415_s23 }
  0x25   :  { %3270 = vmatpush3.bf16.msra.mxu0 %v3662_v27 }
  0x26   :  { %3277 = vmatprep.subr.bf16.mxu0 %v3413_v7 }
  0x7b   :  { %v1423_v22 = vpop.permute.xlu1 %1422 }
  0x9b   :  { %v238_v29 = vpop.permute.xlu0 %237 }
  0x9c   :  { %v241_v31 = vmul.f32 %v238_v29, %v3558_v11  ;;  %v897_v11 = vld [vmem:[%s4172_s12 + $0x8] sm:$0xff] }
  0x9e   :  { %v243_v32 = vsel %vm242_vm5, %v241_v31, 0.0 }
  0x9f   :  { %v244_v35 = vrot.slane %v243_v32, 4 }
  0xdd   :  { %v149_v36 = vpop.f32.mrb[0].mxu0 }
  0xde   :  { %v2967_v37 = vpop.f32.mrb[1].mxu0  ;;  %3004 = vmatmul.mubr.msk.f32.vlgmr.msra.gmra.mrb[4].mxu0 %vm333_vm13, %v149_v36 }
  0xdf   :  { %3279 = vmatpush3.bf16.msra.mxu0 %v3685_v33  ;;  %3025 = vmatprep.mubr.msk.f32.mxu0 %vm3412_vm2, %v3411_v0  ;;  %v245_v37 = vadd.f32 %v244_v35, %v243_v32  ;;  %v1050_v32 = vld [vmem:[%s4178_s13] sm:$0x1] }
  0xe0   :  { %3280 = vmatprep.subr.bf16.mxu0 %v3413_v7  ;;  %v231_v39 = vpop.f32.mrb[0].mxu1 }
  0xe1   :  { %v2972_v40 = vpop.f32.mrb[1].mxu1 }
  0xe2   :  { %v3817_v40 = vld [vmem:[%s4173_s9] ss:$0 sm:$0xff] }
  0xe3   :  { %3282 = vmatpush3.bf16.msra.mxu0 %v3695_v38 }
  0xe4   :  { %3289 = vmatprep.subr.bf16.mxu0 %v3413_v7 }
  0xe6   :  { %3026 = vmatmul.mubr.msk.f32.vlgmr.msra.gmra.mrb[6].mxu0 %vm333_vm13, %v231_v39 }
  0xe7   :  { %3047 = vmatprep.mubr.msk.f32.mxu0 %vm3412_vm2, %v3411_v0  ;;  %3291 = vmatpush3.bf16.msra.mxu0 %v3760_v8 }
  0xe8   :  { %3292 = vmatprep.subr.bf16.mxu0 %v3413_v7 }
  0xea   :  { %v475_v41 = vpop.f32.mrb[2].mxu1 }
  0xeb   :  { %v2994_v42 = vpop.f32.mrb[3].mxu1  ;;  %3294 = vmatpush3.bf16.msra.mxu0 %v3770_v14 }
  0xec   :  { %3301 = vmatprep.subr.bf16.mxu0 %v3413_v7 }
  0xf3   :  { %v403_v43 = vpop.f32.mrb[2].mxu0 }
  0xf4   :  { %v2983_v44 = vpop.f32.mrb[3].mxu0  ;;  %v476_v45 = vadd.f32 %v475_v41, %v403_v43  ;;  %v246_v41 = vrot.slane %v245_v37, 2 }
  0xf5   :  { %v896_v44 = vld [vmem:[%s4172_s12] sm:$0xff] }
  0xf6   :  { %v3826_v46 = vpack.c.bf16 %v897_v11, %v896_v44  ;;  %v247_v47 = vadd.f32 %v246_v41, %v245_v37  ;;  %v1147_v41 = vld [vmem:[%s4179_s16 + $0x10] sm:$0xff] }
 0x1b1   :  { %v552_v52 = vpop.f32.mrb[4].mxu0 }
 0x1b2   :  { %v556_v54 = vadd.f32 %v552_v52, %v476_v45  ;;  %v3005_v55 = vpop.f32.mrb[5].mxu0  ;;  %v3836_v52 = vpack.c.bf16 %v899_v51, %v898_v50  ;;  %v1145_v51 = vld [vmem:[%s4179_s16] sm:$0xff] }
 0x1b4   :  { %v564_v58 = vadd.f32 %v3724_v53, %v556_v54  ;;  %v248_v54 = vrot.slane %v247_v47, 1 }
 0x1b6   :  { %v565_v60 = vmax.f32 %v564_v58, 0.0  ;;  %v249_v55 = vadd.f32 %v248_v54, %v247_v47  ;;  %v3852_v58 = vpack.c.bf16 %v1054_v57, %v1053_v56  ;;  %v1149_v47 = vld [vmem:[%s4179_s16 + $0x20] sm:$0xff] }
 0x1b8   :  { %3015 = vmatmul.mubr.msk.f32.vlgmr.msra.gmra.mrb[4].mxu1 %vm333_vm13, %v565_v60 }
 0x1b9   :  { %3285 = vmatpush3.bf16.msra.mxu1 %v3733_v59  ;;  %3036 = vmatprep.mubr.msk.f32.mxu1 %vm3412_vm2, %v3411_v0  ;;  %v727_v3 = vpop.f32.mrb[6].mxu0 }
 0x1ba   :  { %3286 = vmatprep.subr.bf16.mxu1 %v3413_v7  ;;  %v3027_v4 = vpop.f32.mrb[7].mxu0 }
 0x1bd   :  { %3288 = vmatpush3.bf16.msra.mxu1 %v3743_v63 }
 0x1be   :  { %3295 = vmatprep.subr.bf16.mxu1 %v3413_v7 }
 0x1c0   :  { %3037 = vmatmul.mubr.msk.f32.vlgmr.msra.gmra.mrb[6].mxu1 %vm333_vm13, %v3530_v1 }
 0x1c1   :  { %3058 = vmatprep.mubr.msk.f32.mxu1 %vm3412_vm2, %v3411_v0  ;;  %3297 = vmatpush3.bf16.msra.mxu1 %v3779_v17 }
 0x1c2   :  { %3298 = vmatprep.subr.bf16.mxu1 %v3413_v7 }
 0x1c5   :  { %3300 = vmatpush3.bf16.msra.mxu1 %v3790_v23 }
 0x1c6   :  { %3307 = vmatprep.subr.bf16.mxu1 %v3413_v7 }
 0x1c8   :  { %3059 = vmatmul.mubr.msk.f32.vlgmr.msra.gmra.mrb[8].mxu1 %vm333_vm13, %v904_v25 }
 0x1c9   :  { %3080 = vmatprep.mubr.msk.f32.mxu1 %vm3412_vm2, %v3411_v0  ;;  %3309 = vmatpush3.bf16.msra.mxu1 %v3852_v58 }
 0x1ca   :  { %3310 = vmatprep.subr.bf16.mxu1 %v3413_v7 }
 0x28b   :  { %v646_v34 = vpop.f32.mrb[4].mxu1 }
 0x28c   :  { %v3016_v36 = vpop.f32.mrb[5].mxu1  ;;  %v3872_v6 = vadd.f32 %v3869_v5, %v646_v34 }
 0x28e   :  { %v1415_v15 = vrot.slane %v3872_v6, 4 }
 0x293   :  { %v799_v39 = vpop.f32.mrb[6].mxu1 }
 0x294   :  { %v800_v42 = vadd.f32 %v799_v39, %v727_v3  ;;  %v3038_v43 = vpop.f32.mrb[7].mxu1  ;;  %v1056_v3 = vld [vmem:[%s4174_s14 + $0x18] sm:$0xff]  ;;  %v1139_v39 = vsub.s32 2, %v3555_v10 }
 0x295   :  { %v3862_v4 = vpack.c.bf16 %v1056_v3, %v1055_v62  ;;  %v1057_v62 = vld [vmem:[%s4180_s15] sm:$0x1]  ;;  %v1133_v3 = vsub.s32 0, %v3555_v10 }
 0x296   :  { %v810_v45 = vadd.f32 %v3817_v40, %v800_v42  ;;  %v1148_v42 = vld [vmem:[%s4179_s16 + $0x18] sm:$0xff]  ;;  %v1140_v44 = vrot.slane %v3535_v2, %v1139_v39 }
 0x297   :  { %3312 = vmatpush3.bf16.msra.mxu1 %v3862_v4  ;;  %v3902_v43 = vpack.c.bf16 %v1148_v42, %v1147_v41 }
 0x298   :  { %v811_v49 = vmax.f32 %v810_v45, 0.0  ;;  %3319 = vmatprep.subr.bf16.mxu1 %v3413_v7  ;;  %v1141_v11 = vsub.f32 %v1140_v44, %v3530_v1  ;;  %v1142_v45 = vsub.f32 %v1140_v44, %v3535_v2  ;;  %v1146_v1 = vld [vmem:[%s4179_s16 + $0x8] sm:$0xff] }
 0x29a   :  { %3048 = vmatmul.mubr.msk.f32.vlgmr.msra.gmra.mrb[8].mxu0 %vm333_vm13, %v811_v49  ;;  %v1150_v49 = vld [vmem:[%s4179_s16 + $0x28] sm:$0xff]  ;;  %v1143_v2 = vand.u32 2147483647, %v1141_v11  ;;  %v1144_v54 = vand.u32 2147483647, %v1142_v45 }
 0x29b   :  { %3303 = vmatpush3.bf16.msra.mxu0 %v3826_v46  ;;  %3069 = vmatprep.mubr.msk.f32.mxu0 %vm3412_vm2, %v3411_v0  ;;  %v973_v60 = vpop.f32.mrb[8].mxu1  ;;  %v3917_v50 = vpack.c.bf16 %v1150_v49, %v1149_v47 }
 0x29c   :  { %3304 = vmatprep.subr.bf16.mxu0 %v3413_v7  ;;  %v3060_v61 = vpop.f32.mrb[9].mxu1  ;;  %v1153_v56 = vrot.slane %v1143_v2, 4  ;;  %v1154_v57 = vrot.slane %v1144_v54, 4 }
 0x29d   :  { %v2805_v61 = vld [vmem:[%s4201_s0 + $0x8] sm:$0x3f] }
 0x29f   :  { %3306 = vmatpush3.bf16.msra.mxu0 %v3836_v52 }
 0x2a0   :  { %3313 = vmatprep.subr.bf16.mxu0 %v3413_v7 }
 0x2a2   :  { %3070 = vmatmul.mubr.msk.f32.vlgmr.msra.gmra.mrb[10].mxu0 %vm333_vm13, %v249_v55  ;;  %v3925_v55 = vpack.c.bf16 %v1146_v1, %v1145_v51 }
 0x2a3   :  { %3091 = vmatprep.mubr.msk.f32.mxu0 %vm3412_vm2, %v3411_v0  ;;  %3315 = vmatpush3.bf16.msra.mxu0 %v3902_v43 }
 0x2a4   :  { %3316 = vmatprep.subr.bf16.mxu0 %v3413_v7 }
 0x2a7   :  { %3318 = vmatpush3.bf16.msra.mxu0 %v3917_v50 }
 0x2a8   :  { %3108 = vmatprep.subr.mxu0 %v3411_v0 }
 0x36d   :  { %v892_v13 = vpop.f32.mrb[8].mxu0 }
 0x36e   :  { %v893_v16 = vadd.f32 %v3877_v9, %v892_v13  ;;  %v3049_v20 = vpop.f32.mrb[9].mxu0 }
 0x370   :  { %v1420_v25 = vsel %vm79_vm0, %v893_v16, %v1415_v15 }
 0x371   :  { %v1428_v29 = vsel %vm1228_vm3, %v1420_v25, %v1423_v22  ;;  %v1425_v25 = vpop.permute.xlu1 %1424 }
 0x372   :  { %1431 = vst.msk [vmem:[%s4177_s20] sm:$0xff] %vm1430_vm4, %v1428_v29 }
 0x375   :  { %v1046_v31 = vpop.f32.mrb[10].mxu0 }
 0x376   :  { %v1047_v34 = vadd.f32 %v1046_v31, %v973_v60  ;;  %v3071_v35 = vpop.f32.mrb[11].mxu0  ;;  %v1155_v60 = vsel %vm79_vm0, %v1153_v56, %v1154_v57 }
 0x377   :  { %3092 = vmatmul.mubr.msk.f32.vlgmr.msra.gmra.mrb[12].mxu0 %vm333_vm13, %v1155_v60  ;;  %v1520_v35 = vrot.slane %v3799_v26, 4 }
 0x378   :  { %v1051_v36 = vadd.f32 %v1050_v32, %v1047_v34  ;;  %3109 = vmatpush3.msk.msra.mxu0 %vm79_vm0, %v3799_v26  ;;  %3110 = vmatprep.mubr.msk.f32.mxu0 %vm3412_vm2, %v3411_v0  ;;  %v1521_v34 = vrot.slane %v3809_v28, 4 }
 0x379   :  { %3325 = vmatprep.subr.bf16.mxu0 %v3413_v7 }
 0x37a   :  { %v1052_v37 = vmax.f32 %v1051_v36, 0.0 }
 0x37b   :  { %3111 = vmatmul.mubr.msk.f32.vlgmr.msra.gmra.mrb[14].mxu0 %vm75_vm1, %v2805_v61  ;;  %vm1432_vm1 = vcmask 387072  }
 0x37c   :  { %3081 = vmatmul.mubr.msk.f32.vlgmr.msra.gmra.mrb[10].mxu1 %vm333_vm13, %v1052_v37  ;;  %3327 = vmatpush3.bf16.msra.mxu0 %v3562_v12 }
 0x37d   :  { %3098 = vmatprep.mubr.msk.f32.mxu1 %vm3412_vm2, %v3411_v0  ;;  %3321 = vmatpush3.bf16.msra.mxu1 %v3925_v55 }
 0x37e   :  { %3322 = vmatprep.subr.bf16.mxu1 %v3413_v7  ;;  %3126 = vmatprep.mubr.msk.f32.mxu0 %vm3412_vm2, %v3411_v0 }
 0x37f   :  { %3328 = vmatprep.subr.bf16.mxu0 %v3413_v7 }
 0x380   :  { %3330 = vmatpush3.bf16.msra.mxu0 %v3590_v19 }
 0x381   :  { %3337 = vmatprep.subr.bf16.mxu0 %v3413_v7 }
 0x44a   :  { %v3991_v60 = vpop.f32.mrb[12].mxu0 }
 0x44f   :  { %v1127_v13 = vpop.f32.mrb[10].mxu1 }
 0x450   :  { %v1128_v16 = vadd.f32 %v1127_v13, %v1057_v62  ;;  %v3082_v20 = vpop.f32.mrb[11].mxu1 }
 0x452   :  { %v1134_v12 = vrot.slane %v1128_v16, %v1133_v3  ;;  %v1418_v22 = vrot.slane %v1128_v16, 6  ;;  %v3093_v16 = vpop.f32.mrb[13].mxu0 }
 0x454   :  { %v1135_v29 = vsub.f32 %v1134_v12, %v3872_v6  ;;  %v1421_v19 = vsel %vm318_vm14, %v1415_v15, %v1418_v22  ;;  %v3969_v6 = vsel %vm79_vm0, %v1520_v35, %v1521_v34 }
 0x455   :  { %v1429_v31 = vsel %vm1228_vm3, %v1421_v19, %v1425_v25  ;;  %v1612_v15 = vsel %vm250_vm6, -inf, %v3969_v6  ;;  %v1620_v36 = vsel %vm261_vm7, -inf, %v3969_v6  ;;  %v1628_v42 = vsel %vm272_vm8, -inf, %v3969_v6  ;;  %v1312_v19 = vld [vmem:[%s4181_s18 + $0x8] sm:$0xff] }
 0x456   :  { %v1136_v32 = vand.u32 2147483647, %v1135_v29  ;;  %1433 = vst.msk [vmem:[%s4177_s20 + $0x8] sm:$0x7] %vm1432_vm1, %v1429_v31  ;;  %v1613_v37 = vsel %vm242_vm5, %v1612_v15, -inf  ;;  %v1621_v41 = vsel %vm242_vm5, %v1620_v36, -inf }
 0x457   :  { %v1614_v44 = vrot.slane %v1613_v37, 4  ;;  %v1622_v11 = vrot.slane %v1621_v41, 4  ;;  %v1629_v45 = vsel %vm242_vm5, %v1628_v42, -inf  ;;  %v1636_v47 = vsel %vm283_vm9, -inf, %v3969_v6  ;;  %v1311_v29 = vld [vmem:[%s4181_s18] sm:$0xff] }
 0x458   :  { %3099 = vmatmul.mubr.msk.f32.vlgmr.msra.gmra.mrb[12].mxu1 %vm1228_vm3, %v1136_v32  ;;  %v1630_v49 = vrot.slane %v1629_v45, 4  ;;  %v1637_v51 = vsel %vm242_vm5, %v1636_v47, -inf  ;;  %v1644_v1 = vsel %vm294_vm10, -inf, %v3969_v6  ;;  %v1652_v13 = vsel %vm305_vm11, -inf, %v3969_v6 }
 0x459   :  { %3105 = vmatprep.mubr.msk.f32.mxu1 %vm3412_vm2, %v3411_v0  ;;  %v1615_v2 = vmax.f32 %v1613_v37, %v1614_v44  ;;  %v1623_v54 = vmax.f32 %v1621_v41, %v1622_v11  ;;  %v1638_v56 = vrot.slane %v1637_v51, 4  ;;  %v1645_v57 = vsel %vm242_vm5, %v1644_v1, -inf }
 0x45a   :  { %v1631_v61 = vmax.f32 %v1629_v45, %v1630_v49  ;;  %v1646_v62 = vrot.slane %v1645_v57, 4  ;;  %v1653_v25 = vsel %vm242_vm5, %v1652_v13, -inf  ;;  %v4003_v35 = vpack.c.bf16 %v1312_v19, %v1311_v29 }
 0x45b   :  { %v1616_v20 = vrot.slane %v1615_v2, 2  ;;  %v1624_v12 = vrot.slane %v1623_v54, 2  ;;  %v1639_v22 = vmax.f32 %v1637_v51, %v1638_v56  ;;  %v1654_v34 = vrot.slane %v1653_v25, 4 }
 0x45c   :  { %v1632_v31 = vrot.slane %v1631_v61, 2  ;;  %v1647_v32 = vmax.f32 %v1645_v57, %v1646_v62  ;;  %3324 = vmatpush3.bf16.msra.mxu1 %v4003_v35  ;;  %vm4206_vm6 = vcmask 1044480   ;;  %vm4207_vm7 = vcmask 1045504  }
 0x45d   :  { %v1617_v15 = vmax.f32 %v1615_v2, %v1616_v20  ;;  %v1625_v36 = vmax.f32 %v1623_v54, %v1624_v12  ;;  %v1640_v37 = vrot.slane %v1639_v22, 2  ;;  %v1655_v44 = vmax.f32 %v1653_v25, %v1654_v34  ;;  %3113 = vmatprep.subr.mxu1 %v3411_v0 }
 0x45e   :  { %v1633_v41 = vmax.f32 %v1631_v61, %v1632_v31  ;;  %v1648_v42 = vrot.slane %v1647_v32, 2  ;;  %vm4208_vm8 = vcmask 48128   ;;  %vm1393_vm9 = vcmask 5120  }
 0x45f   :  { %v1618_v11 = vrot.slane %v1617_v15, 1  ;;  %v1626_v45 = vrot.slane %v1625_v36, 1  ;;  %v1641_v47 = vmax.f32 %v1639_v22, %v1640_v37  ;;  %v1656_v1 = vrot.slane %v1655_v44, 2 }
 0x460   :  { %v1634_v49 = vrot.slane %v1633_v41, 1  ;;  %v1649_v51 = vmax.f32 %v1647_v32, %v1648_v42  ;;  %v1513_v32 = vpop.f32.mrb[14].mxu0 }
 0x461   :  { %v1619_v56 = vmax.f32 %v1617_v15, %v1618_v11  ;;  %v1627_v57 = vmax.f32 %v1625_v36, %v1626_v45  ;;  %v1642_v62 = vrot.slane %v1641_v47, 1  ;;  %v1657_v54 = vmax.f32 %v1655_v44, %v1656_v1  ;;  %v3112_v34 = vpop.f32.mrb[15].mxu0 }
 0x462   :  { %v1635_v13 = vmax.f32 %v1633_v41, %v1634_v49  ;;  %v1650_v2 = vrot.slane %v1649_v51, 1  ;;  %v27_v15 = vstv %s4182_s19  ;;  %v2243_v34 = vrot.slane %v3809_v28, 2 }
 0x463   :  { %v1643_v16 = vmax.f32 %v1641_v47, %v1642_v62  ;;  %v1660_v61 = vsel %vm316_vm12, %v1619_v56, %v1627_v57  ;;  %v1658_v12 = vrot.slane %v1657_v54, 1  ;;  %28 = vst [vmem:[#allocation2] sm:$0x1] %v27_v15 }
 0x464   :  { %v1651_v20 = vmax.f32 %v1649_v51, %v1650_v2  ;;  %v1661_v25 = vsel %vm318_vm14, %v1660_v61, %v1635_v13 }
 0x465   :  { %v1662_v22 = vsel %vm320_vm15, %v1661_v25, %v1643_v16  ;;  %v1659_v29 = vmax.f32 %v1657_v54, %v1658_v12 }
 0x466   :  { %v1663_v19 = vsel %vm79_vm0, %v1662_v22, %v1651_v20 }
 0x467   :  { %v1664_v31 = vsel %vm4206_vm6, %v1663_v19, %v1659_v29 }
 0x468   :  { %3127 = vmatmul.mubr.msk.f32.vlgmr.msra.gmra.mrb[16].mxu0 %vm333_vm13, %v1664_v31 }
 0x469   :  { %3339 = vmatpush3.bf16.msra.mxu0 %v3650_v21  ;;  %3148 = vmatprep.mubr.msk.f32.mxu0 %vm3412_vm2, %v3411_v0 }
 0x46a   :  { %3340 = vmatprep.subr.bf16.mxu0 %v3413_v7  ;;  %v4060_v44 = vld [vmem:[#allocation2] ss:$0 sm:$0xff] }
 0x46d   :  { %3342 = vmatpush3.bf16.msra.mxu0 %v3662_v27  ;;  %v4032_v27 = vld [vmem:[%s4183_s17] ss:$0 sm:$0xff] }
 0x46e   :  { %3349 = vmatprep.subr.bf16.mxu0 %v3413_v7 }
 0x470   :  { %3149 = vmatmul.mubr.msk.f32.vlgmr.msra.gmra.mrb[18].mxu0 %vm333_vm13, %v1513_v32 }
 0x471   :  { %3351 = vmatpush3.bf16.msra.mxu0 %v3685_v33  ;;  %3170 = vmatprep.mubr.msk.f32.mxu0 %vm3412_vm2, %v3411_v0 }
 0x472   :  { %3352 = vmatprep.subr.bf16.mxu0 %v3413_v7 }
 0x475   :  { %3354 = vmatpush3.bf16.msra.mxu0 %v3695_v38  ;;  %v2808_v38 = vld [vmem:[%s4203_s4 + $0x4] sm:$0xf] }
 0x476   :  { %3361 = vmatprep.subr.bf16.mxu0 %v3413_v7 }
 0x52b   :  { %v1298_v21 = vpop.f32.mrb[12].mxu1 }
 0x52c   :  { %v1299_v36 = vadd.f32 %v1298_v21, %v3991_v60  ;;  %v3100_v37 = vpop.f32.mrb[13].mxu1  ;;  %v1601_v21 = vpop.permute.xlu0 %1600 }
 0x52e   :  { %v1309_v33 = vadd.f32 %v4032_v27, %v1299_v36  ;;  %v1604_v36 = vmul.f32 %v1601_v21, %v3969_v6 }
 0x530   :  { %v1310_v41 = vmax.f32 %v1309_v33, 0.0  ;;  %v1605_v37 = vsel %vm242_vm5, %v1604_v36, 0.0 }
 0x532   :  { %3106 = vmatmul.mubr.msk.f32.vlgmr.msra.gmra.mrb[14].mxu1 %vm1228_vm3, %v1310_v41  ;;  %v1606_v41 = vrot.slane %v1605_v37, 4 }
 0x533   :  { %3114 = vmatpush3.msk.msra.mxu1 %vm4207_vm7, %v3969_v6  ;;  %3115 = vmatprep.mubr.msk.f32.mxu1 %vm3412_vm2, %v3411_v0 }
 0x534   :  { %3331 = vmatprep.subr.bf16.mxu1 %v3413_v7 }
 0x536   :  { %3116 = vmatmul.mubr.msk.f32.vlgmr.msra.gmra.mrb[16].mxu1 %vm4208_vm8, %v2808_v38 }
 0x537   :  { %3333 = vmatpush3.bf16.msra.mxu1 %v3588_v18  ;;  %3137 = vmatprep.mubr.msk.f32.mxu1 %vm3412_vm2, %v3411_v0 }
 0x538   :  { %3334 = vmatprep.subr.bf16.mxu1 %v3413_v7 }
 0x53b   :  { %3336 = vmatpush3.bf16.msra.mxu1 %v3606_v24  ;;  %v1742_v18 = vpop.f32.mrb[16].mxu0 }
 0x53c   :  { %3343 = vmatprep.subr.bf16.mxu1 %v3413_v7  ;;  %v3128_v60 = vpop.f32.mrb[17].mxu0 }
 0x53e   :  { %3138 = vmatmul.mubr.msk.f32.vlgmr.msra.gmra.mrb[18].mxu1 %vm333_vm13, %v3969_v6 }
 0x53f   :  { %3345 = vmatpush3.bf16.msra.mxu1 %v3675_v30  ;;  %3159 = vmatprep.mubr.msk.f32.mxu1 %vm3412_vm2, %v3411_v0 }
 0x540   :  { %3346 = vmatprep.subr.bf16.mxu1 %v3413_v7 }
 0x543   :  { %3348 = vmatpush3.bf16.msra.mxu1 %v3711_v48  ;;  %v1891_v42 = vpop.f32.mrb[18].mxu0 }
 0x544   :  { %3355 = vmatprep.subr.bf16.mxu1 %v3413_v7  ;;  %v3150_v24 = vpop.f32.mrb[19].mxu0 }
 0x605   :  { %v1389_v11 = vpop.f32.mrb[14].mxu1 }
 0x606   :  { %v1390_v45 = vadd.f32 %v4060_v44, %v1389_v11  ;;  %v3107_v30 = vpop.f32.mrb[15].mxu1 }
 0x608   :  { %v1394_v47 = vsel %vm1393_vm9, %v1390_v45, -inf }
 0x609   :  { %v1395_v49 = vrot.slane %v1394_v47, 4  ;;  %v1594_v51 = vpop.f32.mrb[16].mxu1 }
 0x60a   :  { %v3117_v1 = vpop.f32.mrb[17].mxu1  ;;  %3171 = vmatmul.mubr.msk.f32.vlgmr.msra.gmra.mrb[20].mxu0 %vm333_vm13, %v1594_v51 }
 0x60b   :  { %v1396_v48 = vmax.f32 %v1394_v47, %v1395_v49  ;;  %3363 = vmatpush3.bf16.msra.mxu0 %v3760_v8  ;;  %3192 = vmatprep.mubr.msk.f32.mxu0 %vm3412_vm2, %v3411_v0 }
 0x60c   :  { %3364 = vmatprep.subr.bf16.mxu0 %v3413_v7 }
 0x60d   :  { %v1397_v56 = vrot.slane %v1396_v48, 2 }
 0x60f   :  { %v1398_v57 = vmax.f32 %v1396_v48, %v1397_v56  ;;  %3366 = vmatpush3.bf16.msra.mxu0 %v3770_v14  ;;  %v2761_v48 = vpop.permute.xlu0 %2760 }
 0x610   :  { %3373 = vmatprep.subr.bf16.mxu0 %v3413_v7 }
 0x611   :  { %v1399_v62 = vrot.slane %v1398_v57, 1  ;;  %v1814_v13 = vpop.f32.mrb[18].mxu1 }
 0x612   :  { %v1815_v2 = vadd.f32 %v1814_v13, %v1742_v18  ;;  %v3139_v54 = vpop.f32.mrb[19].mxu1 }
 0x613   :  { %v1400_v16 = vmax.f32 %v1398_v57, %v1399_v62 }
 0x614   :  { %v1895_v61 = vadd.f32 %v1891_v42, %v1815_v2  ;;  %v2479_v2 = vrot.slane %v3809_v28, %v1139_v39 }
 0x615   :  { %v1401_v20 = vsub.f32 %v1390_v45, %v1400_v16 }
 0x616   :  { %v1903_v8 = vadd.f32 %v3724_v53, %v1895_v61  ;;  %v2480_v54 = vsub.f32 %v2479_v2, %v3799_v26  ;;  %v2481_v16 = vsub.f32 %v2479_v2, %v3809_v28  ;;  %v2763_v28 = vpop.permute.xlu1 %2762 }
 0x617   :  { %v1402_v12 = vmul.f32 1.442695, %v1401_v20 }
 0x618   :  { %v1904_v25 = vmax.f32 %v1903_v8, 0.0  ;;  %v2482_v61 = vand.u32 2147483647, %v2480_v54  ;;  %v2483_v20 = vand.u32 2147483647, %v2481_v16 }
 0x619   :  { %3403 = vpow2.f32 %v1402_v12 }
 0x61a   :  { %3160 = vmatmul.mubr.msk.f32.vlgmr.msra.gmra.mrb[20].mxu1 %vm333_vm13, %v1904_v25  ;;  %v2492_v8 = vrot.slane %v2482_v61, 4  ;;  %v2493_v12 = vrot.slane %v2483_v20, 4 }
 0x61b   :  { %3357 = vmatpush3.bf16.msra.mxu1 %v3733_v59  ;;  %3181 = vmatprep.mubr.msk.f32.mxu1 %vm3412_vm2, %v3411_v0 }
 0x61c   :  { %3358 = vmatprep.subr.bf16.mxu1 %v3413_v7  ;;  %v2494_v25 = vsel %vm79_vm0, %v2492_v8, %v2493_v12 }
 0x61f   :  { %3360 = vmatpush3.bf16.msra.mxu1 %v3743_v63 }
 0x620   :  { %3367 = vmatprep.subr.bf16.mxu1 %v3413_v7 }
 0x622   :  { %3182 = vmatmul.mubr.msk.f32.vlgmr.msra.gmra.mrb[22].mxu1 %vm333_vm13, %v3799_v26 }
 0x623   :  { %v3404_v53 = vpop.eup %3403  ;;  %3369 = vmatpush3.bf16.msra.mxu1 %v3779_v17  ;;  %3203 = vmatprep.mubr.msk.f32.mxu1 %vm3412_vm2, %v3411_v0 }
 0x624   :  { %v1404_v59 = vsel %vm1393_vm9, %v3404_v53, 0.0  ;;  %3370 = vmatprep.subr.bf16.mxu1 %v3413_v7 }
 0x625   :  { %v1405_v14 = vrot.slane %v1404_v59, 4 }
 0x627   :  { %v1406_v22 = vadd.f32 %v1405_v14, %v1404_v59  ;;  %3372 = vmatpush3.bf16.msra.mxu1 %v3790_v23 }
 0x628   :  { %3379 = vmatprep.subr.bf16.mxu1 %v3413_v7 }
 0x629   :  { %v1407_v63 = vrot.slane %v1406_v22, 2 }
 0x62a   :  { %3204 = vmatmul.mubr.msk.f32.vlgmr.msra.gmra.mrb[24].mxu1 %vm333_vm13, %v2243_v34 }
 0x62b   :  { %v1408_v29 = vadd.f32 %v1407_v63, %v1406_v22  ;;  %3381 = vmatpush3.bf16.msra.mxu1 %v3852_v58  ;;  %3225 = vmatprep.mubr.msk.f32.mxu1 %vm3412_vm2, %v3411_v0  ;;  %v1607_v58 = vadd.f32 %v1606_v41, %v1605_v37 }
 0x62c   :  { %3382 = vmatprep.subr.bf16.mxu1 %v3413_v7 }
 0x62d   :  { %v1409_v19 = vrot.slane %v1408_v29, 1  ;;  %v1608_v60 = vrot.slane %v1607_v58, 2 }
 0x62f   :  { %v1410_v31 = vadd.f32 %v1409_v19, %v1408_v29  ;;  %3384 = vmatpush3.bf16.msra.mxu1 %v3862_v4  ;;  %v1609_v4 = vadd.f32 %v1608_v60, %v1607_v58 }
 0x630   :  { %3391 = vmatprep.subr.bf16.mxu1 %v3413_v7 }
 0x631   :  { %3405 = vrcp.f32 %v1410_v31  ;;  %v1610_v6 = vrot.slane %v1609_v4, 1 }
 0x633   :  { %v1611_v30 = vadd.f32 %v1610_v6, %v1609_v4 }
 0x63b   :  { %v3406_v32 = vpop.eup %3405 }
 0x63c   :  { %v1412_v17 = vmul.f32 %v3406_v32, %v3404_v53 }
 0x63e   :  { %1413 = vst.msk [vmem:[%s4184_s21] sm:$0x3f] %vm1393_vm9, %v1412_v17 }
 0x6dd   :  { %v2066_v23 = vpop.f32.mrb[20].mxu0 }
 0x6de   :  { %v3172_v15 = vpop.f32.mrb[21].mxu0 }
 0x6ed   :  { %v1985_v33 = vpop.f32.mrb[20].mxu1 }
 0x6ee   :  { %v3161_v38 = vpop.f32.mrb[21].mxu1  ;;  %v1986_v47 = vadd.f32 %v3869_v5, %v1985_v33  ;;  %v2389_v5 = vld [vmem:[%s4178_s13] sm:$0x1] }
 0x6f5   :  { %v2138_v18 = vpop.f32.mrb[22].mxu1 }
 0x6f6   :  { %v2139_v42 = vadd.f32 %v2138_v18, %v2066_v23  ;;  %v3183_v24 = vpop.f32.mrb[23].mxu1 }
 0x6f8   :  { %v2149_v11 = vadd.f32 %v3817_v40, %v2139_v42 }
 0x6fa   :  { %v2150_v45 = vmax.f32 %v2149_v11, 0.0 }
 0x6fc   :  { %3193 = vmatmul.mubr.msk.f32.vlgmr.msra.gmra.mrb[22].mxu0 %vm333_vm13, %v2150_v45 }
 0x6fd   :  { %3375 = vmatpush3.bf16.msra.mxu0 %v3826_v46  ;;  %3214 = vmatprep.mubr.msk.f32.mxu0 %vm3412_vm2, %v3411_v0  ;;  %v2312_v40 = vpop.f32.mrb[24].mxu1 }
 0x6fe   :  { %3376 = vmatprep.subr.bf16.mxu0 %v3413_v7  ;;  %v3205_v46 = vpop.f32.mrb[25].mxu1 }
 0x701   :  { %3378 = vmatpush3.bf16.msra.mxu0 %v3836_v52  ;;  %v2753_v52 = vrot.slane %v1986_v47, 4 }
 0x702   :  { %3385 = vmatprep.subr.bf16.mxu0 %v3413_v7 }
 0x704   :  { %3215 = vmatmul.mubr.msk.f32.vlgmr.msra.gmra.mrb[24].mxu0 %vm333_vm13, %v1611_v30 }
 0x705   :  { %3387 = vmatpush3.bf16.msra.mxu0 %v3902_v43  ;;  %3236 = vmatprep.mubr.msk.f32.mxu0 %vm3412_vm2, %v3411_v0 }
 0x706   :  { %3388 = vmatprep.subr.bf16.mxu0 %v3413_v7 }
 0x709   :  { %3390 = vmatpush3.bf16.msra.mxu0 %v3917_v50 }
 0x70c   :  { %3237 = vmatmul.mubr.msk.f32.vlgmr.msra.gmra.mrb[26].mxu0 %vm333_vm13, %v2494_v25 }
 0x7cf   :  { %v2231_v49 = vpop.f32.mrb[22].mxu0 }
 0x7d0   :  { %v2232_v51 = vadd.f32 %v3877_v9, %v2231_v49  ;;  %v3194_v1 = vpop.f32.mrb[23].mxu0 }
 0x7d2   :  { %v2758_v56 = vsel %vm79_vm0, %v2232_v51, %v2753_v52 }
 0x7d3   :  { %v2766_v43 = vsel %vm1228_vm3, %v2758_v56, %v2761_v48 }
 0x7d4   :  { %2831 = vst.msk [vmem:[%s4177_s20 + $0x10] sm:$0xff] %vm1430_vm4, %v2766_v43 }
 0x7d7   :  { %v2385_v50 = vpop.f32.mrb[24].mxu0 }
 0x7d8   :  { %v2386_v57 = vadd.f32 %v2385_v50, %v2312_v40  ;;  %v3216_v62 = vpop.f32.mrb[25].mxu0 }
 0x7da   :  { %v2390_v13 = vadd.f32 %v2389_v5, %v2386_v57 }
 0x7dc   :  { %v2391_v9 = vmax.f32 %v2390_v13, 0.0 }
 0x7de   :  { %3226 = vmatmul.mubr.msk.f32.vlgmr.msra.gmra.mrb[26].mxu1 %vm333_vm13, %v2391_v9 }
 0x7df   :  { %3393 = vmatpush3.bf16.msra.mxu1 %v3925_v55  ;;  %3243 = vmatprep.mubr.msk.f32.mxu1 %vm3412_vm2, %v3411_v0  ;;  %v2563_v10 = vpop.f32.mrb[26].mxu0 }
 0x7e0   :  { %3394 = vmatprep.subr.bf16.mxu1 %v3413_v7  ;;  %v2396_v7 = vld [vmem:[%s4180_s15] sm:$0x1] }
 0x8b1   :  { %v2466_v55 = vpop.f32.mrb[26].mxu1 }
 0x8b2   :  { %v2467_v53 = vadd.f32 %v2466_v55, %v2396_v7  ;;  %v3227_v59 = vpop.f32.mrb[27].mxu1 }
 0x8b4   :  { %v2473_v26 = vrot.slane %v2467_v53, %v1133_v3  ;;  %v2756_v39 = vrot.slane %v2467_v53, 6  ;;  %v3238_v3 = vpop.f32.mrb[27].mxu0 }
 0x8b6   :  { %v2474_v14 = vsub.f32 %v2473_v26, %v1986_v47  ;;  %v2759_v22 = vsel %vm318_vm14, %v2753_v52, %v2756_v39 }
 0x8b7   :  { %v2767_v63 = vsel %vm1228_vm3, %v2759_v22, %v2763_v28 }
 0x8b8   :  { %v2475_v29 = vand.u32 2147483647, %v2474_v14  ;;  %2832 = vst.msk [vmem:[%s4177_s20 + $0x18] sm:$0x7] %vm1432_vm1, %v2767_v63 }
 0x8ba   :  { %3244 = vmatmul.mubr.msk.f32.vlgmr.msra.gmra.mrb[28].mxu1 %vm1228_vm3, %v2475_v29 }
 0x8bb   :  { %3396 = vmatpush3.bf16.msra.mxu1 %v4003_v35  ;;  %3250 = vmatprep.mubr.msk.f32.mxu1 %vm3412_vm2, %v3411_v0 }
 0x98d   :  { %v2636_v19 = vpop.f32.mrb[28].mxu1 }
 0x98e   :  { %v2637_v31 = vadd.f32 %v2636_v19, %v2563_v10  ;;  %v3245_v32 = vpop.f32.mrb[29].mxu1 }
 0x990   :  { %v2647_v17 = vadd.f32 %v4032_v27, %v2637_v31 }
 0x992   :  { %v2648_v34 = vmax.f32 %v2647_v17, 0.0 }
 0x994   :  { %3251 = vmatmul.mubr.msk.f32.vlgmr.msra.gmra.mrb[30].mxu1 %vm1228_vm3, %v2648_v34 }
 0xa67   :  { %v2727_v23 = vpop.f32.mrb[30].mxu1 }
 0xa68   :  { %v2728_v15 = vadd.f32 %v4060_v44, %v2727_v23  ;;  %v3252_v21 = vpop.f32.mrb[31].mxu1 }
 0xa6a   :  { %v2731_v36 = vsel %vm1393_vm9, %v2728_v15, -inf }
 0xa6b   :  { %v2732_v35 = vrot.slane %v2731_v36, 4 }
 0xa6d   :  { %v2733_v37 = vmax.f32 %v2731_v36, %v2732_v35 }
 0xa6f   :  { %v2734_v33 = vrot.slane %v2733_v37, 2 }
 0xa71   :  { %v2735_v0 = vmax.f32 %v2733_v37, %v2734_v33 }
 0xa73   :  { %v2736_v41 = vrot.slane %v2735_v0, 1 }
 0xa75   :  { %v2737_v38 = vmax.f32 %v2735_v0, %v2736_v41 }
 0xa77   :  { %v2738_v58 = vsub.f32 %v2728_v15, %v2737_v38 }
 0xa79   :  { %v2739_v18 = vmul.f32 1.442695, %v2738_v58 }
 0xa7b   :  { %3407 = vpow2.f32 %v2739_v18 }
 0xa85   :  { %v3408_v60 = vpop.eup %3407 }
 0xa86   :  { %v2741_v27 = vsel %vm1393_vm9, %v3408_v60, 0.0 }
 0xa87   :  { %v2742_v42 = vrot.slane %v2741_v27, 4 }
 0xa89   :  { %v2743_v24 = vadd.f32 %v2742_v42, %v2741_v27 }
 0xa8b   :  { %v2744_v11 = vrot.slane %v2743_v24, 2 }
 0xa8d   :  { %v2745_v4 = vadd.f32 %v2744_v11, %v2743_v24 }
 0xa8f   :  { %v2746_v44 = vrot.slane %v2745_v4, 1 }
 0xa91   :  { %v2747_v45 = vadd.f32 %v2746_v44, %v2745_v4 }
 0xa93   :  { %3409 = vrcp.f32 %v2747_v45 }
 0xa9d   :  { %v3410_v6 = vpop.eup %3409 }
 0xa9e   :  { %v2749_v30 = vmul.f32 %v3410_v6, %v3408_v60 }
 0xaa0   :  { %2830 = vst.msk [vmem:[%s4184_s21 + $0x8] sm:$0x3f] %vm1393_vm9, %v2749_v30 }

// kernel: node_update_fwd.7
= control target key start
LH: loop header
LB: loop body
LE: loop exit
PB: predicated region body
PF: predicated region fallthrough
CT: control target
= control target key end

     0   :  { %vm56_vm0 = vcmask 1042432   ;;  %vm1661_vm1 = vmmov 1   ;;  %vm49_vm3 = vcmask 89088   ;;  %s2087_s0 = inlined_call_operand.vmem [shape: f32[2,11,48], index: 0, kind: input, shape index: {}]   ;;  %s2088_s1 = inlined_call_operand.vmem [shape: f32[2,11,11], index: 1, kind: input, shape index: {}]   ;;  %s2089_s2 = inlined_call_operand.vmem [shape: f32[48,24], index: 2, kind: input, shape index: {}]   ;;  %s2090_s3 = inlined_call_operand.vmem [shape: f32[1,24], index: 3, kind: input, shape index: {}]   ;;  %s2091_s4 = inlined_call_operand.vmem [shape: f32[24,2], index: 4, kind: input, shape index: {}]   ;;  %s2092_s5 = inlined_call_operand.vmem [shape: f32[1,2], index: 5, kind: input, shape index: {}]   ;;  %s2093_s6 = inlined_call_operand.vmem [shape: f32[48,4], index: 6, kind: input, shape index: {}]   ;;  %s2094_s7 = inlined_call_operand.vmem [shape: f32[1,4], index: 7, kind: input, shape index: {}]   ;;  %s2095_s8 = inlined_call_operand.vmem [shape: f32[48,4], index: 8, kind: input, shape index: {}]   ;;  %s2096_s9 = inlined_call_operand.vmem [shape: f32[1,4], index: 9, kind: input, shape index: {}]   ;;  %s2097_s10 = inlined_call_operand.vmem [shape: f32[48,4], index: 10, kind: input, shape index: {}]   ;;  %s2098_s11 = inlined_call_operand.vmem [shape: f32[1,4], index: 11, kind: input, shape index: {}]   ;;  %s2099_s12 = inlined_call_operand.hbm [shape: f32[2,2], index: 12, kind: output, shape index: {0}]   ;;  %s2100_s13 = inlined_call_operand.vmem [shape: f32[2,7,4], index: 13, kind: output, shape index: {1}]   ;;  %s2101_s14 = inlined_call_operand.vmem [shape: f32[2,4,4], index: 14, kind: output, shape index: {2}]  }
   0x1   :  { %v1746_v0 = vld [vmem:[%s2087_s0] sm:$0xff]  ;;  %v1751_v1 = vld [vmem:[%s2087_s0 + $0x8] sm:$0x7]  ;;  %vm1758_vm2 = vmpackc.low %vm56_vm0, %vm1661_vm1 }
   0x2   :  { %v47_v2 = vld [vmem:[%s2088_s1] sm:$0xff]  ;;  %v1504_v3 = vpack.c.bf16 %v1751_v1, %v1746_v0 }
   0x3   :  { %20 = vsyncpa [#allocation3], 0  ;;  %1356 = vmatprep.mubr.msk.f32.mxu0 %vm49_vm3, %v47_v2  ;;  %v48_v5 = vld [vmem:[%s2088_s1 + $0x8] sm:$0x7]  ;;  %v148_v6 = vld [vmem:[%s2089_s2] sm:$0xff]  ;;  %v1662_v9 = vmov 0.0|0.0  }
   0x4   :  { %1506 = vmatprep.subr.msk.bf16.mxu0 %vm1758_vm2, %v1504_v3  ;;  %v149_v7 = vld [vmem:[%s2089_s2 + $0x8] sm:$0xff]  ;;  %1510 = vmatprep.subr.bf16.mxu1 %v1662_v9  ;;  %v150_v10 = vld [vmem:[%s2089_s2 + $0x10] sm:$0xff]  ;;  %v151_v11 = vld [vmem:[%s2089_s2 + $0x18] sm:$0xff]  ;;  %vm1663_vm4 = vmmov 0   ;;  %v1664_v16 = vmov 0.0   ;;  %vm137_vm5 = vcmask 387072  }
   0x5   :  { %1509 = vmatpush3.bf16.msk.msra.mxu0 %vm1758_vm2, %v1504_v3  ;;  %v1777_v8 = vpack.c.bf16 %v149_v7, %v148_v6  ;;  %v1789_v12 = vpack.c.bf16 %v151_v11, %v150_v10  ;;  %v152_v13 = vld [vmem:[%s2089_s2 + $0x20] sm:$0xff]  ;;  %v153_v14 = vld [vmem:[%s2089_s2 + $0x28] sm:$0xff]  ;;  %1371 = vmatprep.mubr.msk.f32.mxu1 %vm1663_vm4, %v1664_v16  ;;  %vm135_vm6 = vcmask 392192   ;;  %v1833_v35 = vld [vmem:[%s2091_s4 + $0x10] sm:$0xff]  ;;  %v335_v41 = vrot.slane %v1746_v0, 4  ;;  %s1667_s17 = smov [#allocation2]  }
   0x6   :  { %1522 = vmatprep.subr.bf16.mxu0 %v1662_v9  ;;  %v1799_v15 = vpack.c.bf16 %v153_v14, %v152_v13  ;;  %v229_v27 = vld [vmem:[%s2091_s4] sm:$0xff]  ;;  %v230_v28 = vld [vmem:[%s2091_s4 + $0x8] sm:$0xff]  ;;  %v322_v36 = vld [vmem:[%s2093_s6 + $0x10] sm:$0xff]  ;;  %v336_v42 = vrot.slane %v1751_v1, 4  ;;  %vm334_vm7 = vcmask 1043456   ;;  %vm233_vm8 = vcmask 195584  }
   0x7   :  { %1512 = vmatpush3.bf16.msra.mxu1 %v1777_v8  ;;  %v1815_v30 = vpack.c.bf16 %v230_v28, %v229_v27  ;;  %v320_v32 = vld [vmem:[%s2093_s6] sm:$0xff]  ;;  %v321_v33 = vld [vmem:[%s2093_s6 + $0x8] sm:$0xff]  ;;  %v323_v37 = vld [vmem:[%s2093_s6 + $0x18] sm:$0xff]  ;;  %v417_v62 = vrot.slane %v1751_v1, 2  ;;  %vm307_vm9 = vcmask 8192   ;;  %vm493_vm10 = vcmask 1040384  }
   0x8   :  { %1357 = vmatmul.mubr.msk.f32.vlgmr.msra.gmra.mrb[0].mxu0 %vm49_vm3, %v48_v5  ;;  %1513 = vmatprep.subr.bf16.mxu1 %v1662_v9  ;;  %v1828_v34 = vpack.c.bf16 %v321_v33, %v320_v32  ;;  %v1845_v38 = vpack.c.bf16 %v323_v37, %v322_v36  ;;  %v324_v39 = vld [vmem:[%s2093_s6 + $0x20] sm:$0xff]  ;;  %v325_v40 = vld [vmem:[%s2093_s6 + $0x28] sm:$0xff]  ;;  %v337_v44 = vsel %vm334_vm7, %v335_v41, %v336_v42  ;;  %v412_v53 = vld [vmem:[%s2097_s10 + $0x10] sm:$0xff]  ;;  %vm496_vm13 = vcmask 30720   ;;  %s1238_s18 = sshll.u32 %s1667_s17, 4  ;;  %s1239_s18 = int_to_ptr.vmem [resolvable:$true] %s1238_s18 }
   0x9   :  { %1395 = vmatprep.mubr.msk.f32.mxu0 %vm1663_vm4, %v1664_v16  ;;  %v1857_v43 = vpack.c.bf16 %v325_v40, %v324_v39  ;;  %v154_v45 = vld [vmem:[%s2090_s3] sm:$0x1]  ;;  %v411_v47 = vld [vmem:[%s2097_s10 + $0x8] sm:$0xff]  ;;  %v413_v54 = vld [vmem:[%s2097_s10 + $0x18] sm:$0xff]  ;;  %vm639_vm0 = vcmask 15360   ;;  %vm641_vm1 = vcmask 27648   ;;  %p1642_p1 = scmp.lt.s32.totalorder %s1239_s18, %s1239_s18 }
   0xa   :  { %1524 = vmatpush3.bf16.msra.mxu0 %v1828_v34  ;;  %v410_v46 = vld [vmem:[%s2097_s10] sm:$0xff]  ;;  %v1884_v55 = vpack.c.bf16 %v413_v54, %v412_v53  ;;  %v415_v57 = vld [vmem:[%s2097_s10 + $0x28] sm:$0xff]  ;;  %v1898_v58 = vld [vmem:[%s2087_s0 + $0x10] sm:$0xff]  ;;  %s1637_s19 = scalar_lea.vmem %s1239_s18, 32 }
   0xb   :  { %1515 = vmatpush3.bf16.msra.mxu1 %v1789_v12  ;;  %1525 = vmatprep.subr.bf16.mxu0 %v1662_v9  ;;  %v1874_v51 = vpack.c.bf16 %v411_v47, %v410_v46  ;;  %v414_v56 = vld [vmem:[%s2097_s10 + $0x20] sm:$0xff]  ;;  %v1903_v59 = vld [vmem:[%s2087_s0 + $0x18] sm:$0x7]  ;;  %v1266_v63 = vld [vmem:[%s2088_s1 + $0x10] sm:$0xff]  ;;  %v927_v53 = vrot.slane %v1898_v58, 4  ;;  %p1638_p0 = scmp.ne.s32.totalorder %s1239_s18, %s1637_s19  ;;  %p1643_p2 = scmp.lt.s32.totalorder %s1637_s19, %s1637_s19 }
   0xc   :  { %1516 = vmatprep.subr.bf16.mxu1 %v1662_v9  ;;  %v1906_v60 = vpack.c.bf16 %v415_v57, %v414_v56  ;;  %v1549_v61 = vpack.c.bf16 %v1903_v59, %v1898_v58  ;;  %v1267_v1 = vld [vmem:[%s2088_s1 + $0x18] sm:$0x7]  ;;  %v232_v4 = vld [vmem:[%s2092_s5] sm:$0x1]  ;;  %v533_v33 = vld [vmem:[%s2095_s8 + $0x8] sm:$0xff]  ;;  %v928_v54 = vrot.slane %v1903_v59, 4 }
   0xd   :  { %v1942_v10 = vld [vmem:[%s2094_s7] ss:$0 sm:$0xff]  ;;  %v534_v36 = vld [vmem:[%s2095_s8 + $0x10] sm:$0xff]  ;;  %v535_v39 = vld [vmem:[%s2095_s8 + $0x18] sm:$0xff]  ;;  %p1644_p3 = por %p1643_p2, %p1642_p1 }
   0xe   :  { %1527 = vmatpush3.bf16.msra.mxu0 %v1845_v38  ;;  %v532_v32 = vld [vmem:[%s2095_s8] sm:$0xff]  ;;  %v1544_v40 = vpack.c.bf16 %v535_v39, %v534_v36  ;;  %v537_v42 = vld [vmem:[%s2095_s8 + $0x28] sm:$0xff]  ;;  %v929_v56 = vsel %vm334_vm7, %v927_v53, %v928_v54 }
   0xf   :  { %1518 = vmatpush3.bf16.msra.mxu1 %v1799_v15  ;;  %1528 = vmatprep.subr.bf16.mxu0 %v1662_v9  ;;  %v1541_v37 = vpack.c.bf16 %v533_v33, %v532_v32  ;;  %v536_v41 = vld [vmem:[%s2095_s8 + $0x20] sm:$0xff]  ;;  %p1645_p4 = pnand %p1644_p3, %p1638_p0 }
  0x10   :  { %1519 = vmatprep.subr.bf16.mxu1 %v1662_v9 }
  0x12   :  { %1530 = vmatpush3.bf16.msra.mxu0 %v1857_v43 }
  0x13   :  { %1540 = vmatprep.subr.bf16.mxu0 %v1662_v9 }
  0x15   :  { %1396 = vmatmul.mubr.msk.f32.vlgmr.msra.gmra.mrb[2].mxu0 %vm135_vm6, %v337_v44  ;;  %v1547_v44 = vpack.c.bf16 %v537_v42, %v536_v41 }
  0x16   :  { %1425 = vmatprep.mubr.msk.f32.mxu0 %vm1663_vm4, %v1664_v16  ;;  %1542 = vmatpush3.bf16.msra.mxu0 %v1541_v37 }
  0x17   :  { %1543 = vmatprep.subr.bf16.mxu0 %v1662_v9 }
  0x1a   :  { %1545 = vmatpush3.bf16.msra.mxu0 %v1544_v40 }
  0x1b   :  { %1546 = vmatprep.subr.bf16.mxu0 %v1662_v9 }
  0x1e   :  { %1548 = vmatpush3.bf16.msra.mxu0 %v1547_v44 }
  0x1f   :  { %1564 = vmatprep.subr.bf16.mxu0 %v1662_v9 }
  0x21   :  { %1426 = vmatmul.mubr.msk.f32.vlgmr.msra.gmra.mrb[4].mxu0 %vm135_vm6, %v1746_v0 }
  0x22   :  { %1566 = vmatpush3.bf16.msra.mxu0 %v1815_v30  ;;  %1456 = vmatprep.mubr.msk.f32.mxu0 %vm1663_vm4, %v1664_v16 }
  0x23   :  { %1454 = vmatprep.subr.mxu0 %v1664_v16 }
  0x26   :  { %1455 = vmatpush3.msra.mxu0 %v1833_v35 }
  0x27   :  { %1567 = vmatprep.subr.bf16.mxu0 %v1662_v9 }
  0xdb   :  { %v1358_v17 = vpop.f32.mrb[0].mxu0 }
  0xdc   :  { %v138_v18 = vsel %vm137_vm5, %v1358_v17, 0.0  ;;  %v126_v19 = vpop.f32.mrb[1].mxu0 }
  0xdd   :  { %v136_v20 = vsel %vm135_vm6, %v126_v19, 0.0 }
  0xde   :  { %v139_v21 = vadd.f32 %v138_v18, %v136_v20 }
  0xe0   :  { %v140_v22 = vrot.slane %v139_v21, 4 }
  0xe2   :  { %v141_v23 = vadd.f32 %v140_v22, %v139_v21 }
  0xe4   :  { %v142_v24 = vrot.slane %v141_v23, 2 }
  0xe6   :  { %v143_v25 = vadd.f32 %v142_v24, %v141_v23 }
  0xe8   :  { %v144_v26 = vrot.slane %v143_v25, 1  ;;  %v406_v2 = vpop.f32.mrb[2].mxu0 }
  0xe9   :  { %v1397_v3 = vpop.f32.mrb[3].mxu0  ;;  %v407_v11 = vadd.f32 %v1942_v10, %v406_v2 }
  0xea   :  { %v145_v29 = vadd.f32 %v144_v26, %v143_v25 }
  0xeb   :  { %v491_v13 = vrot.slane %v407_v11, 7 }
  0xec   :  { %v147_v31 = vmul.f32 0.09090909, %v145_v29 }
  0xee   :  { %1372 = vmatmul.mubr.msk.f32.vlgmr.msra.gmra.mrb[0].mxu1 %vm135_vm6, %v147_v31 }
  0xef   :  { %1521 = vmatpush3.bf16.msra.mxu1 %v1815_v30  ;;  %1380 = vmatprep.mubr.msk.f32.mxu1 %vm1663_vm4, %v1664_v16 }
  0xf0   :  { %1378 = vmatprep.subr.mxu1 %v1664_v16 }
  0xf3   :  { %1379 = vmatpush3.msra.mxu1 %v1833_v35 }
  0xf4   :  { %1531 = vmatprep.subr.bf16.mxu1 %v1662_v9 }
 0x1c1   :  { %v224_v48 = vpop.f32.mrb[0].mxu1 }
 0x1c2   :  { %v225_v49 = vadd.f32 %v224_v48, %v154_v45  ;;  %v1373_v50 = vpop.f32.mrb[1].mxu1  ;;  %v1009_v45 = vrot.slane %v1903_v59, 2 }
 0x1c4   :  { %v228_v52 = vmax.f32 %v225_v49, 0.0  ;;  %v749_v49 = vld [vmem:[%s2090_s3] sm:$0x1] }
 0x1c6   :  { %1381 = vmatmul.mubr.msk.f32.vlgmr.msra.gmra.mrb[2].mxu1 %vm233_vm8, %v228_v52 }
 0x1c7   :  { %1533 = vmatpush3.bf16.msra.mxu1 %v1874_v51  ;;  %1410 = vmatprep.mubr.msk.f32.mxu1 %vm1663_vm4, %v1664_v16 }
 0x1c8   :  { %1534 = vmatprep.subr.bf16.mxu1 %v1662_v9 }
 0x1cb   :  { %1536 = vmatpush3.bf16.msra.mxu1 %v1884_v55 }
 0x1cc   :  { %1537 = vmatprep.subr.bf16.mxu1 %v1662_v9 }
 0x1cf   :  { %1539 = vmatpush3.bf16.msra.mxu1 %v1906_v60 }
 0x1d0   :  { %1551 = vmatprep.subr.msk.bf16.mxu1 %vm1758_vm2, %v1549_v61 }
 0x1d2   :  { %1411 = vmatmul.mubr.msk.f32.vlgmr.msra.gmra.mrb[4].mxu1 %vm135_vm6, %v417_v62 }
 0x1d3   :  { %1554 = vmatpush3.bf16.msk.msra.mxu1 %vm1758_vm2, %v1549_v61  ;;  %1432 = vmatprep.mubr.msk.f32.mxu1 %vm49_vm3, %v1266_v63  ;;  %vm500_vm2 = vcmask 1046528  }
 0x1d4   :  { %1555 = vmatprep.subr.bf16.mxu1 %v1662_v9 }
 0x1d6   :  { %1433 = vmatmul.mubr.msk.f32.vlgmr.msra.gmra.mrb[6].mxu1 %vm49_vm3, %v1267_v1 }
 0x1d7   :  { %1557 = vmatpush3.bf16.msra.mxu1 %v1777_v8  ;;  %1447 = vmatprep.mubr.msk.f32.mxu1 %vm1663_vm4, %v1664_v16 }
 0x1d8   :  { %1558 = vmatprep.subr.bf16.mxu1 %v1662_v9 }
 0x1db   :  { %1560 = vmatpush3.bf16.msra.mxu1 %v1789_v12  ;;  %v416_v12 = vld [vmem:[%s2098_s11] sm:$0x1] }
 0x1dc   :  { %1561 = vmatprep.subr.bf16.mxu1 %v1662_v9 }
 0x1df   :  { %1563 = vmatpush3.bf16.msra.mxu1 %v1799_v15 }
 0x1e0   :  { %1576 = vmatprep.subr.bf16.mxu1 %v1662_v9 }
 0x299   :  { %v303_v5 = vpop.f32.mrb[2].mxu1 }
 0x29a   :  { %v304_v6 = vadd.f32 %v303_v5, %v232_v4  ;;  %v1382_v7 = vpop.f32.mrb[3].mxu1  ;;  %v1008_v5 = vld [vmem:[%s2098_s11] sm:$0x1] }
 0x29c   :  { %v308_v8 = vsel %vm307_vm9, %v304_v6, -inf }
 0x29d   :  { %309 = vmax.xlane.f32.xlu0 %v308_v8 }
 0x2a5   :  { %v486_v14 = vpop.f32.mrb[4].mxu1 }
 0x2a6   :  { %v487_v15 = vadd.f32 %v486_v14, %v416_v12  ;;  %v1412_v17 = vpop.f32.mrb[5].mxu1 }
 0x2a8   :  { %v1949_v18 = vsel %vm493_vm10, %v487_v15, %v491_v13  ;;  %v1262_v13 = vld [vmem:[%s2096_s9] ss:$0 sm:$0xff]  ;;  %s1666_s9 = smov 2  }
 0x2a9   :  { %v1434_v19 = vpop.f32.mrb[6].mxu1  ;;  %v495_v41 = vmul.f32 %v1949_v18, %v1949_v18 }
 0x2aa   :  { %v734_v20 = vsel %vm137_vm5, %v1434_v19, 0.0  ;;  %v724_v21 = vpop.f32.mrb[7].mxu1 }
 0x2ab   :  { %v733_v22 = vsel %vm135_vm6, %v724_v21, 0.0  ;;  %v497_v42 = vsel %vm496_vm13, %v495_v41, 0.0 }
 0x2ac   :  { %v735_v23 = vadd.f32 %v734_v20, %v733_v22 }
 0x2ae   :  { %v736_v24 = vrot.slane %v735_v23, 4 }
 0x2b0   :  { %v737_v25 = vadd.f32 %v736_v24, %v735_v23 }
 0x2b2   :  { %v738_v26 = vrot.slane %v737_v25, 2 }
 0x2b4   :  { %v739_v27 = vadd.f32 %v738_v26, %v737_v25 }
 0x2b6   :  { %v740_v28 = vrot.slane %v739_v27, 1 }
 0x2b8   :  { %v741_v29 = vadd.f32 %v740_v28, %v739_v27 }
 0x2ba   :  { %v742_v31 = vmul.f32 0.09090909, %v741_v29 }
 0x2bc   :  { %1448 = vmatmul.mubr.msk.f32.vlgmr.msra.gmra.mrb[8].mxu1 %vm135_vm6, %v742_v31 }
 0x2bd   :  { %1578 = vmatpush3.bf16.msra.mxu1 %v1874_v51  ;;  %1486 = vmatprep.mubr.msk.f32.mxu1 %vm1663_vm4, %v1664_v16 }
 0x2be   :  { %1579 = vmatprep.subr.bf16.mxu1 %v1662_v9 }
 0x2c1   :  { %1581 = vmatpush3.bf16.msra.mxu1 %v1884_v55  ;;  %v613_v55 = vpop.f32.mrb[4].mxu0 }
 0x2c2   :  { %1582 = vmatprep.subr.bf16.mxu1 %v1662_v9  ;;  %v1427_v57 = vpop.f32.mrb[5].mxu0  ;;  %v614_v15 = vadd.f32 %v1262_v13, %v613_v55 }
 0x2c4   :  { %v617_v17 = vmul.f32 %v614_v15, %v614_v15 }
 0x2c5   :  { %1584 = vmatpush3.bf16.msra.mxu1 %v1906_v60 }
 0x2c8   :  { %1487 = vmatmul.mubr.msk.f32.vlgmr.msra.gmra.mrb[10].mxu1 %vm135_vm6, %v1009_v45 }
 0x32a   :  { %v310_v46 = vpop.xlane.xlu0 %309 }
 0x32b   :  { %v311_v47 = vsub.f32 %v304_v6, %v310_v46 }
 0x32d   :  { %v312_v48 = vmul.f32 1.442695, %v311_v47 }
 0x32f   :  { %1605 = vpow2.f32 %v312_v48 }
 0x339   :  { %v1606_v0 = vpop.eup %1605 }
 0x33a   :  { %v314_v30 = vsel %vm307_vm9, %v1606_v0, 0.0 }
 0x33b   :  { %315 = vadd.xlane.f32.xlu1 %v314_v30 }
 0x38f   :  { %v819_v50 = vpop.f32.mrb[8].mxu1 }
 0x390   :  { %v820_v35 = vadd.f32 %v819_v50, %v749_v49  ;;  %v1449_v51 = vpop.f32.mrb[9].mxu1 }
 0x392   :  { %v823_v52 = vmax.f32 %v820_v35, 0.0 }
 0x394   :  { %1457 = vmatmul.mubr.msk.f32.vlgmr.msra.gmra.mrb[6].mxu0 %vm233_vm8, %v823_v52 }
 0x395   :  { %1569 = vmatpush3.bf16.msra.mxu0 %v1828_v34  ;;  %1471 = vmatprep.mubr.msk.f32.mxu0 %vm1663_vm4, %v1664_v16 }
 0x396   :  { %1570 = vmatprep.subr.bf16.mxu0 %v1662_v9 }
 0x399   :  { %1572 = vmatpush3.bf16.msra.mxu0 %v1845_v38 }
 0x39a   :  { %1573 = vmatprep.subr.bf16.mxu0 %v1662_v9 }
 0x39d   :  { %1575 = vmatpush3.bf16.msra.mxu0 %v1857_v43 }
 0x39e   :  { %1585 = vmatprep.subr.bf16.mxu0 %v1662_v9 }
 0x3a0   :  { %1472 = vmatmul.mubr.msk.f32.vlgmr.msra.gmra.mrb[8].mxu0 %vm135_vm6, %v929_v56 }
 0x3a1   :  { %1587 = vmatpush3.bf16.msra.mxu0 %v1541_v37  ;;  %1501 = vmatprep.mubr.msk.f32.mxu0 %vm1663_vm4, %v1664_v16 }
 0x3a2   :  { %1588 = vmatprep.subr.bf16.mxu0 %v1662_v9 }
 0x3a5   :  { %1590 = vmatpush3.bf16.msra.mxu0 %v1544_v40 }
 0x3a6   :  { %1591 = vmatprep.subr.bf16.mxu0 %v1662_v9  ;;  %v1078_v9 = vpop.f32.mrb[10].mxu1 }
 0x3a7   :  { %v1488_v63 = vpop.f32.mrb[11].mxu1  ;;  %v1079_v8 = vadd.f32 %v1078_v9, %v1008_v5 }
 0x3a9   :  { %1593 = vmatpush3.bf16.msra.mxu0 %v1547_v44 }
 0x3ac   :  { %1502 = vmatmul.mubr.msk.f32.vlgmr.msra.gmra.mrb[10].mxu0 %vm135_vm6, %v1898_v58  ;;  %v827_v58 = vld [vmem:[%s2092_s5] sm:$0x1]  ;;  %s1665_s5 = smov 126  }
 0x3c8   :  { %v316_v34 = vpop.xlane.xlu1 %315 }
 0x3c9   :  { %1607 = vrcp.f32 %v316_v34 }
 0x3d3   :  { %v1608_v38 = vpop.eup %1607 }
 0x3d4   :  { %v318_v43 = vmul.f32 %v1608_v38, %v1606_v0 }
 0x3d6   :  { %319 = vst.msk [vmem:[#allocation2] sm:$0x1] %vm307_vm9, %v318_v43  ;;  %1609 = vrsqrt.f32 %v318_v43  ;;  %vm521_vm11 = vcmp.eq.f32.partialorder %v318_v43, inf  ;;  %v524_v16 = vand.u32 2147483648, %v318_v43  ;;  %vm523_vm12 = vcmp.eq.f32.partialorder %v318_v43, 0.0 }
 0x3e0   :  { %v1610_v59 = vpop.eup %1609 }
 0x3e1   :  { %v520_v60 = vmul.f32 %v1610_v59, %v318_v43 }
 0x3e3   :  { %v522_v61 = vsel %vm521_vm11, %v318_v43, %v520_v60 }
 0x3e4   :  { %v525_v62 = vsel %vm523_vm12, %v524_v16, %v522_v61 }
 0x3e5   :  { %1594 = vpush %v525_v62 }
 0x467   :  { %v897_v1 = vpop.f32.mrb[6].mxu0 }
 0x468   :  { %v898_v2 = vadd.f32 %v897_v1, %v827_v58  ;;  %v1458_v3 = vpop.f32.mrb[7].mxu0 }
 0x46a   :  { %v901_v4 = vsel %vm307_vm9, %v898_v2, -inf }
 0x46b   :  { %902 = vmax.xlane.f32.xlu0 %v901_v4 }
 0x473   :  { %v998_v6 = vpop.f32.mrb[8].mxu0 }
 0x474   :  { %v999_v7 = vadd.f32 %v1942_v10, %v998_v6  ;;  %v1473_v11 = vpop.f32.mrb[9].mxu0 }
 0x476   :  { %v1083_v12 = vrot.slane %v999_v7, 7 }
 0x478   :  { %v2028_v14 = vsel %vm493_vm10, %v1079_v8, %v1083_v12 }
 0x479   :  { %v1086_v21 = vmul.f32 %v2028_v14, %v2028_v14 }
 0x47b   :  { %v1087_v10 = vsel %vm496_vm13, %v1086_v21, 0.0 }
 0x47f   :  { %v1203_v19 = vpop.f32.mrb[10].mxu0 }
 0x480   :  { %v1503_v20 = vpop.f32.mrb[11].mxu0  ;;  %v2035_v39 = vadd.f32 %v1262_v13, %v1203_v19 }
 0x481   :  { %619 = vrot.lane.b32.xlu0 %v617_v17, %s1665_s5 }
 0x482   :  { %v1207_v40 = vmul.f32 %v2035_v39, %v2035_v39 }
 0x4a0   :  { %1088 = vadd.xlane.f32.xlu0 %v1087_v10 }
 0x4f8   :  { %v903_v22 = vpop.xlane.xlu0 %902 }
 0x4f9   :  { %v904_v23 = vsub.f32 %v898_v2, %v903_v22 }
 0x4fb   :  { %v905_v24 = vmul.f32 1.442695, %v904_v23 }
 0x4fc   :  { %v620_v25 = vpop.permute.xlu0 %619 }
 0x4fd   :  { %1611 = vpow2.f32 %v905_v24  ;;  %v622_v26 = vadd.f32 %v620_v25, %v617_v17 }
 0x4ff   :  { %1613 = vrsqrt.f32 %v622_v26  ;;  %vm625_vm14 = vcmp.eq.f32.partialorder %v622_v26, inf  ;;  %v628_v32 = vand.u32 2147483648, %v622_v26  ;;  %vm627_vm15 = vcmp.eq.f32.partialorder %v622_v26, 0.0 }
 0x507   :  { %v1612_v27 = vpop.eup %1611 }
 0x508   :  { %v907_v28 = vsel %vm307_vm9, %v1612_v27, 0.0 }
 0x509   :  { %v1614_v29 = vpop.eup %1613  ;;  %908 = vadd.xlane.f32.xlu1 %v907_v28 }
 0x50a   :  { %v624_v31 = vmul.f32 %v1614_v29, %v622_v26 }
 0x50c   :  { %v626_v33 = vsel %vm625_vm14, %v622_v26, %v624_v31 }
 0x50d   :  { %v629_v36 = vsel %vm627_vm15, %v628_v32, %v626_v33 }
 0x50e   :  { %v630_v37 = vmax.f32 %v629_v36, 1e-12 }
 0x510   :  { %634 = vrot.lane.b32.xlu0 %v630_v37, %s1666_s9  ;;  %1615 = vrcp.f32 %v630_v37 }
 0x51a   :  { %1209 = vrot.lane.b32.xlu1 %v1207_v40, %s1665_s5  ;;  %v1616_v46 = vpop.eup %1615 }
 0x51b   :  { %v632_v48 = vmul.f32 %v1616_v46, %v614_v15 }
 0x52d   :  { %v1089_v44 = vpop.xlane.xlu0 %1088 }
 0x52e   :  { %v1090_v51 = vsel %vm500_vm2, %v1089_v44, 0.0 }
 0x52f   :  { %v1091_v52 = vrot.slane %v1090_v51, 4 }
 0x531   :  { %v1092_v55 = vadd.f32 %v1091_v52, %v1090_v51 }
 0x533   :  { %v1093_v57 = vrot.slane %v1092_v55, 2 }
 0x535   :  { %v1094_v60 = vadd.f32 %v1093_v57, %v1092_v55 }
 0x53e   :  { %498 = vadd.xlane.f32.xlu1 %v497_v42 }
 0x582   :  { %v635_v45 = vpop.permute.xlu0 %634 }
 0x583   :  { %1617 = vrcp.f32 %v635_v45 }
 0x58d   :  { %v1618_v47 = vpop.eup %1617 }
 0x58e   :  { %v638_v0 = vmul.f32 %v1618_v47, %v614_v15 }
 0x590   :  { %v640_v30 = vsel %vm639_vm0, %v632_v48, %v638_v0 }
 0x591   :  { %642 = vst.msk [vmem:[%s2101_s14] sm:$0xf] %vm641_vm1, %v640_v30 }
 0x596   :  { %v909_v49 = vpop.xlane.xlu1 %908 }
 0x597   :  { %1619 = vrcp.f32 %v909_v49 }
 0x59a   :  { %v1210_v50 = vpop.permute.xlu1 %1209 }
 0x59b   :  { %v1212_v35 = vadd.f32 %v1210_v50, %v1207_v40 }
 0x59d   :  { %1621 = vrsqrt.f32 %v1212_v35  ;;  %vm1215_vm3 = vcmp.eq.f32.partialorder %v1212_v35, inf  ;;  %v1218_v38 = vand.u32 2147483648, %v1212_v35  ;;  %vm1217_vm4 = vcmp.eq.f32.partialorder %v1212_v35, 0.0 }
 0x5a1   :  { %v1620_v53 = vpop.eup %1619 }
 0x5a2   :  { %v911_v54 = vmul.f32 %v1620_v53, %v1612_v27 }
 0x5a4   :  { %912 = vst.msk [vmem:[#allocation2 + $0x1] sm:$0x1] %vm307_vm9, %v911_v54  ;;  %1623 = vrsqrt.f32 %v911_v54 }
 0x5a7   :  { %v1622_v56 = vpop.eup %1621 }
 0x5a8   :  { %v1214_v34 = vmul.f32 %v1622_v56, %v1212_v35 }
 0x5aa   :  { %v1216_v43 = vsel %vm1215_vm3, %v1212_v35, %v1214_v34 }
 0x5ab   :  { %v2049_v59 = vsel %vm1217_vm4, %v1218_v38, %v1216_v43 }
 0x5ac   :  { %v1220_v16 = vmax.f32 %v2049_v59, 1e-12 }
 0x5ae   :  { %v1624_v61 = vpop.eup %1623  ;;  %1224 = vrot.lane.b32.xlu1 %v1220_v16, %s1666_s9 }
 0x5af   :  { %v1109_v62 = vmul.f32 %v1624_v61, %v911_v54 }
 0x5b0   :  { %1648 = shalt.err (!%p1645_p4)
}
 0x5b1   :  { %s1649_s21 = scalar_lea.hbm %s2099_s12, 32 }
 0x5b2   :  { %p1650_p5 = scmp.ne.s32.totalorder %s2099_s12, %s1649_s21  ;;  %p1653_p6 = scmp.lt.u32.totalorder %s1649_s21, %s2099_s12 }
 0x5b4   :  { %p1655_p7 = pnand %p1653_p6, %p1650_p5 }
 0x5b6   :  { %1658 = shalt.err (!%p1655_p7)
}
 0x5b7   :  { %1241 = dma.vmem_to_hbm [thread:$0]  %s1239_s18, 32, %s2099_s12, [#allocation3]   ;;  %v1095_v9 = vrot.slane %v1094_v60, 1  ;;  %vm1110_vm5 = vcmp.eq.f32.partialorder %v911_v54, inf  ;;  %v1113_v63 = vand.u32 2147483648, %v911_v54  ;;  %vm1112_vm6 = vcmp.eq.f32.partialorder %v911_v54, 0.0 }
 0x5b8   :  { %v1111_v58 = vsel %vm1110_vm5, %v911_v54, %v1109_v62  ;;  %s1595_s12 = spop %1594 }
 0x5b9   :  { %v1114_v1 = vsel %vm1112_vm6, %v1113_v63, %v1111_v58  ;;  %v1096_v2 = vadd.f32 %v1095_v9, %v1094_v60  ;;  %v528_v37 = vstv %s1595_s12 }
 0x5ba   :  { %1596 = vpush %v1114_v1 }
 0x5bb   :  { %1625 = vrsqrt.f32 %v1096_v2  ;;  %vm1099_vm7 = vcmp.eq.f32.partialorder %v1096_v2, inf  ;;  %v1102_v5 = vand.u32 2147483648, %v1096_v2  ;;  %vm1101_vm8 = vcmp.eq.f32.partialorder %v1096_v2, 0.0 }
 0x5c5   :  { %v1626_v3 = vpop.eup %1625 }
 0x5c6   :  { %v1098_v4 = vmul.f32 %v1626_v3, %v1096_v2 }
 0x5c8   :  { %v1100_v6 = vsel %vm1099_vm7, %v1096_v2, %v1098_v4 }
 0x5c9   :  { %v1103_v11 = vsel %vm1101_vm8, %v1102_v5, %v1100_v6 }
 0x5ca   :  { %v1104_v15 = vmax.f32 %v1103_v11, 1e-12 }
 0x5cb   :  { %v499_v7 = vpop.xlane.xlu1 %498 }
 0x5cc   :  { %v501_v8 = vsel %vm500_vm2, %v499_v7, 0.0  ;;  %1627 = vrcp.f32 %v1104_v15 }
 0x5cd   :  { %v502_v12 = vrot.slane %v501_v8, 4 }
 0x5cf   :  { %v503_v13 = vadd.f32 %v502_v12, %v501_v8 }
 0x5d1   :  { %v504_v17 = vrot.slane %v503_v13, 2 }
 0x5d3   :  { %v505_v19 = vadd.f32 %v504_v17, %v503_v13 }
 0x5d5   :  { %v506_v20 = vrot.slane %v505_v19, 1 }
 0x5d6   :  { %v1628_v10 = vpop.eup %1627 }
 0x5d7   :  { %v507_v21 = vadd.f32 %v506_v20, %v505_v19  ;;  %v1106_v22 = vmul.f32 %v1628_v10, %v2028_v14 }
 0x5d9   :  { %1629 = vrsqrt.f32 %v507_v21  ;;  %v1107_v25 = vmul.f32 2.0, %v1106_v22  ;;  %vm510_vm9 = vcmp.eq.f32.partialorder %v507_v21, inf  ;;  %v513_v26 = vand.u32 2147483648, %v507_v21 }
 0x5da   :  { %vm512_vm10 = vcmp.eq.f32.partialorder %v507_v21, 0.0 }
 0x5e3   :  { %v1630_v23 = vpop.eup %1629 }
 0x5e4   :  { %v509_v24 = vmul.f32 %v1630_v23, %v507_v21 }
 0x5e6   :  { %v511_v28 = vsel %vm510_vm9, %v507_v21, %v509_v24 }
 0x5e7   :  { %v514_v31 = vsel %vm512_vm10, %v513_v26, %v511_v28 }
 0x5e8   :  { %v515_v32 = vmax.f32 %v514_v31, 1e-12 }
 0x5ea   :  { %1631 = vrcp.f32 %v515_v32 }
 0x5eb   :  { %s1597_s28 = spop %1596  ;;  %1633 = vrcp.f32 %v1220_v16 }
 0x5ec   :  { %v1117_v27 = vstv %s1597_s28 }
 0x5ed   :  { %v1119_v29 = vmul.f32 %v1117_v27, %v1107_v25 }
 0x5ef   :  { %1276 = vst.msk [vmem:[%s2100_s13 + $0x8] sm:$0x7f] %vm496_vm13, %v1119_v29 }
 0x5f4   :  { %v1632_v14 = vpop.eup %1631 }
 0x5f5   :  { %v517_v33 = vmul.f32 %v1632_v14, %v1949_v18  ;;  %v1634_v42 = vpop.eup %1633 }
 0x5f6   :  { %v1222_v45 = vmul.f32 %v1634_v42, %v2035_v39 }
 0x5f7   :  { %v518_v36 = vmul.f32 2.0, %v517_v33 }
 0x5f9   :  { %v530_v40 = vmul.f32 %v528_v37, %v518_v36 }
 0x5fb   :  { %531 = vst.msk [vmem:[%s2100_s13] sm:$0x7f] %vm496_vm13, %v530_v40 }
 0x620   :  { %v1225_v41 = vpop.permute.xlu1 %1224 }
 0x621   :  { %1635 = vrcp.f32 %v1225_v41 }
 0x62b   :  { %v1636_v44 = vpop.eup %1635 }
 0x62c   :  { %v1228_v46 = vmul.f32 %v1636_v44, %v2035_v39 }
 0x62e   :  { %v1229_v18 = vsel %vm639_vm0, %v1222_v45, %v1228_v46 }
 0x62f   :  { %1279 = vst.msk [vmem:[%s2101_s14 + $0x4] sm:$0xf] %vm641_vm1, %v1229_v18 }
 0x630   :  { %1659 = dma.done.wait [#allocation3], 32  }
 0x631   :  { %1660 = vsyncadd [#allocation3], 4294967264 }
 0x632   :  { %1253 = vsyncpa [#allocation3], 1 }

</bundles_post_ra>
